<compile_context>
chip_gen: v7x
topology: tpu7x:2x2x1
jax: 0.10.0
libtpu: 0.0.40
codegen_flags: <defaults>
</compile_context>

<pallas_src>
import jax
import jax.numpy as jnp
from jax.experimental import pallas as pl
from jax.experimental.pallas import tpu as pltpu


def _make_convblock_kernel(W: int):
    Wp = W // 2

    def kernel(x_ref, w_ref, scale_ref, shift_ref, o_ref):
        # x_ref:     (1, Cin, TH*W)             bf16/f32 (NCHW row tile, spatial on lanes)
        # w_ref:     (Cout, Cin)                bf16/f32
        # scale_ref: (Cout, 1) f32              gamma / sqrt(var + eps)
        # shift_ref: (Cout, 1) f32              beta - mean * scale
        # o_ref:     (1, Cout, (TH//2)*(W//2))  f32
        Cout = w_ref.shape[0]
        L = x_ref.shape[2]
        TH = L // W
        THp = TH // 2

        x = x_ref[0]                                            # (Cin, TH*W)

        # 1x1 conv == per-pixel channel contraction, f32 accumulate.
        # NOTE: with tiny Cin the MXU K-lanes are mostly idle; the kernel is
        # HBM-bound so MXU utilization does not matter here.
        y = jnp.dot(w_ref[...], x, preferred_element_type=jnp.float32)  # (Cout, L)

        # ReLU (monotone -> commutes with the 2x2 pooling below).  VPU, f32.
        y = jnp.maximum(y, 0.0)

        # MaxPool2d(2,2): H-direction as a pairwise max of two contiguous W-long
        # lane slices (no strided lane access), W-direction as a trailing
        # size-2 reduce.  Min-pool carried along for negative BN scales.
        y = y.reshape(Cout, THp, 2 * W)
        top = y[..., :W]                                        # rows h = 2*hp
        bot = y[..., W:]                                        # rows h = 2*hp + 1
        hmax = jnp.maximum(top, bot)
        hmin = jnp.minimum(top, bot)
        pmax = jnp.max(hmax.reshape(Cout, THp, Wp, 2), axis=3).reshape(Cout, THp * Wp)
        pmin = jnp.min(hmin.reshape(Cout, THp, Wp, 2), axis=3).reshape(Cout, THp * Wp)

        # BatchNorm2d (eval) folded affine, applied post-pool (4x fewer elems).
        s = scale_ref[...]                                      # (Cout, 1) lane-broadcast
        t = shift_ref[...]
        pooled = jnp.where(s >= 0.0, pmax, pmin)
        # Dropout2d(p=0.5) is identity in eval mode.
        o_ref[0] = (pooled * s + t).astype(o_ref.dtype)

    return kernel


def _pick_row_tile(H, W, Cin, Cout, in_itemsize, budget_bytes=12 * 1024 * 1024):
    """Largest even row tile TH dividing H whose input + pooled-output blocks fit
    the per-block VMEM budget (so double-buffering stays well inside the scoped
    VMEM limit on v5e/v6e and the smaller 64 MiB VMEM of v7x).  Partial tiles
    keep both the input lane span (TH*W) and the pooled output lane span
    (TH*W/4) multiples of 128."""
    def block_bytes(th):
        return th * W * Cin * in_itemsize + (th // 2) * (W // 2) * Cout * 4

    cands = [d for d in range(2, H + 1, 2)
             if H % d == 0 and (d == H or (d * W) % 512 == 0)]
    fitting = [d for d in cands if block_bytes(d) <= budget_bytes]
    return max(fitting) if fitting else min(cands)


def conv_block_forward(x_nchw, weight, gamma, beta, running_mean, running_var,
                       eps=1e-5, *, input_dtype=jnp.bfloat16, row_tile=None):
    """ConvBlock forward (eval mode), NCHW in / NCHW out.

    x_nchw: (N, Cin, H, W);  weight: (Cout, Cin, 1, 1) (PyTorch Conv2d layout).
    Returns (N, Cout, H//2, W//2) float32.
    `input_dtype` sets the storage/MXU dtype of the x / weight DMA streams only.
    """
    N, Cin, H, W = x_nchw.shape
    Cout = weight.shape[0]
    assert H % 2 == 0 and W % 2 == 0, "MaxPool2d(2,2) needs even H and W"
    Hp, Wp = H // 2, W // 2

    in_dt = jnp.dtype(input_dtype)

    # NCHW kept end-to-end: (N,Cin,H,W)->(N,Cin,H*W) and the final
    # (N,Cout,Hp*Wp)->(N,Cout,Hp,Wp) are free contiguous reshapes.
    x_flat = x_nchw.reshape(N, Cin, H * W).astype(in_dt)
    w_mat = weight.reshape(Cout, Cin).astype(in_dt)
    scale_vec = gamma.astype(jnp.float32) / jnp.sqrt(
        running_var.astype(jnp.float32) + eps)
    shift_vec = beta.astype(jnp.float32) - running_mean.astype(jnp.float32) * scale_vec
    scale = scale_vec.reshape(Cout, 1)
    shift = shift_vec.reshape(Cout, 1)

    TH = row_tile if row_tile is not None else _pick_row_tile(
        H, W, Cin, Cout, in_dt.itemsize)
    assert H % TH == 0 and TH % 2 == 0
    n_row_tiles = H // TH
    THp = TH // 2

    cost = pl.CostEstimate(
        flops=2 * N * H * W * Cin * Cout,
        transcendentals=0,
        bytes_accessed=(x_flat.size * in_dt.itemsize + w_mat.size * in_dt.itemsize
                        + 2 * Cout * 4 + N * Cout * Hp * Wp * 4),
    )

    out_flat = pl.pallas_call(
        _make_convblock_kernel(W),
        out_shape=jax.ShapeDtypeStruct((N, Cout, Hp * Wp), jnp.float32),
        grid_spec=pltpu.PrefetchScalarGridSpec(
            num_scalar_prefetch=0,
            grid=(N, n_row_tiles),
            in_specs=[
                pl.BlockSpec((1, Cin, TH * W), lambda n, r: (n, 0, r)),
                pl.BlockSpec((Cout, Cin), lambda n, r: (0, 0)),
                pl.BlockSpec((Cout, 1), lambda n, r: (0, 0)),
                pl.BlockSpec((Cout, 1), lambda n, r: (0, 0)),
            ],
            out_specs=pl.BlockSpec((1, Cout, THp * Wp), lambda n, r: (n, 0, r)),
        ),
        compiler_params=pltpu.CompilerParams(
            dimension_semantics=("parallel", "parallel"),
            vmem_limit_bytes=64 * 1024 * 1024,
        ),
        cost_estimate=cost,
    )(x_flat, w_mat, scale, shift)

    return out_flat.reshape(N, Cout, Hp, Wp)


def _reference_forward(x_nchw, weight, gamma, beta, running_mean, running_var,
                       eps=1e-5):
    """Pure-JAX f32 reference (same op order as the PyTorch module, eval mode)."""
    N, Cin, H, W = x_nchw.shape
    Cout = weight.shape[0]
    w_mat = weight.reshape(Cout, Cin)
    y = jnp.einsum('nchw,oc->nohw', x_nchw, w_mat)                 # 1x1 conv
    y = jnp.maximum(y, 0.0)                                        # ReLU
    scale = gamma / jnp.sqrt(running_var + eps)
    shift = beta - running_mean * scale
    y = y * scale[None, :, None, None] + shift[None, :, None, None]
    y = y.reshape(N, Cout, H // 2, 2, W // 2, 2).max(axis=(3, 5))  # MaxPool 2x2
    return y                                                       # Dropout: identity (eval)


if __name__ == "__main__":
    # Small shapes consistent with the module: batch=2, in=4, out=8, 16x16 spatial.
    N, Cin, Cout, H, W = 2, 4, 8, 16, 16

    key = jax.random.PRNGKey(0)
    k_x, k_w, k_g, k_b, k_m, k_v = jax.random.split(key, 6)

    x = jax.random.normal(k_x, (N, Cin, H, W), dtype=jnp.float32)
    weight = jax.random.normal(k_w, (Cout, Cin, 1, 1), dtype=jnp.float32) * 0.5
    gamma = 1.0 + 0.1 * jax.random.normal(k_g, (Cout,), dtype=jnp.float32)
    # Make one channel's gamma negative so the negative-BN-scale (min-pool select)
    # path of the fused post-pool affine is exercised.
    gamma = gamma.at[0].set(-gamma[0])
    beta = 0.1 * jax.random.normal(k_b, (Cout,), dtype=jnp.float32)
    running_mean = 0.1 * jax.random.normal(k_m, (Cout,), dtype=jnp.float32)
    running_var = 1.0 + 0.1 * jax.random.uniform(k_v, (Cout,), dtype=jnp.float32)

    ref = _reference_forward(x, weight, gamma, beta, running_mean, running_var)

    # Exactness check: f32 input streams vs f32 reference (tight tolerance).
    out_f32 = conv_block_forward(x, weight, gamma, beta, running_mean,
                                 running_var, input_dtype=jnp.float32)
    out_f32 = jax.block_until_ready(out_f32)
    assert out_f32.shape == (N, Cout, H // 2, W // 2), out_f32.shape
    assert jnp.allclose(out_f32, ref, rtol=1e-4, atol=1e-4), "f32 mismatch vs reference"

    # Default path: bf16 x/weight DMA streams, f32 accumulate/epilogue.
    out = conv_block_forward(x, weight, gamma, beta, running_mean, running_var)
    out = jax.block_until_ready(out)
    assert out.shape == (N, Cout, H // 2, W // 2), out.shape
    assert jnp.allclose(out, ref, rtol=5e-2, atol=5e-2), "bf16 mismatch vs reference"

    print("KERNEL_OK")
</pallas_src>

<mosaic_0001>
module attributes {stable_mosaic.version = 11 : i64} {
  func.func @kernel(%arg0: i32, %arg1: i32, %arg2: memref<1x4x256xf32, #tpu.memory_space<vmem>>, %arg3: memref<8x4xf32, #tpu.memory_space<vmem>>, %arg4: memref<8x1xf32, #tpu.memory_space<vmem>>, %arg5: memref<8x1xf32, #tpu.memory_space<vmem>>, %arg6: memref<1x8x64xf32, #tpu.memory_space<vmem>>) attributes {dimension_semantics = [#tpu.dimension_semantics<parallel>, #tpu.dimension_semantics<parallel>], iteration_bounds = array<i64: 2, 1>, scalar_prefetch = 0 : i64, scratch_operands = 0 : i64, tpu.core_type = #tpu.core_type<tc>, window_params = [{transform_indices = @transform_0, window_bounds = array<i64: 1, 4, 256>}, {pipeline_mode = #tpu.pipeline_mode<synchronous>, transform_indices = @transform_1, window_bounds = array<i64: 8, 4>}, {pipeline_mode = #tpu.pipeline_mode<synchronous>, transform_indices = @transform_2, window_bounds = array<i64: 8, 1>}, {pipeline_mode = #tpu.pipeline_mode<synchronous>, transform_indices = @transform_3, window_bounds = array<i64: 8, 1>}, {transform_indices = @transform_4, window_bounds = array<i64: 1, 8, 64>}]} {
    %c0 = arith.constant 0 : index
    %c0_0 = arith.constant 0 : index
    %c0_1 = arith.constant 0 : index
    %0 = vector.load %arg2[%c0, %c0_0, %c0_1] : memref<1x4x256xf32, #tpu.memory_space<vmem>>, vector<1x4x256xf32>
    %1 = vector.shape_cast %0 : vector<1x4x256xf32> to vector<4x256xf32>
    %c0_2 = arith.constant 0 : index
    %c0_3 = arith.constant 0 : index
    %2 = vector.load %arg3[%c0_2, %c0_3] : memref<8x4xf32, #tpu.memory_space<vmem>>, vector<8x4xf32>
    %cst = arith.constant dense<0.000000e+00> : vector<8x256xf32>
    %3 = tpu.matmul %2, %1, %cst {dimension_numbers = #tpu.dot_dimension_numbers<[1], [0], [0], [1], [0, 0, 1, 1], [], []>} : vector<8x4xf32>, vector<4x256xf32>, vector<8x256xf32> -> vector<8x256xf32>
    %cst_4 = arith.constant 0.000000e+00 : f32
    %4 = vector.broadcast %cst_4 : f32 to vector<8x256xf32>
    %5 = arith.maximumf %3, %4 : vector<8x256xf32>
    %6 = vector.shape_cast %5 : vector<8x256xf32> to vector<8x8x32xf32>
    %7 = vector.extract_strided_slice %6 {offsets = [0, 0, 0], sizes = [8, 8, 16], strides = [1, 1, 1]} : vector<8x8x32xf32> to vector<8x8x16xf32>
    %8 = vector.extract_strided_slice %6 {offsets = [0, 0, 16], sizes = [8, 8, 16], strides = [1, 1, 1]} : vector<8x8x32xf32> to vector<8x8x16xf32>
    %9 = arith.maximumf %7, %8 : vector<8x8x16xf32>
    %10 = arith.minimumf %7, %8 : vector<8x8x16xf32>
    %11 = vector.shape_cast %9 : vector<8x8x16xf32> to vector<8x8x8x2xf32>
    %cst_5 = arith.constant dense<0xFF800000> : vector<8x8x8xf32>
    %12 = vector.multi_reduction <maximumf>, %11, %cst_5 [3] : vector<8x8x8x2xf32> to vector<8x8x8xf32>
    %13 = vector.shape_cast %12 : vector<8x8x8xf32> to vector<8x64xf32>
    %14 = vector.shape_cast %10 : vector<8x8x16xf32> to vector<8x8x8x2xf32>
    %cst_6 = arith.constant dense<0x7F800000> : vector<8x8x8xf32>
    %15 = vector.multi_reduction <minimumf>, %14, %cst_6 [3] : vector<8x8x8x2xf32> to vector<8x8x8xf32>
    %16 = vector.shape_cast %15 : vector<8x8x8xf32> to vector<8x64xf32>
    %c0_7 = arith.constant 0 : index
    %c0_8 = arith.constant 0 : index
    %17 = vector.load %arg4[%c0_7, %c0_8] : memref<8x1xf32, #tpu.memory_space<vmem>>, vector<8x1xf32>
    %c0_9 = arith.constant 0 : index
    %c0_10 = arith.constant 0 : index
    %18 = vector.load %arg5[%c0_9, %c0_10] : memref<8x1xf32, #tpu.memory_space<vmem>>, vector<8x1xf32>
    %cst_11 = arith.constant 0.000000e+00 : f32
    %19 = vector.broadcast %cst_11 : f32 to vector<8x1xf32>
    %20 = arith.cmpf oge, %17, %19 : vector<8x1xf32>
    %21 = vector.shape_cast %20 : vector<8x1xi1> to vector<8x1xi1>
    %22 = vector.broadcast %21 : vector<8x1xi1> to vector<8x64xi1>
    %23 = arith.select %22, %13, %16 : vector<8x64xi1>, vector<8x64xf32>
    %24 = vector.broadcast %17 : vector<8x1xf32> to vector<8x64xf32>
    %25 = arith.mulf %23, %24 : vector<8x64xf32>
    %26 = vector.broadcast %18 : vector<8x1xf32> to vector<8x64xf32>
    %27 = arith.addf %25, %26 : vector<8x64xf32>
    %c0_12 = arith.constant 0 : index
    %c0_13 = arith.constant 0 : index
    %c0_14 = arith.constant 0 : index
    %28 = vector.load %arg6[%c0_12, %c0_13, %c0_14] : memref<1x8x64xf32, #tpu.memory_space<vmem>>, vector<1x8x64xf32>
    %29 = vector.shape_cast %28 : vector<1x8x64xf32> to vector<8x64xf32>
    %30 = vector.shape_cast %27 : vector<8x64xf32> to vector<1x8x64xf32>
    tpu.vector_store %arg6[%c0_12, %c0_13, %c0_14], %30 {strides = array<i32>} : memref<1x8x64xf32, #tpu.memory_space<vmem>>, vector<1x8x64xf32>,
    return
  }
  func.func @transform_0(%arg0: i32, %arg1: i32) -> (i32, i32, i32) {
    %c0_i32 = arith.constant 0 : i32
    %c0_i32_0 = arith.constant 0 : i32
    return %arg0, %c0_i32, %arg1 : i32, i32, i32
  }
  func.func @transform_1(%arg0: i32, %arg1: i32) -> (i32, i32) {
    %c0_i32 = arith.constant 0 : i32
    %c0_i32_0 = arith.constant 0 : i32
    %c0_i32_1 = arith.constant 0 : i32
    return %c0_i32, %c0_i32_0 : i32, i32
  }
  func.func @transform_2(%arg0: i32, %arg1: i32) -> (i32, i32) {
    %c0_i32 = arith.constant 0 : i32
    %c0_i32_0 = arith.constant 0 : i32
    %c0_i32_1 = arith.constant 0 : i32
    return %c0_i32, %c0_i32_0 : i32, i32
  }
  func.func @transform_3(%arg0: i32, %arg1: i32) -> (i32, i32) {
    %c0_i32 = arith.constant 0 : i32
    %c0_i32_0 = arith.constant 0 : i32
    %c0_i32_1 = arith.constant 0 : i32
    return %c0_i32, %c0_i32_0 : i32, i32
  }
  func.func @transform_4(%arg0: i32, %arg1: i32) -> (i32, i32, i32) {
    %c0_i32 = arith.constant 0 : i32
    %c0_i32_0 = arith.constant 0 : i32
    return %arg0, %c0_i32, %arg1 : i32, i32, i32
  }
}

</mosaic_0001>

<bundles_post_ra>
// kernel: tpu_custom_call.1
= control target key start
LH: loop header
LB: loop body
LE: loop exit
PB: predicated region body
PF: predicated region fallthrough
CT: control target
= control target key end

     0   :  { %9 = vsyncpa [#allocation3], 0  ;;  %s7527_s0 = inlined_call_operand.hbm [shape: f32[2,4,256], index: 0, kind: input, shape index: {}]   ;;  %s7528_s1 = inlined_call_operand.hbm [shape: f32[8,4], index: 1, kind: input, shape index: {}]   ;;  %s7529_s2 = inlined_call_operand.hbm [shape: f32[8,1], index: 2, kind: input, shape index: {}]   ;;  %s7530_s3 = inlined_call_operand.hbm [shape: f32[8,1], index: 3, kind: input, shape index: {}]   ;;  %s7531_s4 = inlined_call_operand.hbm [shape: f32[2,8,64], index: 4, kind: output, shape index: {}]  }
   0x1   :  { %11 = vsyncpa [#allocation3 + $0x1], 0 }
   0x2   :  { %12 = vsyncpa [#allocation6], 0 }
   0x3   :  { %13 = vsyncpa [#allocation9], 0 }
   0x4   :  { %14 = vsyncpa [#allocation4], 0 }
   0x5   :  { %16 = vsyncpa [#allocation4 + $0x1], 0  ;;  %s5147_s15 = smov 0   ;;  %s5149_s16 = smov 0  }
   0x6   :  { %s5151_s17 = smov 0   ;;  %s5153_s18 = smov 0  }
   0x7   :  { %s5155_s19 = smov 0   ;;  %s5157_s20 = smov 0  }
   0x8 LB: > { %s4749_s21 = sadd.s32 4294967295, %s5094_s20   ;;  %s4750_s22 = sadd.s32 4294967294, %s5094_s20   ;;  %s5094_s20 = sphi %s5157_s20, %s22_s20   ;;  %s5090_s19 = sphi %s5155_s19, %s7865_s19   ;;  %s5086_s18 = sphi %s5153_s18, %s7864_s18   ;;  %s5082_s17 = sphi %s5151_s17, %s7863_s17   ;;  %s5078_s16 = sphi %s5149_s16, %s7862_s16   ;;  %s5074_s15 = sphi %s5147_s15, %s7861_s15  }
   0x9   : > { %p56_p0 = scmp.ne.s32.totalorder %s5078_s16, %s5074_s15  ;;  %p5181_p1 = scmp.eq.s32.totalorder %s4749_s21, 0 }
   0xa   : > { %p5185_p2 = scmp.eq.s32.totalorder %s4749_s21, 1  ;;  %p151_p3 = scmp.eq.s32.totalorder %s4750_s22, 1 }
   0xb   : > { %s7644_s23 = scalar_select %p5181_p1, 1, 0 }
   0xc   : > { %s7645_s24 = scalar_select %p5185_p2, 1, 0 }
   0xd   : > { %p5191_p4 = por %p5181_p1, %p56_p0  ;;  %p4751_p5 = scmp.ge.s32.totalorder %s5094_s20, 1 }
   0xe   : > { %p5196_p6 = por %p151_p3, %p56_p0  ;;  %p158_p7 = scmp.lt.s32.totalorder %s5094_s20, 3 }
   0xf   : > { %s7646_s25 = scalar_select %p5191_p4, 1, 0 }
  0x10   : > { %s7647_s26 = scalar_select %p5196_p6, 1, 0 }
  0x11   : > { %p5201_p8 = pnand %p4751_p5, %p158_p7  ;;  %s5096_s28 = smov [#allocation5]  }
  0x12   : > { %s171_s29 = sshll.u32 %s5096_s28, 4  ;;  %s5097_s30 = smov [#allocation7]   ;;  %s172_s29 = int_to_ptr.vmem [resolvable:$true] %s171_s29 }
  0x13   : > { %s7648_s27 = scalar_select %p5201_p8, 1, 0 }
  0x14   : > { %p4789_p10 = pneg %p5201_p8  ;;  %s182_s5 = sshll.u32 %s5097_s30, 4  ;;  %s5214_s5 = int_to_ptr.vmem [resolvable:$true] %s182_s5 }
  0x15   : > { %s5098_s7 = smov [#allocation8]   ;;  %s4890_s11 = scalar_lea.hbm %s7528_s1, 128 }
  0x16   : > { %p5210_p11 = pnand %p4789_p10, %p5181_p1  ;;  %s193_s8 = sshll.u32 %s5098_s7, 4  ;;  %s5216_s8 = int_to_ptr.vmem [resolvable:$true] %s193_s8 }
  0x17   : > { %p4891_p12 = scmp.ne.s32.totalorder %s7528_s1, %s4890_s11  ;;  %p4897_p5 = scmp.lt.u32.totalorder %s4890_s11, %s7528_s1 }
  0x18   : > { %p5226_p13 = pneg %p5210_p11 }
  0x1a   : > { %p4893_p0 = pnand %p5226_p13, %p4891_p12 }
  0x1c   : > { %p4894_p3 = pneg %p4893_p0 }
  0x1e   : > { %p4899_p7 = pnand %p4897_p5, %p4894_p3 }
  0x20   : > { %4902 = shalt.err (!%p4899_p7)
}
  0x21   : > { %s4903_s28 = scalar_lea.vmem %s172_s29, 128  ;;  %p4911_p1 = scmp.lt.s32.totalorder %s172_s29, %s172_s29 }
  0x22   : > { %p4904_p10 = scmp.ne.s32.totalorder %s172_s29, %s4903_s28  ;;  %p4912_p4 = scmp.lt.s32.totalorder %s4903_s28, %s4903_s28 }
  0x24   : > { %p4906_p9 = pnand %p4904_p10, %p5226_p13  ;;  %p4913_p8 = por %p4912_p4, %p4911_p1 }
  0x26   : > { %p4907_p6 = pneg %p4906_p9 }
  0x28   : > { %p4914_p2 = pnand %p4913_p8, %p4907_p6 }
  0x2a   : > { %4917 = shalt.err (!%p4914_p2)
}
  0x2b   : > { %4792 = dma.hbm_to_vmem [thread:$0]  (!%p5210_p11), %s7528_s1, 128, %s172_s29, [#allocation6]  }
  0x2c   : > { %s4918_s11 = scalar_lea.hbm %s7529_s2, 128 }
  0x2d   : > { %p4919_p9 = scmp.ne.s32.totalorder %s7529_s2, %s4918_s11  ;;  %p4925_p2 = scmp.lt.u32.totalorder %s4918_s11, %s7529_s2 }
  0x2f   : > { %p4921_p12 = pnand %p4919_p9, %p5226_p13 }
  0x31   : > { %p4922_p1 = pneg %p4921_p12 }
  0x33   : > { %p4927_p4 = pnand %p4925_p2, %p4922_p1 }
  0x35   : > { %4930 = shalt.err (!%p4927_p4)
}
  0x36   : > { %s4931_s29 = scalar_lea.vmem %s5214_s5, 128  ;;  %p4939_p3 = scmp.lt.s32.totalorder %s5214_s5, %s5214_s5 }
  0x37   : > { %p4932_p6 = scmp.ne.s32.totalorder %s5214_s5, %s4931_s29  ;;  %p4940_p5 = scmp.lt.s32.totalorder %s4931_s29, %s4931_s29 }
  0x39   : > { %p4934_p8 = pnand %p4932_p6, %p5226_p13  ;;  %p4941_p7 = por %p4940_p5, %p4939_p3 }
  0x3b   : > { %p4935_p0 = pneg %p4934_p8 }
  0x3d   : > { %p4942_p10 = pnand %p4941_p7, %p4935_p0 }
  0x3f   : > { %4945 = shalt.err (!%p4942_p10)
}
  0x40   : > { %4795 = dma.hbm_to_vmem [thread:$0]  (!%p5210_p11), %s7529_s2, 128, %s5214_s5, [#allocation6]  }
  0x41   : > { %s4946_s10 = scalar_lea.hbm %s7530_s3, 128 }
  0x42   : > { %p4947_p9 = scmp.ne.s32.totalorder %s7530_s3, %s4946_s10  ;;  %p4953_p2 = scmp.lt.u32.totalorder %s4946_s10, %s7530_s3 }
  0x44   : > { %p4949_p12 = pnand %p4947_p9, %p5226_p13 }
  0x46   : > { %p4950_p1 = pneg %p4949_p12 }
  0x48   : > { %p4955_p4 = pnand %p4953_p2, %p4950_p1 }
  0x4a   : > { %4958 = shalt.err (!%p4955_p4)
}
  0x4b   : > { %s4959_s5 = scalar_lea.vmem %s5216_s8, 128  ;;  %p4967_p3 = scmp.lt.s32.totalorder %s5216_s8, %s5216_s8 }
  0x4c   : > { %p4960_p6 = scmp.ne.s32.totalorder %s5216_s8, %s4959_s5  ;;  %p4968_p5 = scmp.lt.s32.totalorder %s4959_s5, %s4959_s5 }
  0x4e   : > { %p4962_p8 = pnand %p4960_p6, %p5226_p13  ;;  %p4969_p7 = por %p4968_p5, %p4967_p3 }
  0x50   : > { %p4963_p0 = pneg %p4962_p8 }
  0x52   : > { %p4970_p10 = pnand %p4969_p7, %p4963_p0 }
  0x54   : > { %4973 = shalt.err (!%p4970_p10)
}
  0x55   : > { %4798 = dma.hbm_to_vmem [thread:$0]  (!%p5210_p11), %s7530_s3, 128, %s5216_s8, [#allocation9]  }
  0x56   : > { %s43_s14 = sadd.s32 1, %s5082_s17  ;;  %s34_s28 = sadd.s32 1, %s5090_s19 }
  0x57   : > { %p50_p13 = scmp.ne.s32.totalorder %s5082_s17, %s5078_s16  ;;  %p36_p9 = scmp.ge.s32.totalorder %s34_s28, 2 }
  0x58   : > { %p51_p12 = scmp.eq.s32.totalorder %s5094_s20, 0  ;;  %p7651_p1 = scmp.ne.s32.totalorder %s7645_s24, 0 }
  0x59   : > { %p4810_p4 = scmp.lt.s32.totalorder %s5094_s20, 2  ;;  %s7867_s28 = smov (%p36_p9, %s34_s28), 0 }
  0x5a   : > { %p5295_p2 = por %p7651_p1, %p50_p13  ;;  %p52_p6 = por %p51_p12, %p50_p13 }
  0x5b   : > { %s204_s30 = sand.u32 1, %s5082_s17   ;;  %s38_s7 = ssub.s32 %s5090_s19, %s7867_s28 }
  0x5c   : > { %p41_p8 = scmp.eq.s32.totalorder %s38_s7, 0  ;;  %s4756_s8 = sshll.u32 %s204_s30, 3 }
  0x5d   : > { %s4772_s9 = sshll.u32 %s5090_s19, 7  ;;  %s208_s13 = scalar_lea.vmem [#allocation2], %s4756_s8 }
  0x5e   : > { %s5307_s10 = scalar_select %p41_p8, %s5082_s17, %s43_s14  }
  0x5f   : > { %s5312_s24 = scalar_lea.hbm %s7527_s0, %s4772_s9  ;;  %s218_s21 = sshll.u32 %s208_s13, 4  ;;  %s5314_s21 = int_to_ptr.vmem [resolvable:$true] %s218_s21 }
  0x60   : > { %p5318_p11 = pnand %p4810_p4, %p52_p6  ;;  %s205_s22 = scalar_lea.sflag [#allocation3], %s204_s30 }
  0x61   : > { %s4974_s29 = scalar_lea.hbm %s5312_s24, 128  ;;  %s4979_s8 = scalar_lea.hbm %s7527_s0, 256 }
  0x62   : > { %p4975_p0 = scmp.ne.s32.totalorder %s5312_s24, %s4974_s29  ;;  %p4976_p3 = pneg %p5318_p11 }
  0x63   : > { %p4980_p10 = scmp.lt.u32.totalorder %s5312_s24, %s7527_s0  ;;  %p4981_p13 = scmp.lt.u32.totalorder %s4979_s8, %s4974_s29 }
  0x64   : > { %p4977_p5 = pnand %p4976_p3, %p4975_p0  ;;  %p4983_p12 = scmp.lt.u32.totalorder %s4974_s29, %s5312_s24 }
  0x65   : > { %p4982_p9 = por %p4981_p13, %p4980_p10 }
  0x66   : > { %p4978_p7 = pneg %p4977_p5 }
  0x67   : > { %p4984_p1 = por %p4983_p12, %p4982_p9 }
  0x69   : > { %p4985_p4 = pnand %p4984_p1, %p4978_p7 }
  0x6b   : > { %4988 = shalt.err (!%p4985_p4)
}
  0x6c   : > { %s4989_s30 = scalar_lea.vmem %s5314_s21, 128  ;;  %s5099_s12 = smov [#allocation2]  }
  0x6d   : > { %p4990_p6 = scmp.ne.s32.totalorder %s5314_s21, %s4989_s30  ;;  %s4994_s13 = sshll.u32 %s5099_s12, 4  ;;  %s4995_s13 = int_to_ptr.vmem [resolvable:$false] %s4994_s13 }
  0x6e   : > { %s4996_s14 = scalar_lea.vmem %s4995_s13, 256  ;;  %p4997_p5 = scmp.lt.s32.totalorder %s5314_s21, %s4995_s13 }
  0x6f   : > { %p4992_p8 = pnand %p4990_p6, %p4976_p3  ;;  %p4998_p10 = scmp.lt.s32.totalorder %s4996_s14, %s4989_s30 }
  0x71   : > { %p4993_p0 = pneg %p4992_p8  ;;  %p4999_p13 = por %p4998_p10, %p4997_p5 }
  0x73   : > { %p5000_p9 = pnand %p4999_p13, %p4993_p0 }
  0x75   : > { %5003 = shalt.err (!%p5000_p9)
}
  0x76   : > { %4802 = dma.hbm_to_vmem [thread:$0]  (!%p5318_p11), %s5312_s24, 128, %s5314_s21, %s205_s22  }
  0x77   : > { %p7654_p7 = scmp.ne.s32.totalorder %s7648_s27, 0 }
  0x79   : > { %227 = sbr.rel (%p7654_p7) target bundleno = 1424 (0x590), region = 36 }
  0x80   : > { %s5350_s29 = sand.u32 1, %s5078_s16   ;;  %p7655_p3 = scmp.ne.s32.totalorder %s7646_s25, 0 }
  0x81   : > { %s4760_s7 = sshll.u32 %s5350_s29, 3  ;;  %s230_s8 = scalar_lea.sflag [#allocation3], %s5350_s29 }
  0x82   : > { %s233_s9 = scalar_lea.vmem [#allocation2], %s4760_s7 }
  0x83   : > { %5057 = dma.done.wait (%p7655_p3), %s230_s8, 128  }
  0x84   : > { %5059 = vsyncadd (%p7655_p3), %s230_s8, 4294967168  ;;  %p7656_p11 = scmp.ne.s32.totalorder %s7644_s23, 0 }
  0x86   : > { %5061 = dma.done.wait (%p7656_p11), [#allocation6], 256  }
  0x87   : > { %5063 = vsyncadd (%p7656_p11), [#allocation6], 4294967040 }
  0x88   : > { %5065 = dma.done.wait (%p7656_p11), [#allocation9], 128  }
  0x89   : > { %5067 = vsyncadd (%p7656_p11), [#allocation9], 4294967168  ;;  %v5100_v0 = vmov 0.0   ;;  %v271_v1 = vld [vmem:[%s233_s9] sm:$0xff]  ;;  %vm279_vm0 = vcmask 1043456   ;;  %v272_v3 = vld [vmem:[#allocation5] sm:$0xff]  ;;  %v7536_v10 = vlaneseq }
  0x8a   : > { %348 = vmatprep.mubr.f32.mxu0 %v5100_v0  ;;  %v274_v2 = vcombine.high %v271_v1, %v271_v1  ;;  %vm275_vm1 = vcmask 31744   ;;  %s5101_s25 = smov 32   ;;  %s5102_s27 = smov 96   ;;  %v5104_v8 = vmov 1983009808   ;;  %vm1825_vm2 = vcmask 15360  }
  0x8b   : > { %s5103_s23 = smov 64   ;;  %v380_v9 = vunpack.c.l.s4 %v5104_v8  ;;  %v5371_v14 = vshrl.u32 %v7536_v10, 7  ;;  %v5105_v15 = vmov 1934713408   ;;  %s5106_s24 = smov 112   ;;  %vm2340_vm3 = vcmask 1041409  }
  0x8c   : > { %4765 = vmatprep.subr.msk.mxu0 %vm279_vm0, %v274_v2  ;;  %v444_v16 = vunpack.c.l.s4 %v5105_v15  ;;  %s5107_s21 = smov 126   ;;  %s5108_s5 = smov 124   ;;  %vm2342_vm4 = vcmask 1042434   ;;  %vm2344_vm5 = vcmask 1043459   ;;  %vm2346_vm6 = vcmask 1044484  }
  0x8d   : > { %4766 = vmatpush1.msk.msra.mxu0 %vm279_vm0, %v271_v1  ;;  %v381_v13 = vunpack.c.0.s8 %v380_v9  ;;  %7657 = vst [vmem:[#allocation15_spill] sm:$0xff] %v5371_v14  ;;  %s5109_s22 = smov 122   ;;  %s5110_s11 = smov 120   ;;  %vm2348_vm7 = vcmask 1045509   ;;  %vm2350_vm8 = vcmask 1046534   ;;  %vm2352_vm9 = vcmask 1047559  }
  0x8e   : > { %4767 = vmatmul.mubr.msk.f32.vlgmr.msra.gmra.mrb[0].mxu0 %vm275_vm1, %v272_v3  ;;  %v445_v22 = vunpack.c.0.s8 %v444_v16  ;;  %s5111_s30 = smov 118   ;;  %s5112_s12 = smov 116   ;;  %vm2575_vm11 = vcmask 64512   ;;  %vm2577_vm12 = vcmask 130048   ;;  %vm2579_vm13 = vcmask 195584  }
  0x8f   : > { %v5374_v19 = vsub.s32 %v381_v13, %v5371_v14  ;;  %s5113_s13 = smov 114   ;;  %s5115_s14 = smov 16   ;;  %vm2581_vm14 = vcmask 261120   ;;  %vm2583_vm15 = vcmask 326656   ;;  %vm2585_vm0 = vcmask 392192  }
  0x90   : > { %v5379_v31 = vsub.s32 %v445_v22, %v5371_v14  ;;  %s5116_s8 = smov 8   ;;  %s5117_s9 = smov 40   ;;  %vm2587_vm1 = vcmask 457728  }
 0x161   : > { %v350_v4 = vpop.f32.mrb[0].mxu0 }
 0x162   : > { %v355_v5 = vmax.f32 %v350_v4, 0.0  ;;  %v352_v6 = vpop.f32.mrb[1].mxu0 }
 0x163   : > { %v356_v7 = vmax.f32 %v352_v6, 0.0 }
 0x164   : > { %364 = vrot.lane.b32.xlu1 %v355_v5, %s5101_s25  ;;  %358 = vrot.lane.b32.xlu0 %v355_v5, %s5102_s27 }
 0x168   : > { %361 = vrot.lane.b32.xlu0 %v355_v5, %s5103_s23  ;;  %368 = vrot.lane.b32.xlu1 %v356_v7, %s5102_s27  ;;  %s5118_s27 = smov 24  }
 0x16c   : > { %371 = vrot.lane.b32.xlu0 %v356_v7, %s5103_s23  ;;  %374 = vrot.lane.b32.xlu1 %v356_v7, %s5101_s25  ;;  %s5119_s23 = smov 56  }
 0x1d6   : > { %v365_v11 = vpop.permute.xlu1 %364  ;;  %v359_v12 = vpop.permute.xlu0 %358 }
 0x1d7   : > { %v393_v20 = vcombine.low %v359_v12, %v365_v11  ;;  %v394_v36 = vcombine.high %v359_v12, %v365_v11 }
 0x1d9   : > { %v401_v26 = vrot.slane %v393_v20, %v5374_v19  ;;  %v408_v45 = vrot.slane %v394_v36, %v5374_v19 }
 0x1da   : > { %v362_v17 = vpop.permute.xlu0 %361  ;;  %v369_v18 = vpop.permute.xlu1 %368 }
 0x1db   : > { %v377_v21 = vcombine.low %v355_v5, %v362_v17  ;;  %v378_v32 = vcombine.high %v355_v5, %v362_v17 }
 0x1dd   : > { %v385_v23 = vrot.slane %v377_v21, %v5374_v19  ;;  %v392_v41 = vrot.slane %v378_v32, %v5374_v19 }
 0x1de   : > { %v372_v24 = vpop.permute.xlu0 %371  ;;  %v375_v25 = vpop.permute.xlu1 %374 }
 0x1df   : > { %v409_v27 = vcombine.low %v356_v7, %v372_v24  ;;  %v410_v28 = vcombine.high %v356_v7, %v372_v24  ;;  %v425_v29 = vcombine.low %v369_v18, %v375_v25  ;;  %v426_v30 = vcombine.high %v369_v18, %v375_v25 }
 0x1e0   : > { %v441_v33 = vcombine.low %v385_v23, %v401_v26  ;;  %v442_v42 = vcombine.high %v385_v23, %v401_v26  ;;  %v457_v50 = vcombine.low %v392_v41, %v408_v45  ;;  %v458_v56 = vcombine.high %v392_v41, %v408_v45 }
 0x1e1   : > { %v417_v34 = vrot.slane %v409_v27, %v5374_v19  ;;  %v433_v35 = vrot.slane %v425_v29, %v5374_v19  ;;  %v424_v37 = vrot.slane %v410_v28, %v5374_v19  ;;  %v440_v38 = vrot.slane %v426_v30, %v5374_v19 }
 0x1e2   : > { %v449_v43 = vrot.slane %v441_v33, %v5379_v31  ;;  %v456_v51 = vrot.slane %v442_v42, %v5379_v31  ;;  %v465_v57 = vrot.slane %v457_v50, %v5379_v31  ;;  %v472_v61 = vrot.slane %v458_v56, %v5379_v31 }
 0x1e3   : > { %v473_v39 = vcombine.low %v417_v34, %v433_v35  ;;  %v474_v40 = vcombine.high %v417_v34, %v433_v35  ;;  %v489_v46 = vcombine.low %v424_v37, %v440_v38  ;;  %v490_v52 = vcombine.high %v424_v37, %v440_v38 }
 0x1e5   : > { %v481_v44 = vrot.slane %v473_v39, %v5379_v31  ;;  %v488_v49 = vrot.slane %v474_v40, %v5379_v31  ;;  %v497_v55 = vrot.slane %v489_v46, %v5379_v31  ;;  %v504_v60 = vrot.slane %v490_v52, %v5379_v31 }
 0x1e7   : > { %v5389_v47 = vcombine.high %v449_v43, %v481_v44  ;;  %v5391_v48 = vcombine.low %v449_v43, %v481_v44  ;;  %v5397_v53 = vcombine.high %v456_v51, %v488_v49  ;;  %v5399_v54 = vcombine.low %v456_v51, %v488_v49 }
 0x1e8   : > { %v5405_v58 = vcombine.high %v465_v57, %v497_v55  ;;  %v5407_v59 = vcombine.low %v465_v57, %v497_v55  ;;  %v5413_v62 = vcombine.high %v472_v61, %v504_v60  ;;  %v5415_v63 = vcombine.low %v472_v61, %v504_v60 }
 0x1e9   : > { %523 = vrot.lane.b32.xlu1 %v5389_v47, %s5106_s24  ;;  %521 = vrot.lane.b32.xlu0 %v5391_v48, %s5106_s24 }
 0x1ed   : > { %527 = vrot.lane.b32.xlu1 %v5397_v53, %s5106_s24  ;;  %525 = vrot.lane.b32.xlu0 %v5399_v54, %s5106_s24 }
 0x1f1   : > { %531 = vrot.lane.b32.xlu1 %v5405_v58, %s5106_s24  ;;  %529 = vrot.lane.b32.xlu0 %v5407_v59, %s5106_s24 }
 0x1f5   : > { %535 = vrot.lane.b32.xlu1 %v5413_v62, %s5106_s24  ;;  %533 = vrot.lane.b32.xlu0 %v5415_v63, %s5106_s24  ;;  %s5120_s24 = smov 48  }
 0x25b   : > { %v5419_v0 = vpop.permute.xlu1 %523  ;;  %v5421_v1 = vpop.permute.xlu0 %521 }
 0x25c   : > { %v5425_v2 = vmax.f32 %v5389_v47, %v5419_v0  ;;  %v5429_v3 = vmax.f32 %v5391_v48, %v5421_v1  ;;  %v5581_v18 = vmin.f32 %v5389_v47, %v5419_v0  ;;  %v5585_v20 = vmin.f32 %v5391_v48, %v5421_v1 }
 0x25e   : > { %571 = vrot.lane.b32.xlu1 %v5425_v2, %s5107_s21  ;;  %569 = vrot.lane.b32.xlu0 %v5429_v3, %s5107_s21  ;;  %7661 = vst [vmem:[#allocation19_spill] sm:$0xff] %v5581_v18  ;;  %7662 = vst [vmem:[#allocation20_spill] sm:$0xff] %v5585_v20 }
 0x25f   : > { %v5435_v4 = vpop.permute.xlu1 %527  ;;  %v5437_v5 = vpop.permute.xlu0 %525 }
 0x260   : > { %v5441_v6 = vmax.f32 %v5397_v53, %v5435_v4  ;;  %v5445_v7 = vmax.f32 %v5399_v54, %v5437_v5  ;;  %v5593_v21 = vmin.f32 %v5397_v53, %v5435_v4  ;;  %v5597_v22 = vmin.f32 %v5399_v54, %v5437_v5 }
 0x262   : > { %575 = vrot.lane.b32.xlu1 %v5441_v6, %s5107_s21  ;;  %573 = vrot.lane.b32.xlu0 %v5445_v7, %s5107_s21  ;;  %7663 = vst [vmem:[#allocation21_spill] sm:$0xff] %v5593_v21  ;;  %7664 = vst [vmem:[#allocation22_spill] sm:$0xff] %v5597_v22 }
 0x263   : > { %v5451_v8 = vpop.permute.xlu1 %531  ;;  %v5453_v9 = vpop.permute.xlu0 %529 }
 0x264   : > { %v5457_v11 = vmax.f32 %v5405_v58, %v5451_v8  ;;  %v5461_v12 = vmax.f32 %v5407_v59, %v5453_v9  ;;  %v5609_v25 = vmin.f32 %v5405_v58, %v5451_v8  ;;  %v5613_v26 = vmin.f32 %v5407_v59, %v5453_v9 }
 0x266   : > { %7658 = vst [vmem:[#allocation16_spill] sm:$0xff] %v5457_v11  ;;  %579 = vrot.lane.b32.xlu1 %v5457_v11, %s5107_s21  ;;  %577 = vrot.lane.b32.xlu0 %v5461_v12, %s5107_s21  ;;  %7665 = vst [vmem:[#allocation23_spill] sm:$0xff] %v5609_v25 }
 0x267   : > { %v5467_v13 = vpop.permute.xlu1 %535  ;;  %v5469_v15 = vpop.permute.xlu0 %533  ;;  %7666 = vst [vmem:[#allocation24_spill] sm:$0xff] %v5613_v26 }
 0x268   : > { %v5473_v16 = vmax.f32 %v5413_v62, %v5467_v13  ;;  %v5477_v17 = vmax.f32 %v5415_v63, %v5469_v15  ;;  %v5625_v29 = vmin.f32 %v5413_v62, %v5467_v13  ;;  %v5629_v30 = vmin.f32 %v5415_v63, %v5469_v15 }
 0x26a   : > { %7659 = vst [vmem:[#allocation17_spill] sm:$0xff] %v5473_v16  ;;  %7660 = vst [vmem:[#allocation18_spill] sm:$0xff] %v5477_v17  ;;  %583 = vrot.lane.b32.xlu1 %v5473_v16, %s5107_s21  ;;  %581 = vrot.lane.b32.xlu0 %v5477_v17, %s5107_s21 }
 0x26b   : > { %7667 = vst [vmem:[#allocation25_spill] sm:$0xff] %v5625_v29  ;;  %7668 = vst [vmem:[#allocation26_spill] sm:$0xff] %v5629_v30 }
 0x26e   : > { %595 = vrot.lane.b32.xlu1 %v5425_v2, %s5108_s5  ;;  %593 = vrot.lane.b32.xlu0 %v5429_v3, %s5108_s5 }
 0x272   : > { %599 = vrot.lane.b32.xlu1 %v5441_v6, %s5108_s5  ;;  %597 = vrot.lane.b32.xlu0 %v5445_v7, %s5108_s5 }
 0x276   : > { %603 = vrot.lane.b32.xlu1 %v5457_v11, %s5108_s5  ;;  %601 = vrot.lane.b32.xlu0 %v5461_v12, %s5108_s5 }
 0x27a   : > { %607 = vrot.lane.b32.xlu1 %v5473_v16, %s5108_s5  ;;  %605 = vrot.lane.b32.xlu0 %v5477_v17, %s5108_s5 }
 0x27e   : > { %619 = vrot.lane.b32.xlu1 %v5425_v2, %s5109_s22  ;;  %617 = vrot.lane.b32.xlu0 %v5429_v3, %s5109_s22 }
 0x282   : > { %623 = vrot.lane.b32.xlu1 %v5441_v6, %s5109_s22  ;;  %621 = vrot.lane.b32.xlu0 %v5445_v7, %s5109_s22 }
 0x286   : > { %627 = vrot.lane.b32.xlu1 %v5457_v11, %s5109_s22  ;;  %625 = vrot.lane.b32.xlu0 %v5461_v12, %s5109_s22 }
 0x28a   : > { %631 = vrot.lane.b32.xlu1 %v5473_v16, %s5109_s22  ;;  %629 = vrot.lane.b32.xlu0 %v5477_v17, %s5109_s22 }
 0x28e   : > { %643 = vrot.lane.b32.xlu1 %v5425_v2, %s5110_s11  ;;  %641 = vrot.lane.b32.xlu0 %v5429_v3, %s5110_s11 }
 0x292   : > { %647 = vrot.lane.b32.xlu1 %v5441_v6, %s5110_s11  ;;  %645 = vrot.lane.b32.xlu0 %v5445_v7, %s5110_s11 }
 0x296   : > { %651 = vrot.lane.b32.xlu1 %v5457_v11, %s5110_s11  ;;  %649 = vrot.lane.b32.xlu0 %v5461_v12, %s5110_s11 }
 0x29a   : > { %655 = vrot.lane.b32.xlu1 %v5473_v16, %s5110_s11  ;;  %653 = vrot.lane.b32.xlu0 %v5477_v17, %s5110_s11 }
 0x29e   : > { %667 = vrot.lane.b32.xlu1 %v5425_v2, %s5111_s30  ;;  %665 = vrot.lane.b32.xlu0 %v5429_v3, %s5111_s30 }
 0x2a2   : > { %671 = vrot.lane.b32.xlu1 %v5441_v6, %s5111_s30  ;;  %669 = vrot.lane.b32.xlu0 %v5445_v7, %s5111_s30 }
 0x2a6   : > { %675 = vrot.lane.b32.xlu1 %v5457_v11, %s5111_s30  ;;  %673 = vrot.lane.b32.xlu0 %v5461_v12, %s5111_s30 }
 0x2aa   : > { %679 = vrot.lane.b32.xlu1 %v5473_v16, %s5111_s30  ;;  %677 = vrot.lane.b32.xlu0 %v5477_v17, %s5111_s30 }
 0x2ae   : > { %691 = vrot.lane.b32.xlu1 %v5425_v2, %s5112_s12  ;;  %689 = vrot.lane.b32.xlu0 %v5429_v3, %s5112_s12 }
 0x2b2   : > { %695 = vrot.lane.b32.xlu1 %v5441_v6, %s5112_s12  ;;  %693 = vrot.lane.b32.xlu0 %v5445_v7, %s5112_s12 }
 0x2b6   : > { %699 = vrot.lane.b32.xlu1 %v5457_v11, %s5112_s12  ;;  %697 = vrot.lane.b32.xlu0 %v5461_v12, %s5112_s12 }
 0x2ba   : > { %703 = vrot.lane.b32.xlu1 %v5473_v16, %s5112_s12  ;;  %701 = vrot.lane.b32.xlu0 %v5477_v17, %s5112_s12 }
 0x2be   : > { %715 = vrot.lane.b32.xlu1 %v5425_v2, %s5113_s13  ;;  %713 = vrot.lane.b32.xlu0 %v5429_v3, %s5113_s13 }
 0x2c2   : > { %719 = vrot.lane.b32.xlu1 %v5441_v6, %s5113_s13  ;;  %717 = vrot.lane.b32.xlu0 %v5445_v7, %s5113_s13 }
 0x2c6   : > { %723 = vrot.lane.b32.xlu1 %v5457_v11, %s5113_s13  ;;  %721 = vrot.lane.b32.xlu0 %v5461_v12, %s5113_s13 }
 0x2ca   : > { %727 = vrot.lane.b32.xlu1 %v5473_v16, %s5113_s13  ;;  %725 = vrot.lane.b32.xlu0 %v5477_v17, %s5113_s13 }
 0x2ce   : > { %2597 = vrot.lane.b32.xlu1 %v5585_v20, %s5107_s21  ;;  %2599 = vrot.lane.b32.xlu0 %v5581_v18, %s5107_s21 }
 0x2d0   : > { %v5599_v23 = vpop.permute.xlu1 %571  ;;  %v5601_v24 = vpop.permute.xlu0 %569 }
 0x2d2   : > { %2601 = vrot.lane.b32.xlu1 %v5597_v22, %s5107_s21  ;;  %2603 = vrot.lane.b32.xlu0 %v5593_v21, %s5107_s21 }
 0x2d4   : > { %v5615_v27 = vpop.permute.xlu1 %575  ;;  %v5617_v28 = vpop.permute.xlu0 %573 }
 0x2d6   : > { %2605 = vrot.lane.b32.xlu1 %v5613_v26, %s5107_s21  ;;  %2607 = vrot.lane.b32.xlu0 %v5609_v25, %s5107_s21 }
 0x2d8   : > { %v5631_v32 = vpop.permute.xlu1 %579  ;;  %v5633_v33 = vpop.permute.xlu0 %577 }
 0x2da   : > { %2609 = vrot.lane.b32.xlu1 %v5629_v30, %s5107_s21  ;;  %2611 = vrot.lane.b32.xlu0 %v5625_v29, %s5107_s21  ;;  %s269_s21 = scalar_lea.vmem [#allocation10], %s4760_s7 }
 0x2dc   : > { %v5639_v34 = vpop.permute.xlu1 %583  ;;  %v5641_v35 = vpop.permute.xlu0 %581 }
 0x2dd   : > { %7669 = vst [vmem:[#allocation27_spill] sm:$0xff] %v5639_v34  ;;  %7670 = vst [vmem:[#allocation28_spill] sm:$0xff] %v5641_v35 }
 0x2de   : > { %2621 = vrot.lane.b32.xlu1 %v5585_v20, %s5108_s5  ;;  %2623 = vrot.lane.b32.xlu0 %v5581_v18, %s5108_s5 }
 0x2e0   : > { %v5647_v36 = vpop.permute.xlu1 %595  ;;  %v5649_v37 = vpop.permute.xlu0 %593 }
 0x2e2   : > { %2625 = vrot.lane.b32.xlu1 %v5597_v22, %s5108_s5  ;;  %2627 = vrot.lane.b32.xlu0 %v5593_v21, %s5108_s5 }
 0x2e4   : > { %v5655_v38 = vpop.permute.xlu1 %599  ;;  %v5657_v39 = vpop.permute.xlu0 %597 }
 0x2e6   : > { %2629 = vrot.lane.b32.xlu1 %v5613_v26, %s5108_s5  ;;  %2631 = vrot.lane.b32.xlu0 %v5609_v25, %s5108_s5 }
 0x2e8   : > { %v5663_v40 = vpop.permute.xlu1 %603  ;;  %v5665_v41 = vpop.permute.xlu0 %601 }
 0x2e9   : > { %7671 = vst [vmem:[#allocation29_spill] sm:$0xff] %v5663_v40 }
 0x2ea   : > { %2633 = vrot.lane.b32.xlu1 %v5629_v30, %s5108_s5  ;;  %2635 = vrot.lane.b32.xlu0 %v5625_v29, %s5108_s5  ;;  %s4638_s5 = sshll.u32 %s269_s21, 4  ;;  %s7480_s5 = int_to_ptr.vmem [resolvable:$true] %s4638_s5 }
 0x2ec   : > { %v5671_v42 = vpop.permute.xlu1 %607  ;;  %v5673_v43 = vpop.permute.xlu0 %605 }
 0x2ed   : > { %7672 = vst [vmem:[#allocation30_spill] sm:$0xff] %v5671_v42  ;;  %7673 = vst [vmem:[#allocation31_spill] sm:$0xff] %v5673_v43 }
 0x2ee   : > { %2645 = vrot.lane.b32.xlu1 %v5585_v20, %s5109_s22  ;;  %2647 = vrot.lane.b32.xlu0 %v5581_v18, %s5109_s22 }
 0x2f0   : > { %v5679_v44 = vpop.permute.xlu1 %619  ;;  %v5681_v45 = vpop.permute.xlu0 %617 }
 0x2f2   : > { %2649 = vrot.lane.b32.xlu1 %v5597_v22, %s5109_s22  ;;  %2651 = vrot.lane.b32.xlu0 %v5593_v21, %s5109_s22 }
 0x2f4   : > { %v5687_v46 = vpop.permute.xlu1 %623  ;;  %v5689_v47 = vpop.permute.xlu0 %621 }
 0x2f6   : > { %2653 = vrot.lane.b32.xlu1 %v5613_v26, %s5109_s22  ;;  %2655 = vrot.lane.b32.xlu0 %v5609_v25, %s5109_s22 }
 0x2f8   : > { %v5695_v48 = vpop.permute.xlu1 %627  ;;  %v5697_v49 = vpop.permute.xlu0 %625 }
 0x2fa   : > { %2657 = vrot.lane.b32.xlu1 %v5629_v30, %s5109_s22  ;;  %2659 = vrot.lane.b32.xlu0 %v5625_v29, %s5109_s22 }
 0x2fc   : > { %v5703_v50 = vpop.permute.xlu1 %631  ;;  %v5705_v51 = vpop.permute.xlu0 %629 }
 0x2fd   : > { %7674 = vst [vmem:[#allocation32_spill] sm:$0xff] %v5703_v50  ;;  %7675 = vst [vmem:[#allocation33_spill] sm:$0xff] %v5705_v51 }
 0x2fe   : > { %2669 = vrot.lane.b32.xlu1 %v5585_v20, %s5110_s11  ;;  %2671 = vrot.lane.b32.xlu0 %v5581_v18, %s5110_s11 }
 0x300   : > { %v5711_v52 = vpop.permute.xlu1 %643  ;;  %v5713_v53 = vpop.permute.xlu0 %641 }
 0x302   : > { %2673 = vrot.lane.b32.xlu1 %v5597_v22, %s5110_s11  ;;  %2675 = vrot.lane.b32.xlu0 %v5593_v21, %s5110_s11 }
 0x304   : > { %v5719_v54 = vpop.permute.xlu1 %647  ;;  %v5721_v55 = vpop.permute.xlu0 %645 }
 0x306   : > { %2677 = vrot.lane.b32.xlu1 %v5613_v26, %s5110_s11  ;;  %2679 = vrot.lane.b32.xlu0 %v5609_v25, %s5110_s11 }
 0x308   : > { %v5727_v56 = vpop.permute.xlu1 %651  ;;  %v5729_v57 = vpop.permute.xlu0 %649 }
 0x309   : > { %7676 = vst [vmem:[#allocation34_spill] sm:$0xff] %v5727_v56 }
 0x30a   : > { %2681 = vrot.lane.b32.xlu1 %v5629_v30, %s5110_s11  ;;  %2683 = vrot.lane.b32.xlu0 %v5625_v29, %s5110_s11 }
 0x30c   : > { %v5735_v58 = vpop.permute.xlu1 %655  ;;  %v5737_v59 = vpop.permute.xlu0 %653 }
 0x30d   : > { %7677 = vst [vmem:[#allocation35_spill] sm:$0xff] %v5735_v58  ;;  %7678 = vst [vmem:[#allocation36_spill] sm:$0xff] %v5737_v59 }
 0x30e   : > { %2693 = vrot.lane.b32.xlu1 %v5585_v20, %s5111_s30  ;;  %2695 = vrot.lane.b32.xlu0 %v5581_v18, %s5111_s30 }
 0x310   : > { %v5743_v60 = vpop.permute.xlu1 %667  ;;  %v5745_v61 = vpop.permute.xlu0 %665 }
 0x312   : > { %2697 = vrot.lane.b32.xlu1 %v5597_v22, %s5111_s30  ;;  %2699 = vrot.lane.b32.xlu0 %v5593_v21, %s5111_s30 }
 0x314   : > { %v5751_v62 = vpop.permute.xlu1 %671  ;;  %v5753_v63 = vpop.permute.xlu0 %669 }
 0x316   : > { %2701 = vrot.lane.b32.xlu1 %v5613_v26, %s5111_s30  ;;  %2703 = vrot.lane.b32.xlu0 %v5609_v25, %s5111_s30 }
 0x318   : > { %v5759_v0 = vpop.permute.xlu1 %675  ;;  %v5761_v1 = vpop.permute.xlu0 %673 }
 0x31a   : > { %2705 = vrot.lane.b32.xlu1 %v5629_v30, %s5111_s30  ;;  %2707 = vrot.lane.b32.xlu0 %v5625_v29, %s5111_s30 }
 0x31c   : > { %v5767_v4 = vpop.permute.xlu1 %679  ;;  %v5769_v5 = vpop.permute.xlu0 %677 }
 0x31d   : > { %7679 = vst [vmem:[#allocation37_spill] sm:$0xff] %v5767_v4  ;;  %7680 = vst [vmem:[#allocation38_spill] sm:$0xff] %v5769_v5 }
 0x31e   : > { %2717 = vrot.lane.b32.xlu1 %v5585_v20, %s5112_s12  ;;  %2719 = vrot.lane.b32.xlu0 %v5581_v18, %s5112_s12 }
 0x320   : > { %v5775_v8 = vpop.permute.xlu1 %691  ;;  %v690_v9 = vpop.permute.xlu0 %689 }
 0x321   : > { %v769_v59 = vcombine.low %v5713_v53, %v690_v9  ;;  %v770_v11 = vcombine.high %v5713_v53, %v690_v9 }
 0x322   : > { %2721 = vrot.lane.b32.xlu1 %v5597_v22, %s5112_s12  ;;  %2723 = vrot.lane.b32.xlu0 %v5593_v21, %s5112_s12 }
 0x324   : > { %v5781_v13 = vpop.permute.xlu1 %695  ;;  %v5783_v15 = vpop.permute.xlu0 %693 }
 0x326   : > { %2725 = vrot.lane.b32.xlu1 %v5613_v26, %s5112_s12  ;;  %2727 = vrot.lane.b32.xlu0 %v5609_v25, %s5112_s12 }
 0x328   : > { %v5789_v10 = vpop.permute.xlu1 %699  ;;  %v5791_v14 = vpop.permute.xlu0 %697 }
 0x32a   : > { %2729 = vrot.lane.b32.xlu1 %v5629_v30, %s5112_s12  ;;  %2731 = vrot.lane.b32.xlu0 %v5625_v29, %s5112_s12  ;;  %s4624_s12 = scalar_lea.sflag [#allocation4], %s5350_s29 }
 0x32c   : > { %v5797_v58 = vpop.permute.xlu1 %703  ;;  %v5799_v4 = vpop.permute.xlu0 %701 }
 0x32d   : > { %7681 = vst [vmem:[#allocation39_spill] sm:$0xff] %v5797_v58  ;;  %7682 = vst [vmem:[#allocation40_spill] sm:$0xff] %v5799_v4 }
 0x32e   : > { %2741 = vrot.lane.b32.xlu1 %v5585_v20, %s5113_s13  ;;  %2743 = vrot.lane.b32.xlu0 %v5581_v18, %s5113_s13 }
 0x330   : > { %v5805_v34 = vpop.permute.xlu1 %715  ;;  %v714_v50 = vpop.permute.xlu0 %713 }
 0x331   : > { %v785_v43 = vcombine.low %v5745_v61, %v714_v50  ;;  %v786_v5 = vcombine.high %v5745_v61, %v714_v50 }
 0x332   : > { %2745 = vrot.lane.b32.xlu1 %v5597_v22, %s5113_s13  ;;  %2747 = vrot.lane.b32.xlu0 %v5593_v21, %s5113_s13 }
 0x334   : > { %v5811_v16 = vpop.permute.xlu1 %719  ;;  %v5813_v58 = vpop.permute.xlu0 %717 }
 0x336   : > { %2749 = vrot.lane.b32.xlu1 %v5613_v26, %s5113_s13  ;;  %2751 = vrot.lane.b32.xlu0 %v5609_v25, %s5113_s13 }
 0x338   : > { %v5819_v18 = vpop.permute.xlu1 %723  ;;  %v5821_v20 = vpop.permute.xlu0 %721 }
 0x33a   : > { %2753 = vrot.lane.b32.xlu1 %v5629_v30, %s5113_s13  ;;  %2755 = vrot.lane.b32.xlu0 %v5625_v29, %s5113_s13  ;;  %v753_v30 = vcombine.low %v5601_v24, %v5681_v45  ;;  %s5004_s13 = scalar_lea.vmem %s7480_s5, 128 }
 0x33b   : > { %p5005_p12 = scmp.ne.s32.totalorder %s7480_s5, %s5004_s13 }
 0x33c   : > { %v5827_v21 = vpop.permute.xlu1 %727  ;;  %v5829_v22 = vpop.permute.xlu0 %725 }
 0x33d   : > { %7683 = vst [vmem:[#allocation41_spill] sm:$0xff] %v5827_v21  ;;  %7684 = vst [vmem:[#allocation42_spill] sm:$0xff] %v5829_v22  ;;  %p5006_p1 = pnand %p5005_p12, %p5295_p2 }
 0x33f   : > { %p5007_p4 = pneg %p5006_p1 }
 0x340   : > { %v5831_v42 = vpop.permute.xlu1 %2597  ;;  %v5833_v26 = vpop.permute.xlu0 %2599 }
 0x341   : > { %7685 = vst [vmem:[#allocation43_spill] sm:$0xff] %v5831_v42  ;;  %7686 = vst [vmem:[#allocation44_spill] sm:$0xff] %v5833_v26  ;;  %v737_v42 = vcombine.low %v5429_v3, %v5649_v37  ;;  %v793_v26 = vrot.slane %v785_v43, %v5374_v19 }
 0x343   : > { %v745_v51 = vrot.slane %v737_v42, %v5374_v19 }
 0x344   : > { %v5835_v17 = vpop.permute.xlu1 %2601  ;;  %v5837_v25 = vpop.permute.xlu0 %2603 }
 0x345   : > { %7687 = vst [vmem:[#allocation45_spill] sm:$0xff] %v5835_v17  ;;  %7688 = vst [vmem:[#allocation46_spill] sm:$0xff] %v5837_v25  ;;  %v761_v17 = vrot.slane %v753_v30, %v5374_v19  ;;  %v777_v25 = vrot.slane %v769_v59, %v5374_v19  ;;  %v738_v59 = vcombine.high %v5429_v3, %v5649_v37 }
 0x347   : > { %v801_v22 = vcombine.low %v745_v51, %v761_v17  ;;  %v802_v61 = vcombine.high %v745_v51, %v761_v17  ;;  %v752_v9 = vrot.slane %v738_v59, %v5374_v19  ;;  %v873_v59 = vcombine.low %v5425_v2, %v5647_v36 }
 0x348   : > { %v5843_v29 = vpop.permute.xlu1 %2605  ;;  %v5845_v21 = vpop.permute.xlu0 %2607 }
 0x349   : > { %7689 = vst [vmem:[#allocation47_spill] sm:$0xff] %v5843_v29  ;;  %7690 = vst [vmem:[#allocation48_spill] sm:$0xff] %v5845_v21  ;;  %v833_v29 = vcombine.low %v777_v25, %v793_v26  ;;  %v754_v21 = vcombine.high %v5601_v24, %v5681_v45  ;;  %v784_v24 = vrot.slane %v770_v11, %v5374_v19 }
 0x34a   : > { %v809_v45 = vrot.slane %v801_v22, %v5379_v31  ;;  %v816_v17 = vrot.slane %v802_v61, %v5379_v31  ;;  %v889_v11 = vcombine.low %v5599_v23, %v5679_v44  ;;  %v905_v22 = vcombine.low %v5711_v52, %v5775_v8 }
 0x34b   : > { %v841_v42 = vrot.slane %v833_v29, %v5379_v31  ;;  %v768_v50 = vrot.slane %v754_v21, %v5374_v19 }
 0x34c   : > { %v5852_v4 = vpop.permute.xlu1 %2609  ;;  %v5854_v35 = vpop.permute.xlu0 %2611  ;;  %v897_v56 = vrot.slane %v889_v11, %v5374_v19 }
 0x34d   : > { %7691 = vst [vmem:[#allocation49_spill] sm:$0xff] %v5852_v4  ;;  %7692 = vst [vmem:[#allocation50_spill] sm:$0xff] %v5854_v35  ;;  %v800_v35 = vrot.slane %v786_v5, %v5374_v19  ;;  %v834_v4 = vcombine.high %v777_v25, %v793_v26  ;;  %v865_v3 = vcombine.low %v809_v45, %v841_v42 }
 0x34e   : > { %v921_v25 = vcombine.low %v5743_v60, %v5805_v34  ;;  %v817_v21 = vcombine.low %v752_v9, %v768_v50  ;;  %v866_v5 = vcombine.high %v809_v45, %v841_v42  ;;  %v922_v42 = vcombine.high %v5743_v60, %v5805_v34 }
 0x34f   : > { %v848_v37 = vrot.slane %v834_v4, %v5379_v31  ;;  %v1826_v29 = vsel %vm1825_vm2, %v865_v3, -inf  ;;  %v850_v61 = vcombine.high %v784_v24, %v800_v35  ;;  %v913_v3 = vrot.slane %v905_v22, %v5374_v19 }
 0x350   : > { %v5861_v43 = vpop.permute.xlu1 %2621  ;;  %v5863_v30 = vpop.permute.xlu0 %2623  ;;  %v825_v40 = vrot.slane %v817_v21, %v5379_v31  ;;  %v874_v34 = vcombine.high %v5425_v2, %v5647_v36  ;;  %v890_v60 = vcombine.high %v5599_v23, %v5679_v44 }
 0x351   : > { %7693 = vst [vmem:[#allocation51_spill] sm:$0xff] %v5861_v43  ;;  %7694 = vst [vmem:[#allocation52_spill] sm:$0xff] %v5863_v30  ;;  %v849_v30 = vcombine.low %v784_v24, %v800_v35  ;;  %v867_v51 = vcombine.low %v816_v17, %v848_v37  ;;  %v868_v35 = vcombine.high %v816_v17, %v848_v37 }
 0x352   : > { %v936_v17 = vrot.slane %v922_v42, %v5374_v19  ;;  %v904_v44 = vrot.slane %v890_v60, %v5374_v19 }
 0x353   : > { %v857_v4 = vrot.slane %v849_v30, %v5379_v31  ;;  %v1832_v45 = vsel %vm1825_vm2, %v867_v51, -inf  ;;  %v1835_v22 = vsel %vm1825_vm2, %v868_v35, -inf  ;;  %v1025_v35 = vcombine.low %v5617_v28, %v5689_v47 }
 0x354   : > { %v5872_v53 = vpop.permute.xlu1 %2625  ;;  %v5875_v43 = vpop.permute.xlu0 %2627 }
 0x355   : > { %7695 = vst [vmem:[#allocation53_spill] sm:$0xff] %v5872_v53  ;;  %7696 = vst [vmem:[#allocation54_spill] sm:$0xff] %v5875_v43  ;;  %v929_v43 = vrot.slane %v921_v25, %v5374_v19  ;;  %v1829_v25 = vsel %vm1825_vm2, %v866_v5, -inf  ;;  %v869_v24 = vcombine.low %v825_v40, %v857_v4  ;;  %v870_v5 = vcombine.high %v825_v40, %v857_v4 }
 0x356   : > { %v1057_v4 = vcombine.low %v5753_v63, %v5813_v58 }
 0x357   : > { %v1838_v51 = vsel %vm1825_vm2, %v869_v24, -inf  ;;  %v1841_v40 = vsel %vm1825_vm2, %v870_v5, -inf  ;;  %v1041_v24 = vcombine.low %v5721_v55, %v5783_v15 }
 0x358   : > { %v5885_v26 = vpop.permute.xlu1 %2629  ;;  %v5892_v53 = vpop.permute.xlu0 %2631 }
 0x359   : > { %7697 = vst [vmem:[#allocation55_spill] sm:$0xff] %v5885_v26  ;;  %1827 = vmax.xlane.f32.xlu0 %v1826_v29  ;;  %7698 = vst [vmem:[#allocation56_spill] sm:$0xff] %v5892_v53  ;;  %v818_v26 = vcombine.high %v752_v9, %v768_v50  ;;  %v881_v29 = vrot.slane %v873_v59, %v5374_v19  ;;  %v969_v53 = vcombine.low %v913_v3, %v929_v43 }
 0x35a   : > { %v864_v50 = vrot.slane %v850_v61, %v5379_v31  ;;  %v906_v9 = vcombine.high %v5711_v52, %v5775_v8  ;;  %v970_v59 = vcombine.high %v913_v3, %v929_v43  ;;  %v888_v61 = vrot.slane %v874_v34, %v5374_v19 }
 0x35b   : > { %v937_v21 = vcombine.low %v881_v29, %v897_v56  ;;  %v832_v37 = vrot.slane %v818_v26, %v5379_v31  ;;  %v977_v2 = vrot.slane %v969_v53, %v5379_v31  ;;  %v938_v8 = vcombine.high %v881_v29, %v897_v56 }
 0x35c   : > { %v5899_v30 = vpop.permute.xlu1 %2633  ;;  %v5913_v11 = vpop.permute.xlu0 %2635  ;;  %v920_v23 = vrot.slane %v906_v9, %v5374_v19  ;;  %v953_v56 = vcombine.low %v888_v61, %v904_v44 }
 0x35d   : > { %1833 = vmax.xlane.f32.xlu0 %v1832_v45  ;;  %v871_v52 = vcombine.low %v832_v37, %v864_v50  ;;  %v945_v26 = vrot.slane %v937_v21, %v5379_v31  ;;  %v872_v43 = vcombine.high %v832_v37, %v864_v50  ;;  %v984_v45 = vrot.slane %v970_v59, %v5379_v31 }
 0x35e   : > { %1830 = vmax.xlane.f32.xlu1 %v1829_v25  ;;  %v985_v42 = vcombine.low %v920_v23, %v936_v17  ;;  %v952_v29 = vrot.slane %v938_v8, %v5379_v31  ;;  %v1009_v50 = vcombine.low %v5445_v7, %v5657_v39  ;;  %v986_v9 = vcombine.high %v920_v23, %v936_v17 }
 0x35f   : > { %v1844_v53 = vsel %vm1825_vm2, %v871_v52, -inf  ;;  %v1001_v3 = vcombine.low %v945_v26, %v977_v2  ;;  %v1847_v60 = vsel %vm1825_vm2, %v872_v43, -inf  ;;  %v1002_v21 = vcombine.high %v945_v26, %v977_v2 }
 0x360   : > { %v5919_v36 = vpop.permute.xlu1 %2645  ;;  %v5929_v25 = vpop.permute.xlu0 %2647  ;;  %v1065_v37 = vrot.slane %v1057_v4, %v5374_v19  ;;  %v993_v5 = vrot.slane %v985_v42, %v5379_v31  ;;  %v954_v59 = vcombine.high %v888_v61, %v904_v44  ;;  %v1033_v52 = vrot.slane %v1025_v35, %v5374_v19 }
 0x361   : > { %1836 = vmax.xlane.f32.xlu0 %v1835_v22  ;;  %v1850_v22 = vsel %vm1825_vm2, %v1001_v3, -inf  ;;  %v1049_v8 = vrot.slane %v1041_v24, %v5374_v19  ;;  %v961_v17 = vrot.slane %v953_v56, %v5379_v31  ;;  %v1017_v23 = vrot.slane %v1009_v50, %v5374_v19 }
 0x362   : > { %1839 = vmax.xlane.f32.xlu1 %v1838_v51  ;;  %v1003_v51 = vcombine.low %v952_v29, %v984_v45  ;;  %v1058_v2 = vcombine.high %v5753_v63, %v5813_v58  ;;  %v1004_v43 = vcombine.high %v952_v29, %v984_v45  ;;  %v1000_v42 = vrot.slane %v986_v9, %v5379_v31 }
 0x363   : > { %v1105_v4 = vcombine.low %v1049_v8, %v1065_v37  ;;  %v1005_v61 = vcombine.low %v961_v17, %v993_v5  ;;  %v1026_v3 = vcombine.high %v5617_v28, %v5689_v47  ;;  %v1073_v56 = vcombine.low %v1017_v23, %v1033_v52 }
 0x364   : > { %v5938_v34 = vpop.permute.xlu1 %2649  ;;  %v5950_v26 = vpop.permute.xlu0 %2651  ;;  %v1856_v44 = vsel %vm1825_vm2, %v1003_v51, -inf  ;;  %v1042_v58 = vcombine.high %v5721_v55, %v5783_v15  ;;  %v968_v63 = vrot.slane %v954_v59, %v5379_v31  ;;  %v1010_v45 = vcombine.high %v5445_v7, %v5657_v39 }
 0x365   : > { %1842 = vmax.xlane.f32.xlu0 %v1841_v40  ;;  %v1853_v40 = vsel %vm1825_vm2, %v1002_v21, -inf  ;;  %v1072_v35 = vrot.slane %v1058_v2, %v5374_v19  ;;  %v1859_v24 = vsel %vm1825_vm2, %v1004_v43, -inf  ;;  %v1006_v29 = vcombine.high %v961_v17, %v993_v5 }
 0x366   : > { %1845 = vmax.xlane.f32.xlu1 %v1844_v53  ;;  %v1106_v50 = vcombine.high %v1049_v8, %v1065_v37  ;;  %v1862_v9 = vsel %vm1825_vm2, %v1005_v61, -inf  ;;  %v1113_v28 = vrot.slane %v1105_v4, %v5379_v31  ;;  %v1040_v55 = vrot.slane %v1026_v3, %v5374_v19 }
 0x367   : > { %v1074_v15 = vcombine.high %v1017_v23, %v1033_v52  ;;  %v1056_v7 = vrot.slane %v1042_v58, %v5374_v19  ;;  %v1081_v39 = vrot.slane %v1073_v56, %v5379_v31  ;;  %v1024_v21 = vrot.slane %v1010_v45, %v5374_v19 }
 0x368   : > { %v5955_v53 = vpop.permute.xlu1 %2653  ;;  %v5968_v47 = vpop.permute.xlu0 %2655  ;;  %v1193_v37 = vcombine.low %v5751_v62, %v5811_v16  ;;  %v1865_v51 = vsel %vm1825_vm2, %v1006_v29, -inf  ;;  %v1008_v5 = vcombine.high %v968_v63, %v1000_v42  ;;  %v1120_v52 = vrot.slane %v1106_v50, %v5379_v31 }
 0x369   : > { %1848 = vmax.xlane.f32.xlu0 %v1847_v60  ;;  %v1007_v60 = vcombine.low %v968_v63, %v1000_v42  ;;  %v1121_v59 = vcombine.low %v1056_v7, %v1072_v35  ;;  %v1137_v17 = vcombine.low %v1081_v39, %v1113_v28  ;;  %v1161_v23 = vcombine.low %v5615_v27, %v5687_v46 }
 0x36a   : > { %1851 = vmax.xlane.f32.xlu1 %v1850_v22  ;;  %v1089_v2 = vcombine.low %v1024_v21, %v1040_v55  ;;  %v1088_v43 = vrot.slane %v1074_v15, %v5379_v31  ;;  %v1145_v4 = vcombine.low %v5441_v6, %v5655_v38  ;;  %v1871_v42 = vsel %vm1825_vm2, %v1008_v5, -inf }
 0x36b   : > { %v1868_v8 = vsel %vm1825_vm2, %v1007_v60, -inf  ;;  %v1138_v3 = vcombine.high %v1081_v39, %v1113_v28  ;;  %v1122_v56 = vcombine.high %v1056_v7, %v1072_v35  ;;  %v1874_v58 = vsel %vm1825_vm2, %v1137_v17, -inf }
 0x36c   : > { %v5976_v22 = vpop.permute.xlu1 %2657  ;;  %v5989_v61 = vpop.permute.xlu0 %2659  ;;  %v1139_v63 = vcombine.low %v1088_v43, %v1120_v52  ;;  %v1129_v45 = vrot.slane %v1121_v59, %v5379_v31  ;;  %v1169_v29 = vrot.slane %v1161_v23, %v5374_v19  ;;  %v1090_v50 = vcombine.high %v1024_v21, %v1040_v55 }
 0x36d   : > { %1854 = vmax.xlane.f32.xlu0 %v1853_v40  ;;  %7699 = vst [vmem:[#allocation57_spill] sm:$0xff] %v5976_v22  ;;  %v1177_v40 = vcombine.low %v5719_v54, %v5781_v13  ;;  %7700 = vst [vmem:[#allocation58_spill] sm:$0xff] %v5989_v61  ;;  %v1097_v60 = vrot.slane %v1089_v2, %v5379_v31  ;;  %v1153_v15 = vrot.slane %v1145_v4, %v5374_v19 }
 0x36e   : > { %1857 = vmax.xlane.f32.xlu1 %v1856_v44  ;;  %v1201_v44 = vrot.slane %v1193_v37, %v5374_v19  ;;  %v1194_v35 = vcombine.high %v5751_v62, %v5811_v16  ;;  %v1877_v28 = vsel %vm1825_vm2, %v1138_v3, -inf  ;;  %v1140_v7 = vcombine.high %v1088_v43, %v1120_v52 }
 0x36f   : > { %v1880_v37 = vsel %vm1825_vm2, %v1139_v63, -inf  ;;  %v1136_v5 = vrot.slane %v1122_v56, %v5379_v31  ;;  %v1162_v21 = vcombine.high %v5615_v27, %v5687_v46  ;;  %v1209_v59 = vcombine.low %v1153_v15, %v1169_v29 }
 0x370   : > { %v6005_v55 = vpop.permute.xlu0 %2671  ;;  %v1178_v16 = vcombine.high %v5719_v54, %v5781_v13  ;;  %v1104_v62 = vrot.slane %v1090_v50, %v5379_v31  ;;  %v1208_v17 = vrot.slane %v1194_v35, %v5374_v19  ;;  %v1883_v23 = vsel %vm1825_vm2, %v1140_v7, -inf }
 0x371   : > { %1860 = vmax.xlane.f32.xlu0 %v1859_v24  ;;  %v5994_v24 = vpop.permute.xlu1 %2669  ;;  %7702 = vst [vmem:[#allocation60_spill] sm:$0xff] %v6005_v55  ;;  %v1142_v2 = vcombine.high %v1097_v60, %v1129_v45  ;;  %v1176_v54 = vrot.slane %v1162_v21, %v5374_v19  ;;  %v1210_v13 = vcombine.high %v1153_v15, %v1169_v29 }
 0x372   : > { %1863 = vmax.xlane.f32.xlu1 %v1862_v9  ;;  %7701 = vst [vmem:[#allocation59_spill] sm:$0xff] %v5994_v24  ;;  %v1185_v9 = vrot.slane %v1177_v40, %v5374_v19  ;;  %v1143_v46 = vcombine.low %v1104_v62, %v1136_v5  ;;  %v1144_v56 = vcombine.high %v1104_v62, %v1136_v5 }
 0x373   : > { %v1889_v3 = vsel %vm1825_vm2, %v1142_v2, -inf  ;;  %v1313_v15 = vcombine.low %v5729_v57, %v5791_v14  ;;  %v1224_v35 = vrot.slane %v1210_v13, %v5379_v31 }
 0x374   : > { %v1241_v39 = vcombine.low %v1185_v9, %v1201_v44  ;;  %v1242_v40 = vcombine.high %v1185_v9, %v1201_v44  ;;  %v6026_v44 = vpop.permute.xlu0 %2675  ;;  %v1892_v63 = vsel %vm1825_vm2, %v1143_v46, -inf }
 0x375   : > { %1866 = vmax.xlane.f32.xlu0 %v1865_v51  ;;  %v1141_v51 = vcombine.low %v1097_v60, %v1129_v45  ;;  %v6015_v52 = vpop.permute.xlu1 %2673  ;;  %7704 = vst [vmem:[#allocation62_spill] sm:$0xff] %v6026_v44  ;;  %v1297_v60 = vcombine.low %v5633_v33, %v5697_v49 }
 0x376   : > { %1869 = vmax.xlane.f32.xlu1 %v1868_v8  ;;  %v1146_v8 = vcombine.high %v5441_v6, %v5655_v38  ;;  %7703 = vst [vmem:[#allocation61_spill] sm:$0xff] %v6015_v52  ;;  %v1249_v43 = vrot.slane %v1241_v39, %v5379_v31  ;;  %v1192_v6 = vrot.slane %v1178_v16, %v5374_v19  ;;  %v1895_v39 = vsel %vm1825_vm2, %v1144_v56, -inf }
 0x377   : > { %v1886_v27 = vsel %vm1825_vm2, %v1141_v51, -inf  ;;  %v1217_v38 = vrot.slane %v1209_v59, %v5379_v31  ;;  %v1256_v29 = vrot.slane %v1242_v40, %v5379_v31  ;;  %v1330_v40 = vcombine.high %v5761_v1, %v5821_v20 }
 0x378   : > { %v1160_v4 = vrot.slane %v1146_v8, %v5374_v19  ;;  %v1258_v7 = vcombine.high %v1192_v6, %v1208_v17  ;;  %v6044_v16 = vpop.permute.xlu0 %2679  ;;  %v1305_v8 = vrot.slane %v1297_v60, %v5374_v19 }
 0x379   : > { %1872 = vmax.xlane.f32.xlu0 %v1871_v42  ;;  %v1329_v42 = vcombine.low %v5761_v1, %v5821_v20  ;;  %v1273_v45 = vcombine.low %v1217_v38, %v1249_v43  ;;  %v6031_v50 = vpop.permute.xlu1 %2677  ;;  %v1275_v21 = vcombine.low %v1224_v35, %v1256_v29  ;;  %7706 = vst [vmem:[#allocation64_spill] sm:$0xff] %v6044_v16 }
 0x37a   : > { %1875 = vmax.xlane.f32.xlu1 %v1874_v58  ;;  %v1257_v58 = vcombine.low %v1192_v6, %v1208_v17  ;;  %7705 = vst [vmem:[#allocation63_spill] sm:$0xff] %v6031_v50  ;;  %v1225_v9 = vcombine.low %v1160_v4, %v1176_v54  ;;  %v1226_v62 = vcombine.high %v1160_v4, %v1176_v54 }
 0x37b   : > { %v1337_v51 = vrot.slane %v1329_v42, %v5374_v19  ;;  %v1898_v5 = vsel %vm1825_vm2, %v1273_v45, -inf  ;;  %v1904_v54 = vsel %vm1825_vm2, %v1275_v21, -inf  ;;  %v1298_v4 = vcombine.high %v5633_v33, %v5697_v49 }
 0x37c   : > { %v1265_v59 = vrot.slane %v1257_v58, %v5379_v31  ;;  %v1233_v17 = vrot.slane %v1225_v9, %v5379_v31  ;;  %v1314_v20 = vcombine.high %v5729_v57, %v5791_v14  ;;  %v1240_v1 = vrot.slane %v1226_v62, %v5379_v31  ;;  %v6065_v58 = vpop.permute.xlu0 %2683 }
 0x37d   : > { %1878 = vmax.xlane.f32.xlu0 %v1877_v28  ;;  %v1281_v28 = vcombine.low %v5461_v12, %v5665_v41  ;;  %v1344_v56 = vrot.slane %v1330_v40, %v5374_v19  ;;  %7708 = vst [vmem:[#allocation66_spill] sm:$0xff] %v6065_v58  ;;  %v1312_v57 = vrot.slane %v1298_v4, %v5374_v19  ;;  %v7713_v40 = vld [vmem:[#allocation16_spill] sm:$0xff] }
 0x37e   : > { %1881 = vmax.xlane.f32.xlu1 %v1880_v37  ;;  %v1274_v37 = vcombine.high %v1217_v38, %v1249_v43  ;;  %v1276_v43 = vcombine.high %v1224_v35, %v1256_v29  ;;  %v1277_v6 = vcombine.low %v1233_v17, %v1265_v59  ;;  %v1272_v38 = vrot.slane %v1258_v7, %v5379_v31 }
 0x37f   : > { %v1289_v2 = vrot.slane %v1281_v28, %v5374_v19  ;;  %v1278_v45 = vcombine.high %v1233_v17, %v1265_v59  ;;  %v1465_v35 = vcombine.low %v5759_v0, %v5819_v18  ;;  %v1433_v59 = vcombine.low %v5631_v32, %v5695_v48 }
 0x380   : > { %v1901_v46 = vsel %vm1825_vm2, %v1274_v37, -inf  ;;  %v1910_v33 = vsel %vm1825_vm2, %v1277_v6, -inf  ;;  %v1279_v49 = vcombine.low %v1240_v1, %v1272_v38  ;;  %v1280_v7 = vcombine.high %v1240_v1, %v1272_v38  ;;  %v6081_v21 = vpop.permute.xlu0 %2695 }
 0x381   : > { %1884 = vmax.xlane.f32.xlu0 %v1883_v23  ;;  %v1321_v23 = vrot.slane %v1313_v15, %v5374_v19  ;;  %v1345_v42 = vcombine.low %v1289_v2, %v1305_v8  ;;  %v1913_v28 = vsel %vm1825_vm2, %v1278_v45, -inf  ;;  %7710 = vst [vmem:[#allocation68_spill] sm:$0xff] %v6081_v21  ;;  %v1441_v1 = vrot.slane %v1433_v59, %v5374_v19 }
 0x382   : > { %1887 = vmax.xlane.f32.xlu1 %v1886_v27  ;;  %v6052_v27 = vpop.permute.xlu1 %2681  ;;  %v1916_v37 = vsel %vm1825_vm2, %v1279_v49, -inf }
 0x383   : > { %7707 = vst [vmem:[#allocation65_spill] sm:$0xff] %v6052_v27  ;;  %v1377_v13 = vcombine.low %v1321_v23, %v1337_v51  ;;  %v1378_v29 = vcombine.high %v1321_v23, %v1337_v51  ;;  %v1353_v60 = vrot.slane %v1345_v42, %v5379_v31 }
 0x385   : > { %1890 = vmax.xlane.f32.xlu0 %v1889_v3  ;;  %v1282_v3 = vcombine.high %v5461_v12, %v5665_v41  ;;  %v1385_v9 = vrot.slane %v1377_v13, %v5379_v31  ;;  %v1346_v12 = vcombine.high %v1289_v2, %v1305_v8  ;;  %v1328_v41 = vrot.slane %v1314_v20, %v5374_v19  ;;  %v7711_v8 = vld [vmem:[#allocation34_spill] sm:$0xff]  ;;  %v7712_v2 = vld [vmem:[#allocation29_spill] sm:$0xff] }
 0x386   : > { %1893 = vmax.xlane.f32.xlu1 %v1892_v63  ;;  %v1907_v63 = vsel %vm1825_vm2, %v1276_v43, -inf  ;;  %v6070_v14 = vpop.permute.xlu1 %2693  ;;  %v1449_v23 = vcombine.low %v7711_v8, %v5789_v10  ;;  %v1473_v43 = vrot.slane %v1465_v35, %v5374_v19  ;;  %v1434_v35 = vcombine.high %v5631_v32, %v5695_v48 }
 0x387   : > { %7709 = vst [vmem:[#allocation67_spill] sm:$0xff] %v6070_v14  ;;  %v1296_v15 = vrot.slane %v1282_v3, %v5374_v19  ;;  %v1409_v51 = vcombine.low %v1353_v60, %v1385_v9  ;;  %v1360_v17 = vrot.slane %v1346_v12, %v5379_v31  ;;  %v1410_v6 = vcombine.high %v1353_v60, %v1385_v9 }
 0x388   : > { %v1394_v38 = vcombine.high %v1328_v41, %v1344_v56 }
 0x389   : > { %1896 = vmax.xlane.f32.xlu0 %v1895_v39  ;;  %v1393_v39 = vcombine.low %v1328_v41, %v1344_v56  ;;  %v1361_v62 = vcombine.low %v1296_v15, %v1312_v57  ;;  %v1922_v4 = vsel %vm1825_vm2, %v1409_v51, -inf  ;;  %v1362_v3 = vcombine.high %v1296_v15, %v1312_v57  ;;  %v6102_v56 = vpop.permute.xlu0 %2699 }
 0x38a   : > { %1899 = vmax.xlane.f32.xlu1 %v1898_v5  ;;  %v1392_v5 = vrot.slane %v1378_v29, %v5379_v31  ;;  %v6091_v13 = vpop.permute.xlu1 %2697  ;;  %7715 = vst [vmem:[#allocation29_spill] sm:$0xff] %v6102_v56  ;;  %v1925_v49 = vsel %vm1825_vm2, %v1410_v6, -inf  ;;  %v1408_v57 = vrot.slane %v1394_v38, %v5379_v31 }
 0x38b   : > { %7714 = vst [vmem:[#allocation34_spill] sm:$0xff] %v6091_v13  ;;  %v1401_v20 = vrot.slane %v1393_v39, %v5379_v31  ;;  %v1369_v45 = vrot.slane %v1361_v62, %v5379_v31 }
 0x38c   : > { %v1411_v42 = vcombine.low %v1360_v17, %v1392_v5  ;;  %v1412_v9 = vcombine.high %v1360_v17, %v1392_v5 }
 0x38d   : > { %1902 = vmax.xlane.f32.xlu0 %v1901_v46  ;;  %v1417_v46 = vcombine.low %v7713_v40, %v7712_v2  ;;  %v1413_v60 = vcombine.low %v1369_v45, %v1401_v20  ;;  %v1414_v51 = vcombine.high %v1369_v45, %v1401_v20  ;;  %v6120_v48 = vpop.permute.xlu0 %2703  ;;  %v7722_v45 = vld [vmem:[#allocation28_spill] sm:$0xff] }
 0x38e   : > { %1905 = vmax.xlane.f32.xlu1 %v1904_v54  ;;  %v1919_v54 = vsel %vm1825_vm2, %v1280_v7, -inf  ;;  %v1928_v41 = vsel %vm1825_vm2, %v1411_v42, -inf  ;;  %v6107_v15 = vpop.permute.xlu1 %2701  ;;  %v1418_v7 = vcombine.high %v7713_v40, %v7712_v2  ;;  %7717 = vst [vmem:[#allocation69_spill] sm:$0xff] %v6120_v48  ;;  %v7718_v40 = vld [vmem:[#allocation42_spill] sm:$0xff] }
 0x38f   : > { %v1425_v29 = vrot.slane %v1417_v46, %v5374_v19  ;;  %7716 = vst [vmem:[#allocation16_spill] sm:$0xff] %v6107_v15  ;;  %v1934_v59 = vsel %vm1825_vm2, %v1413_v60, -inf  ;;  %v7719_v46 = vld [vmem:[#allocation38_spill] sm:$0xff]  ;;  %v1937_v6 = vsel %vm1825_vm2, %v1414_v51, -inf }
 0x390   : > { %v1432_v2 = vrot.slane %v1418_v7, %v5374_v19  ;;  %v7726_v60 = vld [vmem:[#allocation18_spill] sm:$0xff] }
 0x391   : > { %1908 = vmax.xlane.f32.xlu0 %v1907_v63  ;;  %v1457_v63 = vrot.slane %v1449_v23, %v5374_v19 }
 0x392   : > { %1911 = vmax.xlane.f32.xlu1 %v1910_v33  ;;  %v1466_v33 = vcombine.high %v5759_v0, %v5819_v18  ;;  %v1450_v18 = vcombine.high %v7711_v8, %v5789_v10  ;;  %v1376_v0 = vrot.slane %v1362_v3, %v5379_v31  ;;  %v1448_v10 = vrot.slane %v1434_v35, %v5374_v19 }
 0x393   : > { %v1513_v12 = vcombine.low %v1457_v63, %v1473_v43  ;;  %v1514_v5 = vcombine.high %v1457_v63, %v1473_v43  ;;  %v1482_v8 = vcombine.high %v1425_v29, %v1441_v1  ;;  %v1601_v43 = vcombine.low %v7719_v46, %v7718_v40  ;;  %v7721_v63 = vld [vmem:[#allocation33_spill] sm:$0xff] }
 0x394   : > { %v1480_v39 = vrot.slane %v1466_v33, %v5374_v19  ;;  %v1415_v62 = vcombine.low %v1376_v0, %v1408_v57  ;;  %v1464_v23 = vrot.slane %v1450_v18, %v5374_v19  ;;  %v1416_v38 = vcombine.high %v1376_v0, %v1408_v57  ;;  %v7723_v33 = vld [vmem:[#allocation40_spill] sm:$0xff] }
 0x395   : > { %1914 = vmax.xlane.f32.xlu0 %v1913_v28  ;;  %v1481_v28 = vcombine.low %v1425_v29, %v1441_v1  ;;  %v1521_v32 = vrot.slane %v1513_v12, %v5379_v31  ;;  %v1528_v1 = vrot.slane %v1514_v5, %v5379_v31  ;;  %v1497_v3 = vcombine.low %v1432_v2, %v1448_v10 }
 0x396   : > { %1917 = vmax.xlane.f32.xlu1 %v1916_v37  ;;  %v1931_v37 = vsel %vm1825_vm2, %v1412_v9, -inf  ;;  %v1940_v42 = vsel %vm1825_vm2, %v1415_v62, -inf  ;;  %v1569_v29 = vcombine.low %v7722_v45, %v7721_v63  ;;  %v1496_v12 = vrot.slane %v1482_v8, %v5379_v31 }
 0x397   : > { %v1489_v17 = vrot.slane %v1481_v28, %v5379_v31  ;;  %v1530_v35 = vcombine.high %v1464_v23, %v1480_v39  ;;  %v6140_v28 = vpop.permute.xlu0 %2707  ;;  %v1943_v18 = vsel %vm1825_vm2, %v1416_v38, -inf  ;;  %v1609_v7 = vrot.slane %v1601_v43, %v5374_v19 }
 0x398   : > { %7727 = vst [vmem:[#allocation38_spill] sm:$0xff] %v6140_v28  ;;  %v1547_v51 = vcombine.low %v1496_v12, %v1528_v1  ;;  %v1498_v62 = vcombine.high %v1432_v2, %v1448_v10  ;;  %v1577_v8 = vrot.slane %v1569_v29, %v5374_v19  ;;  %v7729_v2 = vld [vmem:[#allocation30_spill] sm:$0xff]  ;;  %v7752_v28 = vld [vmem:[#allocation21_spill] sm:$0xff] }
 0x399   : > { %1920 = vmax.xlane.f32.xlu0 %v1919_v54  ;;  %v6128_v54 = vpop.permute.xlu1 %2705  ;;  %v1545_v20 = vcombine.low %v1489_v17, %v1521_v32  ;;  %v1546_v0 = vcombine.high %v1489_v17, %v1521_v32  ;;  %v1602_v17 = vcombine.high %v7719_v46, %v7718_v40  ;;  %v1544_v10 = vrot.slane %v1530_v35, %v5379_v31 }
 0x39a   : > { %1923 = vmax.xlane.f32.xlu1 %v1922_v4  ;;  %7720 = vst [vmem:[#allocation42_spill] sm:$0xff] %v6128_v54  ;;  %v1529_v4 = vcombine.low %v1464_v23, %v1480_v39  ;;  %v1505_v23 = vrot.slane %v1497_v3, %v5379_v31  ;;  %v7732_v3 = vld [vmem:[#allocation27_spill] sm:$0xff]  ;;  %v1512_v35 = vrot.slane %v1498_v62, %v5379_v31 }
 0x39b   : > { %v1949_v43 = vsel %vm1825_vm2, %v1546_v0, -inf  ;;  %v6163_v40 = vpop.permute.xlu0 %2719 }
 0x39c   : > { %v1537_v5 = vrot.slane %v1529_v4, %v5379_v31  ;;  %v1952_v4 = vsel %vm1825_vm2, %v1547_v51, -inf  ;;  %7733 = vst [vmem:[#allocation28_spill] sm:$0xff] %v6163_v40 }
 0x39d   : > { %1926 = vmax.xlane.f32.xlu0 %v1925_v49  ;;  %v7724_v49 = vld [vmem:[#allocation36_spill] sm:$0xff] }
 0x39e   : > { %1929 = vmax.xlane.f32.xlu1 %v1928_v41  ;;  %v1585_v9 = vcombine.low %v7724_v49, %v7723_v33  ;;  %v7725_v41 = vld [vmem:[#allocation31_spill] sm:$0xff] }
 0x39f   : > { %v1553_v57 = vcombine.low %v7726_v60, %v7725_v41  ;;  %v1554_v0 = vcombine.high %v7726_v60, %v7725_v41 }
 0x3a0   : > { %v1593_v39 = vrot.slane %v1585_v9, %v5374_v19  ;;  %v7731_v9 = vld [vmem:[#allocation32_spill] sm:$0xff] }
 0x3a1   : > { %1932 = vmax.xlane.f32.xlu0 %v1931_v37  ;;  %v1946_v37 = vsel %vm1825_vm2, %v1545_v20, -inf  ;;  %v1561_v32 = vrot.slane %v1553_v57, %v5374_v19  ;;  %v7730_v20 = vld [vmem:[#allocation17_spill] sm:$0xff]  ;;  %v1570_v57 = vcombine.high %v7722_v45, %v7721_v63  ;;  %v1550_v45 = vcombine.high %v1505_v23, %v1537_v5 }
 0x3a2   : > { %1935 = vmax.xlane.f32.xlu1 %v1934_v59  ;;  %v6146_v59 = vpop.permute.xlu1 %2717  ;;  %v1649_v38 = vcombine.low %v1593_v39, %v1609_v7  ;;  %v1689_v29 = vcombine.low %v7730_v20, %v7729_v2  ;;  %v1690_v46 = vcombine.high %v7730_v20, %v7729_v2  ;;  %v1551_v2 = vcombine.low %v1512_v35, %v1544_v10  ;;  %v6191_v20 = vpop.permute.xlu0 %2723 }
 0x3a3   : > { %7728 = vst [vmem:[#allocation33_spill] sm:$0xff] %v6146_v59  ;;  %v1706_v41 = vcombine.high %v7732_v3, %v7731_v9  ;;  %v1584_v62 = vrot.slane %v1570_v57, %v5374_v19  ;;  %7737 = vst [vmem:[#allocation36_spill] sm:$0xff] %v6191_v20 }
 0x3a5   : > { %1938 = vmax.xlane.f32.xlu0 %v1937_v6  ;;  %v1548_v6 = vcombine.high %v1496_v12, %v1528_v1  ;;  %v1617_v1 = vcombine.low %v1561_v32, %v1577_v8  ;;  %v1586_v12 = vcombine.high %v7724_v49, %v7723_v33  ;;  %v1657_v33 = vrot.slane %v1649_v38, %v5379_v31  ;;  %v7736_v38 = vld [vmem:[#allocation37_spill] sm:$0xff] }
 0x3a6   : > { %1941 = vmax.xlane.f32.xlu1 %v1940_v42  ;;  %v1549_v42 = vcombine.low %v1505_v23, %v1537_v5  ;;  %v6175_v51 = vpop.permute.xlu1 %2721  ;;  %v1697_v49 = vrot.slane %v1689_v29, %v5374_v19  ;;  %v1618_v5 = vcombine.high %v1561_v32, %v1577_v8  ;;  %v1568_v23 = vrot.slane %v1554_v0, %v5374_v19  ;;  %v7739_v0 = vld [vmem:[#allocation35_spill] sm:$0xff] }
 0x3a7   : > { %7734 = vst [vmem:[#allocation40_spill] sm:$0xff] %v6175_v51  ;;  %v1955_v63 = vsel %vm1825_vm2, %v1548_v6, -inf  ;;  %v7735_v6 = vld [vmem:[#allocation41_spill] sm:$0xff]  ;;  %v1961_v29 = vsel %vm1825_vm2, %v1550_v45, -inf  ;;  %v1720_v57 = vrot.slane %v1706_v41, %v5374_v19 }
 0x3a8   : > { %v1634_v45 = vcombine.high %v1568_v23, %v1584_v62 }
 0x3a9   : > { %1944 = vmax.xlane.f32.xlu0 %v1943_v18  ;;  %v1705_v18 = vcombine.low %v7732_v3, %v7731_v9  ;;  %v1552_v9 = vcombine.high %v1512_v35, %v1544_v10  ;;  %v1738_v35 = vcombine.high %v7736_v38, %v7735_v6 }
 0x3aa   : > { %1947 = vmax.xlane.f32.xlu1 %v1946_v37  ;;  %v6173_v37 = vrot.slane %v1602_v17, %v5374_v19  ;;  %v1704_v17 = vrot.slane %v1690_v46, %v5374_v19 }
 0x3ab   : > { %v1713_v60 = vrot.slane %v1705_v18, %v5374_v19  ;;  %v1964_v18 = vsel %vm1825_vm2, %v1551_v2, -inf  ;;  %v1632_v2 = vrot.slane %v1618_v5, %v5379_v31  ;;  %v6215_v5 = vpop.permute.xlu0 %2727 }
 0x3ac   : > { %7741 = vst [vmem:[#allocation18_spill] sm:$0xff] %v6215_v5 }
 0x3ad   : > { %1950 = vmax.xlane.f32.xlu0 %v1949_v43  ;;  %v1650_v43 = vcombine.high %v1593_v39, %v1609_v7  ;;  %v1600_v7 = vrot.slane %v1586_v12, %v5374_v19  ;;  %v1625_v39 = vrot.slane %v1617_v1, %v5379_v31  ;;  %v1753_v46 = vcombine.low %v1697_v49, %v1713_v60  ;;  %v7738_v12 = vld [vmem:[#allocation39_spill] sm:$0xff] }
 0x3ae   : > { %1953 = vmax.xlane.f32.xlu1 %v1952_v4  ;;  %v1958_v4 = vsel %vm1825_vm2, %v1549_v42, -inf  ;;  %v1737_v42 = vcombine.low %v7736_v38, %v7735_v6  ;;  %v1633_v1 = vcombine.low %v1568_v23, %v1584_v62  ;;  %v1722_v10 = vcombine.high %v7739_v0, %v7738_v12  ;;  %v7743_v38 = vld [vmem:[#allocation20_spill] sm:$0xff] }
 0x3af   : > { %v1665_v3 = vcombine.low %v1600_v7, %v6173_v37  ;;  %v1681_v8 = vcombine.low %v1625_v39, %v1657_v33  ;;  %v1664_v32 = vrot.slane %v1650_v43, %v5379_v31  ;;  %v1754_v43 = vcombine.high %v1697_v49, %v1713_v60 }
 0x3b0   : > { %v6208_v41 = vrot.slane %v1737_v42, %v5374_v19  ;;  %v1682_v58 = vcombine.high %v1625_v39, %v1657_v33  ;;  %v1666_v61 = vcombine.high %v1600_v7, %v6173_v37  ;;  %v1641_v49 = vrot.slane %v1633_v1, %v5379_v31  ;;  %v7742_v39 = vld [vmem:[#allocation51_spill] sm:$0xff] }
 0x3b1   : > { %1956 = vmax.xlane.f32.xlu0 %v1955_v63  ;;  %v1721_v63 = vcombine.low %v7739_v0, %v7738_v12  ;;  %v1970_v62 = vsel %vm1825_vm2, %v1681_v8, -inf  ;;  %v1683_v23 = vcombine.low %v1632_v2, %v1664_v32  ;;  %v1769_v12 = vcombine.low %v1704_v17, %v1720_v57 }
 0x3b2   : > { %1959 = vmax.xlane.f32.xlu1 %v1958_v4  ;;  %v6200_v4 = vpop.permute.xlu1 %2725  ;;  %v1770_v0 = vcombine.high %v1704_v17, %v1720_v57  ;;  %v6219_v60 = vrot.slane %v1722_v10, %v5374_v19  ;;  %v6222_v37 = vrot.slane %v1738_v35, %v5374_v19  ;;  %v1648_v33 = vrot.slane %v1634_v45, %v5379_v31 }
 0x3b3   : > { %7740 = vst [vmem:[#allocation31_spill] sm:$0xff] %v6200_v4  ;;  %v1729_v6 = vrot.slane %v1721_v63, %v5374_v19  ;;  %v6226_v7 = vrot.slane %v1753_v46, %v5379_v31  ;;  %v2765_v42 = vcombine.low %v7743_v38, %v7742_v39  ;;  %v1684_v8 = vcombine.high %v1632_v2, %v1664_v32 }
 0x3b4   : > { %v2766_v57 = vcombine.high %v7743_v38, %v7742_v39  ;;  %v1976_v1 = vsel %vm1825_vm2, %v1683_v23, -inf  ;;  %v1680_v46 = vrot.slane %v1666_v61, %v5379_v31  ;;  %v6240_v10 = vrot.slane %v1754_v43, %v5379_v31  ;;  %v7746_v61 = vld [vmem:[#allocation19_spill] sm:$0xff]  ;;  %v7747_v23 = vld [vmem:[#allocation53_spill] sm:$0xff] }
 0x3b5   : > { %1962 = vmax.xlane.f32.xlu0 %v1961_v29  ;;  %v1967_v29 = vsel %vm1825_vm2, %v1552_v9, -inf  ;;  %v1785_v17 = vcombine.low %v1729_v6, %v6208_v41  ;;  %v1786_v45 = vcombine.high %v1729_v6, %v6208_v41  ;;  %v6243_v35 = vrot.slane %v1769_v12, %v5379_v31  ;;  %v7748_v12 = vld [vmem:[#allocation22_spill] sm:$0xff] }
 0x3b6   : > { %1965 = vmax.xlane.f32.xlu1 %v1964_v18  ;;  %v1673_v18 = vrot.slane %v1665_v3, %v5379_v31  ;;  %v6231_v9 = vpop.permute.xlu1 %2729  ;;  %v1973_v3 = vsel %vm1825_vm2, %v1682_v58, -inf  ;;  %v6246_v58 = vrot.slane %v1770_v0, %v5379_v31  ;;  %v1801_v32 = vcombine.low %v6219_v60, %v6222_v37  ;;  %v6261_v0 = vpop.permute.xlu0 %2731 }
 0x3b7   : > { %7744 = vst [vmem:[#allocation30_spill] sm:$0xff] %v6231_v9  ;;  %v6257_v43 = vrot.slane %v2765_v42, %v5374_v19  ;;  %v3037_v6 = vcombine.low %v7748_v12, %v7747_v23  ;;  %7749 = vst [vmem:[#allocation17_spill] sm:$0xff] %v6261_v0  ;;  %v1979_v39 = vsel %vm1825_vm2, %v1684_v8, -inf  ;;  %v1687_v2 = vcombine.low %v1648_v33, %v1680_v46  ;;  %v7753_v8 = vld [vmem:[#allocation55_spill] sm:$0xff] }
 0x3b8   : > { %v1685_v63 = vcombine.low %v1641_v49, %v1673_v18  ;;  %v1686_v38 = vcombine.high %v1641_v49, %v1673_v18  ;;  %v3038_v42 = vcombine.high %v7748_v12, %v7747_v23  ;;  %v7754_v18 = vld [vmem:[#allocation24_spill] sm:$0xff]  ;;  %v1688_v22 = vcombine.high %v1648_v33, %v1680_v46 }
 0x3b9   : > { %1968 = vmax.xlane.f32.xlu0 %v1967_v29  ;;  %v7745_v29 = vld [vmem:[#allocation52_spill] sm:$0xff]  ;;  %v3309_v49 = vcombine.low %v7754_v18, %v7753_v8  ;;  %v3310_v23 = vcombine.high %v7754_v18, %v7753_v8  ;;  %v1800_v18 = vrot.slane %v1786_v45, %v5379_v31 }
 0x3ba   : > { %1971 = vmax.xlane.f32.xlu1 %v1970_v62  ;;  %v2901_v62 = vcombine.low %v7746_v61, %v7745_v29  ;;  %v2902_v41 = vcombine.high %v7746_v61, %v7745_v29  ;;  %v1793_v29 = vrot.slane %v1785_v17, %v5379_v31  ;;  %v7751_v61 = vld [vmem:[#allocation54_spill] sm:$0xff]  ;;  %v7757_v12 = vld [vmem:[#allocation56_spill] sm:$0xff]  ;;  %v6312_v46 = vpop.permute.xlu0 %2743 }
 0x3bb   : > { %v3173_v27 = vcombine.low %v7752_v28, %v7751_v61  ;;  %v3174_v0 = vcombine.high %v7752_v28, %v7751_v61  ;;  %v6290_v28 = vrot.slane %v3037_v6, %v5374_v19  ;;  %v6310_v33 = vrot.slane %v3309_v49, %v5374_v19  ;;  %7761 = vst [vmem:[#allocation35_spill] sm:$0xff] %v6312_v46 }
 0x3bc   : > { %v6283_v17 = vrot.slane %v2902_v41, %v5374_v19  ;;  %v1988_v41 = vsel %vm1825_vm2, %v1687_v2, -inf  ;;  %v1817_v8 = vcombine.low %v6226_v7, %v1793_v29  ;;  %v6315_v2 = vrot.slane %v3310_v23, %v5374_v19 }
 0x3bd   : > { %1974 = vmax.xlane.f32.xlu0 %v1973_v3  ;;  %v6265_v3 = vrot.slane %v2766_v57, %v5374_v19  ;;  %v6277_v57 = vpop.permute.xlu1 %2741  ;;  %v6304_v6 = vrot.slane %v3173_v27, %v5374_v19  ;;  %v2797_v27 = vcombine.low %v5994_v24, %v6146_v59  ;;  %v1991_v49 = vsel %vm1825_vm2, %v1688_v22, -inf }
 0x3be   : > { %1977 = vmax.xlane.f32.xlu1 %v1976_v1  ;;  %v1982_v1 = vsel %vm1825_vm2, %v1685_v63, -inf  ;;  %7755 = vst [vmem:[#allocation27_spill] sm:$0xff] %v6277_v57  ;;  %v6280_v63 = vrot.slane %v2901_v62, %v5374_v19  ;;  %7756 = vst [vmem:[#allocation41_spill] sm:$0xff] %v6283_v17  ;;  %v2813_v62 = vcombine.low %v6070_v14, %v6277_v57 }
 0x3bf   : > { %7750 = vst [vmem:[#allocation32_spill] sm:$0xff] %v6265_v3  ;;  %v6301_v17 = vrot.slane %v3038_v42, %v5374_v19  ;;  %7762 = vst [vmem:[#allocation51_spill] sm:$0xff] %v6315_v2  ;;  %v1819_v14 = vcombine.low %v6240_v10, %v1800_v18 }
 0x3c0   : > { %v6331_v23 = vrot.slane %v2813_v62, %v5374_v19 }
 0x3c1   : > { %1980 = vmax.xlane.f32.xlu0 %v1979_v39  ;;  %v7758_v39 = vld [vmem:[#allocation23_spill] sm:$0xff]  ;;  %7759 = vst [vmem:[#allocation37_spill] sm:$0xff] %v6301_v17  ;;  %v6345_v24 = vpop.permute.xlu1 %2745 }
 0x3c2   : > { %1983 = vmax.xlane.f32.xlu1 %v1982_v1  ;;  %v3445_v9 = vcombine.low %v7758_v39, %v7757_v12  ;;  %v3446_v61 = vcombine.high %v7758_v39, %v7757_v12  ;;  %v1985_v1 = vsel %vm1825_vm2, %v1686_v38, -inf  ;;  %v6307_v12 = vrot.slane %v3174_v0, %v5374_v19  ;;  %v7763_v38 = vld [vmem:[#allocation43_spill] sm:$0xff]  ;;  %7768 = vst [vmem:[#allocation52_spill] sm:$0xff] %v6345_v24 }
 0x3c3   : > { %v2781_v42 = vcombine.low %v7763_v38, %v5919_v36  ;;  %v1818_v39 = vcombine.high %v6226_v7, %v1793_v29  ;;  %v7766_v7 = vld [vmem:[#allocation25_spill] sm:$0xff]  ;;  %v7767_v29 = vld [vmem:[#allocation44_spill] sm:$0xff] }
 0x3c4   : > { %7760 = vst [vmem:[#allocation39_spill] sm:$0xff] %v6307_v12  ;;  %v6318_v45 = vrot.slane %v3445_v9, %v5374_v19  ;;  %v6325_v0 = vrot.slane %v3446_v61, %v5374_v19  ;;  %v2949_v9 = vcombine.low %v6081_v21, %v6312_v46  ;;  %v7765_v61 = vld [vmem:[#allocation26_spill] sm:$0xff]  ;;  %v2917_v62 = vcombine.low %v7767_v29, %v5929_v25 }
 0x3c5   : > { %1986 = vmax.xlane.f32.xlu0 %v1985_v1  ;;  %v1809_v1 = vrot.slane %v1801_v32, %v5379_v31  ;;  %v3581_v57 = vcombine.low %v7765_v61, %v5899_v30  ;;  %v3582_v22 = vcombine.high %v7765_v61, %v5899_v30  ;;  %v3717_v32 = vcombine.low %v7766_v7, %v5913_v11 }
 0x3c6   : > { %1989 = vmax.xlane.f32.xlu1 %v1988_v41  ;;  %7764 = vst [vmem:[#allocation20_spill] sm:$0xff] %v6325_v0  ;;  %v1994_v41 = vsel %vm1825_vm2, %v1817_v8, -inf  ;;  %v3718_v8 = vcombine.high %v7766_v7, %v5913_v11  ;;  %v6353_v21 = vrot.slane %v2797_v27, %v5374_v19  ;;  %v2933_v30 = vcombine.low %v6005_v55, %v6163_v40  ;;  %v6371_v55 = vpop.permute.xlu0 %2747 }
 0x3c7   : > { %v1997_v61 = vsel %vm1825_vm2, %v1818_v39, -inf  ;;  %v1820_v46 = vcombine.high %v6240_v10, %v1800_v18  ;;  %v1821_v59 = vcombine.low %v6243_v35, %v1809_v1  ;;  %v6367_v27 = vrot.slane %v2949_v9, %v5374_v19  ;;  %7770 = vst [vmem:[#allocation19_spill] sm:$0xff] %v6371_v55 }
 0x3c8   : > { %v3085_v7 = vcombine.low %v6091_v13, %v6345_v24  ;;  %v2000_v10 = vsel %vm1825_vm2, %v1819_v14, -inf  ;;  %v6375_v18 = vrot.slane %v3581_v57, %v5374_v19  ;;  %v6384_v39 = vrot.slane %v2917_v62, %v5374_v19 }
 0x3c9   : > { %1992 = vmax.xlane.f32.xlu0 %v1991_v49  ;;  %v6350_v49 = vrot.slane %v2781_v42, %v5374_v19  ;;  %v2861_v42 = vcombine.low %v6353_v21, %v6331_v23  ;;  %v6391_v14 = vrot.slane %v2933_v30, %v5374_v19  ;;  %v3069_v57 = vcombine.low %v6015_v52, %v6175_v51 }
 0x3ca   : > { %1995 = vmax.xlane.f32.xlu1 %v1994_v41  ;;  %v7769_v41 = vcombine.high %v6219_v60, %v6222_v37  ;;  %v6378_v60 = vrot.slane %v3582_v22, %v5374_v19  ;;  %v6381_v37 = vrot.slane %v3717_v32, %v5374_v19  ;;  %v3221_v22 = vcombine.low %v6102_v56, %v6371_v55  ;;  %v6416_v55 = vpop.permute.xlu1 %2749 }
 0x3cb   : > { %v2829_v9 = vcombine.low %v6257_v43, %v6350_v49  ;;  %v2003_v32 = vsel %vm1825_vm2, %v1820_v46, -inf  ;;  %v1822_v62 = vcombine.high %v6243_v35, %v1809_v1  ;;  %v6403_v13 = vrot.slane %v3085_v7, %v5374_v19  ;;  %v7774_v35 = vld [vmem:[#allocation46_spill] sm:$0xff]  ;;  %7775 = vst [vmem:[#allocation54_spill] sm:$0xff] %v6416_v55 }
 0x3cc   : > { %v1816_v11 = vrot.slane %v7769_v41, %v5379_v31  ;;  %7771 = vst [vmem:[#allocation53_spill] sm:$0xff] %v6378_v60  ;;  %v2997_v60 = vcombine.low %v6391_v14, %v6367_v27  ;;  %v2006_v30 = vsel %vm1825_vm2, %v1821_v59, -inf  ;;  %v2869_v24 = vrot.slane %v2861_v42, %v5379_v31 }
 0x3cd   : > { %1998 = vmax.xlane.f32.xlu0 %v1997_v61  ;;  %v7772_v61 = vld [vmem:[#allocation45_spill] sm:$0xff]  ;;  %v6408_v52 = vrot.slane %v3718_v8, %v5374_v19  ;;  %v2782_v46 = vcombine.high %v7763_v38, %v5919_v36  ;;  %v3189_v1 = vcombine.low %v7774_v35, %v5950_v26  ;;  %v3205_v56 = vcombine.low %v6026_v44, %v6191_v20  ;;  %v6437_v44 = vpop.permute.xlu0 %2751 }
 0x3ce   : > { %2001 = vmax.xlane.f32.xlu1 %v2000_v10  ;;  %v3053_v41 = vcombine.low %v7772_v61, %v5938_v34  ;;  %v1823_v10 = vcombine.low %v6246_v58, %v1816_v11  ;;  %v2965_v59 = vcombine.low %v6280_v63, %v6384_v39  ;;  %v6424_v8 = vrot.slane %v3069_v57, %v5374_v19 }
 0x3cf   : > { %7773 = vst [vmem:[#allocation22_spill] sm:$0xff] %v6408_v52  ;;  %v2837_v36 = vrot.slane %v2829_v9, %v5379_v31  ;;  %v6428_v38 = vrot.slane %v3221_v22, %v5374_v19  ;;  %v2009_v7 = vsel %vm1825_vm2, %v1822_v62, -inf  ;;  %7776 = vst [vmem:[#allocation21_spill] sm:$0xff] %v6437_v44  ;;  %v3005_v9 = vrot.slane %v2997_v60, %v5379_v31 }
 0x3d0   : > { %v6421_v42 = vrot.slane %v3053_v41, %v5374_v19  ;;  %v3133_v52 = vcombine.low %v6424_v8, %v6403_v13  ;;  %v3357_v41 = vcombine.low %v6107_v15, %v6416_v55  ;;  %v6441_v22 = vrot.slane %v2782_v46, %v5374_v19  ;;  %v6466_v55 = vpop.permute.xlu1 %2753 }
 0x3d1   : > { %2004 = vmax.xlane.f32.xlu0 %v2003_v32  ;;  %v2012_v32 = vsel %vm1825_vm2, %v1823_v10, -inf  ;;  %v2893_v57 = vcombine.low %v2837_v36, %v2869_v24  ;;  %v2918_v62 = vcombine.high %v7767_v29, %v5929_v25  ;;  %v3341_v60 = vcombine.low %v6031_v50, %v6200_v4  ;;  %7779 = vst [vmem:[#allocation24_spill] sm:$0xff] %v6466_v55 }
 0x3d2   : > { %2007 = vmax.xlane.f32.xlu1 %v2006_v30  ;;  %v1824_v30 = vcombine.high %v6246_v58, %v1816_v11  ;;  %7777 = vst [vmem:[#allocation55_spill] sm:$0xff] %v6441_v22  ;;  %v6446_v58 = vrot.slane %v3189_v1, %v5374_v19  ;;  %v6449_v11 = vrot.slane %v3205_v56, %v5374_v19  ;;  %v7787_v22 = vld [vmem:[#allocation38_spill] sm:$0xff] }
 0x3d3   : > { %v3101_v10 = vcombine.low %v6290_v28, %v6421_v42  ;;  %v2973_v46 = vrot.slane %v2965_v59, %v5379_v31  ;;  %v3493_v29 = vcombine.low %v6120_v48, %v6437_v44  ;;  %v2894_v1 = vcombine.high %v2837_v36, %v2869_v24 }
 0x3d4   : > { %v3269_v25 = vcombine.low %v6449_v11, %v6428_v38  ;;  %v2015_v56 = vsel %vm1825_vm2, %v1824_v30, -inf  ;;  %v3853_v20 = vsel %vm1825_vm2, %v2893_v57, inf  ;;  %v3141_v59 = vrot.slane %v3133_v52, %v5379_v31  ;;  %v7781_v30 = vld [vmem:[#allocation48_spill] sm:$0xff] }
 0x3d5   : > { %2010 = vmax.xlane.f32.xlu0 %v2009_v7  ;;  %v7778_v7 = vld [vmem:[#allocation47_spill] sm:$0xff]  ;;  %v3030_v50 = vcombine.high %v2973_v46, %v3005_v9  ;;  %v6473_v51 = vrot.slane %v2918_v62, %v5374_v19  ;;  %v3461_v24 = vcombine.low %v7781_v30, %v5968_v47  ;;  %v3477_v36 = vcombine.low %v6044_v16, %v6215_v5  ;;  %v6496_v16 = vpop.permute.xlu0 %2755 }
 0x3d6   : > { %2013 = vmax.xlane.f32.xlu1 %v2012_v32  ;;  %v3325_v15 = vcombine.low %v7778_v7, %v5955_v53  ;;  %v6464_v32 = vrot.slane %v3357_v41, %v5374_v19  ;;  %v3237_v41 = vcombine.low %v6304_v6, %v6446_v58  ;;  %v6485_v52 = vrot.slane %v3341_v60, %v5374_v19 }
 0x3d7   : > { %7780 = vst [vmem:[#allocation56_spill] sm:$0xff] %v6473_v51  ;;  %v6489_v62 = vrot.slane %v3493_v29, %v5374_v19  ;;  %v3629_v4 = vcombine.low %v6128_v54, %v6466_v55  ;;  %v3856_v48 = vsel %vm1825_vm2, %v2894_v1, inf  ;;  %7782 = vst [vmem:[#allocation23_spill] sm:$0xff] %v6496_v16  ;;  %v6503_v5 = vrot.slane %v3461_v24, %v5374_v19  ;;  %v7783_v54 = vld [vmem:[#allocation57_spill] sm:$0xff] }
 0x3d8   : > { %v6482_v57 = vrot.slane %v3325_v15, %v5374_v19  ;;  %v3405_v44 = vcombine.low %v6485_v52, %v6464_v32  ;;  %v3880_v15 = vsel %vm1825_vm2, %v3030_v50, inf  ;;  %v7784_v1 = vld [vmem:[#allocation49_spill] sm:$0xff]  ;;  %v3245_v29 = vrot.slane %v3237_v41, %v5379_v31 }
 0x3d9   : > { %2016 = vmax.xlane.f32.xlu0 %v2015_v56  ;;  %v3109_v56 = vrot.slane %v3101_v10, %v5379_v31  ;;  %v3277_v10 = vrot.slane %v3269_v25, %v5379_v31  ;;  %v7785_v25 = vld [vmem:[#allocation30_spill] sm:$0xff]  ;;  %v7786_v55 = vld [vmem:[#allocation65_spill] sm:$0xff]  ;;  %v3765_v3 = vcombine.low %v7787_v22, %v6496_v16  ;;  %v6523_v0 = vrot.slane %v3629_v4, %v5374_v19 }
 0x3da   : > { %3854 = vmin.xlane.f32.xlu1 %v3853_v20  ;;  %v3029_v20 = vcombine.low %v2973_v46, %v3005_v9  ;;  %v3597_v9 = vcombine.low %v7784_v1, %v7783_v54  ;;  %v6508_v46 = vrot.slane %v3477_v36, %v5374_v19  ;;  %v3373_v50 = vcombine.low %v6310_v33, %v6482_v57 }
 0x3db   : > { %v3166_v60 = vcombine.high %v3109_v56, %v3141_v59  ;;  %v3613_v40 = vcombine.low %v7786_v55, %v7785_v25  ;;  %v3413_v55 = vrot.slane %v3405_v44, %v5379_v31  ;;  %v3190_v41 = vcombine.high %v7774_v35, %v5950_v26 }
 0x3dc   : > { %v3541_v24 = vcombine.low %v6508_v46, %v6489_v62  ;;  %v3877_v36 = vsel %vm1825_vm2, %v3029_v20, inf  ;;  %v3509_v25 = vcombine.low %v6318_v45, %v6503_v5  ;;  %v6532_v22 = vrot.slane %v3597_v9, %v5374_v19  ;;  %v7788_v20 = vld [vmem:[#allocation58_spill] sm:$0xff] }
 0x3dd   : > { %3857 = vmin.xlane.f32.xlu0 %v3856_v48  ;;  %v3054_v48 = vcombine.high %v7772_v61, %v5938_v34  ;;  %v3904_v34 = vsel %vm1825_vm2, %v3166_v60, inf  ;;  %v3302_v61 = vcombine.high %v3245_v29, %v3277_v10  ;;  %v6537_v4 = vrot.slane %v3613_v40, %v5374_v19  ;;  %v7790_v60 = vld [vmem:[#allocation17_spill] sm:$0xff] }
 0x3de   : > { %3881 = vmin.xlane.f32.xlu1 %v3880_v15  ;;  %v3165_v15 = vcombine.low %v3109_v56, %v3141_v59  ;;  %v7789_v59 = vld [vmem:[#allocation50_spill] sm:$0xff]  ;;  %v7792_v44 = vlaneseq  ;;  %v3381_v26 = vrot.slane %v3373_v50, %v5379_v31  ;;  %v6546_v9 = vrot.slane %v3765_v3, %v5374_v19 }
 0x3df   : > { %v3733_v56 = vcombine.low %v7789_v59, %v7788_v20  ;;  %v3301_v59 = vcombine.low %v3245_v29, %v3277_v10  ;;  %v3677_v40 = vcombine.low %v6537_v4, %v6523_v0  ;;  %v6556_v35 = vrot.slane %v3054_v48, %v5374_v19 }
 0x3e0   : > { %v2083_v2 = vand.u32 127, %v7792_v44  ;;  %v3901_v12 = vsel %vm1825_vm2, %v3165_v15, inf  ;;  %v3549_v44 = vrot.slane %v3541_v24, %v5379_v31  ;;  %v6559_v3 = vrot.slane %v3190_v41, %v5374_v19  ;;  %v7795_v24 = vld [vmem:[#allocation15_spill] sm:$0xff] }
 0x3e1   : > { %3878 = vmin.xlane.f32.xlu0 %v3877_v36  ;;  %v7791_v36 = vld [vmem:[#allocation66_spill] sm:$0xff]  ;;  %7794 = vst [vmem:[#allocation43_spill] sm:$0xff] %v6556_v35  ;;  %v6562_v10 = vrot.slane %v3733_v56, %v5374_v19  ;;  %v3517_v48 = vrot.slane %v3509_v25, %v5379_v31  ;;  %v3326_v41 = vcombine.high %v7778_v7, %v5955_v53 }
 0x3e2   : > { %3905 = vmin.xlane.f32.xlu1 %v3904_v34  ;;  %v3749_v16 = vcombine.low %v7791_v36, %v7790_v60  ;;  %v3928_v34 = vsel %vm1825_vm2, %v3302_v61, inf  ;;  %v3438_v36 = vcombine.high %v3381_v26, %v3413_v55  ;;  %v6570_v61 = vsub.s32 %v2083_v2, %v7795_v24 }
 0x3e3   : > { %v3437_v60 = vcombine.low %v3381_v26, %v3413_v55  ;;  %v3574_v50 = vcombine.high %v3517_v48, %v3549_v44  ;;  %v3685_v2 = vrot.slane %v3677_v40, %v5379_v31  ;;  %v3781_v7 = vcombine.low %v6381_v37, %v6562_v10 }
 0x3e4   : > { %v6567_v15 = vrot.slane %v3749_v16, %v5374_v19  ;;  %v3952_v16 = vsel %vm1825_vm2, %v3438_v36, inf  ;;  %v2998_v24 = vcombine.high %v6391_v14, %v6367_v27  ;;  %v3573_v25 = vcombine.low %v3517_v48, %v3549_v44 }
 0x3e5   : > { %3902 = vmin.xlane.f32.xlu0 %v3901_v12  ;;  %v3645_v12 = vcombine.low %v6375_v18, %v6532_v22  ;;  %v3949_v53 = vsel %vm1825_vm2, %v3437_v60, inf  ;;  %v3976_v56 = vsel %vm1825_vm2, %v3574_v50, inf  ;;  %v3789_v27 = vrot.slane %v3781_v7, %v5379_v31 }
 0x3e6   : > { %3929 = vmin.xlane.f32.xlu1 %v3928_v34  ;;  %v1828_v29 = vpop.xlane.xlu0 %1827  ;;  %v3925_v34 = vsel %vm1825_vm2, %v3301_v59, inf  ;;  %v3813_v51 = vcombine.low %v6567_v15, %v6546_v9  ;;  %v2862_v14 = vcombine.high %v6353_v21, %v6331_v23  ;;  %v7640_v50 = vmov 0  }
 0x3e7   : > { %v2087_v26 = vrot.slane %v1828_v29, %v6570_v61  ;;  %v3653_v40 = vrot.slane %v3645_v12, %v5379_v31  ;;  %4888 = vset.pattern.permute.xlu1 %v7640_v50  ;;  %4887 = vset.pattern.permute.xlu0 %v7640_v50  ;;  %v3973_v48 = vsel %vm1825_vm2, %v3573_v25, inf  ;;  %v3270_v21 = vcombine.high %v6449_v11, %v6428_v38 }
 0x3e8   : > { %v3821_v29 = vrot.slane %v3813_v51, %v5379_v31  ;;  %v3238_v51 = vcombine.high %v6304_v6, %v6446_v58 }
 0x3e9   : > { %3926 = vmin.xlane.f32.xlu0 %v3925_v34  ;;  %v3710_v35 = vcombine.high %v3653_v40, %v3685_v2 }
 0x3ea   : > { %3953 = vmin.xlane.f32.xlu1 %v3952_v16  ;;  %v1834_v55 = vpop.xlane.xlu0 %1833  ;;  %v3846_v7 = vcombine.high %v3789_v27, %v3821_v29 }
 0x3eb   : > { %v1831_v59 = vpop.xlane.xlu1 %1830  ;;  %v2095_v34 = vrot.slane %v1834_v55, %v6570_v61  ;;  %v6617_v55 = vrot.slane %v3326_v41, %v5374_v19  ;;  %v6630_v41 = vrot.slane %v2862_v14, %v5379_v31  ;;  %v6662_v14 = vrot.slane %v3238_v51, %v5379_v31 }
 0x3ec   : > { %v2091_v36 = vrot.slane %v1831_v59, %v6570_v61  ;;  %v3782_v51 = vcombine.high %v6381_v37, %v6562_v10 }
 0x3ed   : > { %3950 = vmin.xlane.f32.xlu0 %v3949_v53  ;;  %v6610_v53 = vrot.slane %v2998_v24, %v5379_v31  ;;  %v4024_v24 = vsel %vm1825_vm2, %v3846_v7, inf }
 0x3ee   : > { %v2341_v16 = vsel %vm2340_vm3, %v2091_v36, %v2087_v26  ;;  %3977 = vmin.xlane.f32.xlu1 %v3976_v56  ;;  %v1837_v12 = vpop.xlane.xlu0 %1836  ;;  %v3709_v56 = vcombine.low %v3653_v40, %v3685_v2  ;;  %v3134_v2 = vcombine.high %v6424_v8, %v6403_v13  ;;  %v3542_v26 = vcombine.high %v6508_v46, %v6489_v62 }
 0x3ef   : > { %v2343_v59 = vsel %vm2342_vm4, %v2095_v34, %v2341_v16  ;;  %v1840_v17 = vpop.xlane.xlu1 %1839  ;;  %v2099_v60 = vrot.slane %v1837_v12, %v6570_v61  ;;  %v3845_v13 = vcombine.low %v3789_v27, %v3821_v29  ;;  %v7797_v62 = vcombine.high %v7781_v30, %v5968_v47 }
 0x3f0   : > { %v2103_v44 = vrot.slane %v1840_v17, %v6570_v61  ;;  %v4000_v17 = vsel %vm1825_vm2, %v3710_v35, inf  ;;  %v7796_v35 = vcombine.high %v6280_v63, %v6384_v39  ;;  %v3997_v40 = vsel %vm1825_vm2, %v3709_v56, inf }
 0x3f1   : > { %v2345_v23 = vsel %vm2344_vm5, %v2099_v60, %v2343_v59  ;;  %3974 = vmin.xlane.f32.xlu0 %v3973_v48  ;;  %v6641_v39 = vrot.slane %v3270_v21, %v5379_v31  ;;  %v6647_v46 = vrot.slane %v7797_v62, %v5374_v19  ;;  %v7798_v29 = vcombine.high %v6257_v43, %v6350_v49 }
 0x3f2   : > { %v2347_v6 = vsel %vm2346_vm6, %v2103_v44, %v2345_v23  ;;  %4001 = vmin.xlane.f32.xlu1 %v4000_v17  ;;  %v1843_v58 = vpop.xlane.xlu0 %1842  ;;  %v6627_v25 = vrot.slane %v7796_v35, %v5379_v31  ;;  %v3510_v12 = vcombine.high %v6318_v45, %v6503_v5  ;;  %v3406_v27 = vcombine.high %v6485_v52, %v6464_v32 }
 0x3f3   : > { %v2107_v38 = vrot.slane %v1843_v58, %v6570_v61  ;;  %v1846_v11 = vpop.xlane.xlu1 %1845  ;;  %v6654_v59 = vrot.slane %v7798_v29, %v5379_v31  ;;  %v3814_v60 = vcombine.high %v6567_v15, %v6546_v9  ;;  %v4021_v44 = vsel %vm1825_vm2, %v3845_v13, inf  ;;  %v7800_v58 = vld [vmem:[#allocation50_spill] sm:$0xff] }
 0x3f4   : > { %v2111_v36 = vrot.slane %v1846_v11, %v6570_v61  ;;  %v3031_v63 = vcombine.low %v6627_v25, %v6610_v53  ;;  %v6670_v49 = vrot.slane %v3134_v2, %v5379_v31  ;;  %v3303_v32 = vcombine.low %v6662_v14, %v6641_v39 }
 0x3f5   : > { %v2349_v8 = vsel %vm2348_vm7, %v2107_v38, %v2347_v6  ;;  %3998 = vmin.xlane.f32.xlu0 %v3997_v40  ;;  %v2895_v43 = vcombine.low %v6654_v59, %v6630_v41  ;;  %v6679_v52 = vrot.slane %v3542_v26, %v5379_v31  ;;  %v3374_v9 = vcombine.high %v6310_v33, %v6482_v57  ;;  %v7801_v26 = vld [vmem:[#allocation39_spill] sm:$0xff] }
 0x3f6   : > { %v2351_v34 = vsel %vm2350_vm8, %v2111_v36, %v2349_v8  ;;  %4025 = vmin.xlane.f32.xlu1 %v4024_v24  ;;  %v1849_v16 = vpop.xlane.xlu0 %1848  ;;  %v3883_v45 = vsel %vm1825_vm2, %v3031_v63, inf  ;;  %v3598_v15 = vcombine.high %v7784_v1, %v7783_v54  ;;  %v7799_v56 = vcombine.high %v6290_v28, %v6421_v42  ;;  %v7802_v40 = vld [vmem:[#allocation51_spill] sm:$0xff] }
 0x3f7   : > { %v2115_v47 = vrot.slane %v1849_v16, %v6570_v61  ;;  %v1852_v30 = vpop.xlane.xlu1 %1851  ;;  %v3678_v23 = vcombine.high %v6537_v4, %v6523_v0  ;;  %v6698_v54 = vrot.slane %v3510_v12, %v5379_v31  ;;  %v3859_v1 = vsel %vm1825_vm2, %v2895_v43, inf }
 0x3f8   : > { %v6691_v21 = vrot.slane %v7799_v56, %v5379_v31  ;;  %v2119_v17 = vrot.slane %v1852_v30, %v6570_v61  ;;  %v6705_v42 = vrot.slane %v3406_v27, %v5379_v31  ;;  %v3931_v4 = vsel %vm1825_vm2, %v3303_v32, inf  ;;  %v7806_v32 = vld [vmem:[#allocation59_spill] sm:$0xff] }
 0x3f9   : > { %v6673_v5 = vsel %vm2352_vm9, %v2115_v47, %v2351_v34  ;;  %4022 = vmin.xlane.f32.xlu0 %v4021_v44  ;;  %v3575_v10 = vcombine.low %v6698_v54, %v6679_v52  ;;  %v6712_v7 = vrot.slane %v3814_v60, %v5379_v31  ;;  %v3646_v6 = vcombine.high %v6375_v18, %v6532_v22  ;;  %v7803_v34 = vld [vmem:[#allocation20_spill] sm:$0xff] }
 0x3fa   : > { %3884 = vmin.xlane.f32.xlu1 %v3883_v45  ;;  %v1855_v48 = vpop.xlane.xlu0 %1854  ;;  %v3167_v28 = vcombine.low %v6691_v21, %v6670_v49  ;;  %v3734_v2 = vcombine.high %v7800_v58, %v7788_v20  ;;  %v6720_v35 = vrot.slane %v3374_v9, %v5379_v31  ;;  %v3253_v36 = vcombine.low %v7801_v26, %v6559_v3  ;;  %v7805_v45 = vld [vmem:[#allocation33_spill] sm:$0xff]  ;;  %v7814_v58 = vld [vmem:[#allocation35_spill] sm:$0xff] }
 0x3fb   : > { %v2123_v33 = vrot.slane %v1855_v48, %v6570_v61  ;;  %v1858_v57 = vpop.xlane.xlu1 %1857  ;;  %v6728_v18 = vrot.slane %v3782_v51, %v5379_v31  ;;  %v6735_v62 = vrot.slane %v3678_v23, %v5379_v31  ;;  %v3525_v16 = vcombine.low %v7803_v34, %v6647_v46  ;;  %v7807_v51 = vld [vmem:[#allocation28_spill] sm:$0xff] }
 0x3fc   : > { %v2127_v37 = vrot.slane %v1858_v57, %v6570_v61  ;;  %v3907_v20 = vsel %vm1825_vm2, %v3167_v28, inf  ;;  %v3439_v63 = vcombine.low %v6720_v35, %v6705_v42  ;;  %v3979_v12 = vsel %vm1825_vm2, %v3575_v10, inf  ;;  %v7808_v48 = vld [vmem:[#allocation60_spill] sm:$0xff]  ;;  %v7813_v28 = vld [vmem:[#allocation61_spill] sm:$0xff] }
 0x3fd   : > { %v2354_v0 = vsel %vm2340_vm3, %v2123_v33, %v2119_v17  ;;  %3860 = vmin.xlane.f32.xlu0 %v3859_v1  ;;  %v3847_v27 = vcombine.low %v6728_v18, %v6712_v7  ;;  %v6744_v47 = vrot.slane %v3598_v15, %v5374_v19  ;;  %v6747_v30 = vrot.slane %v3734_v2, %v5374_v19  ;;  %v7809_v17 = vld [vmem:[#allocation41_spill] sm:$0xff]  ;;  %v7810_v33 = vld [vmem:[#allocation56_spill] sm:$0xff] }
 0x3fe   : > { %v2355_v38 = vsel %vm2342_vm4, %v2127_v37, %v2354_v0  ;;  %3932 = vmin.xlane.f32.xlu1 %v3931_v4  ;;  %v1861_v11 = vpop.xlane.xlu0 %1860  ;;  %v6751_v43 = vrot.slane %v3646_v6, %v5379_v31  ;;  %v2798_v9 = vcombine.high %v7806_v32, %v7805_v45  ;;  %v2934_v56 = vcombine.high %v7808_v48, %v7807_v51  ;;  %v7812_v1 = vld [vmem:[#allocation40_spill] sm:$0xff]  ;;  %v7820_v45 = vld [vmem:[#allocation18_spill] sm:$0xff] }
 0x3ff   : > { %v2131_v8 = vrot.slane %v1861_v11, %v6570_v61  ;;  %v1864_v24 = vpop.xlane.xlu1 %1863  ;;  %7804 = vst [vmem:[#allocation26_spill] sm:$0xff] %v6744_v47  ;;  %v7811_v57 = vcombine.low %v7809_v17, %v7810_v33  ;;  %v3070_v0 = vcombine.high %v7813_v28, %v7812_v1  ;;  %v3955_v10 = vsel %vm1825_vm2, %v3439_v63, inf  ;;  %v7815_v2 = vld [vmem:[#allocation68_spill] sm:$0xff] }
 0x400   : > { %v2135_v22 = vrot.slane %v1864_v24, %v6570_v61  ;;  %v3711_v6 = vcombine.low %v6751_v43, %v6735_v62  ;;  %v3032_v24 = vcombine.high %v6627_v25, %v6610_v53  ;;  %v7821_v32 = vld [vmem:[#allocation64_spill] sm:$0xff]  ;;  %v7822_v53 = vld [vmem:[#allocation27_spill] sm:$0xff] }
 0x401   : > { %v2356_v29 = vsel %vm2344_vm5, %v2131_v8, %v2355_v38  ;;  %3908 = vmin.xlane.f32.xlu0 %v3907_v20  ;;  %v6762_v37 = vrot.slane %v7811_v57, %v5379_v31  ;;  %v2950_v38 = vcombine.high %v7815_v2, %v7814_v58  ;;  %v4027_v8 = vsel %vm1825_vm2, %v3847_v27, inf  ;;  %v7817_v20 = vld [vmem:[#allocation62_spill] sm:$0xff]  ;;  %v7823_v25 = vld [vmem:[#allocation67_spill] sm:$0xff]  ;;  %v7825_v58 = vld [vmem:[#allocation29_spill] sm:$0xff] }
 0x402   : > { %v2357_v60 = vsel %vm2346_vm6, %v2135_v22, %v2356_v29  ;;  %3980 = vmin.xlane.f32.xlu1 %v3979_v12  ;;  %v1867_v44 = vpop.xlane.xlu0 %1866  ;;  %v7816_v22 = vld [vmem:[#allocation36_spill] sm:$0xff]  ;;  %v7818_v12 = vld [vmem:[#allocation31_spill] sm:$0xff]  ;;  %v3478_v51 = vcombine.high %v7821_v32, %v7820_v45  ;;  %v6787_v27 = vrot.slane %v2934_v56, %v5374_v19  ;;  %v6793_v28 = vrot.slane %v3070_v0, %v5374_v19  ;;  %v7829_v45 = vld [vmem:[#allocation69_spill] sm:$0xff] }
 0x403   : > { %v2139_v23 = vrot.slane %v1867_v44, %v6570_v61  ;;  %v1870_v15 = vpop.xlane.xlu1 %1869  ;;  %v3206_v29 = vcombine.high %v7817_v20, %v7816_v22  ;;  %v7819_v44 = vld [vmem:[#allocation63_spill] sm:$0xff]  ;;  %v4003_v2 = vsel %vm1825_vm2, %v3711_v6, inf  ;;  %v6801_v56 = vrot.slane %v2950_v38, %v5374_v19  ;;  %v7827_v38 = vld [vmem:[#allocation34_spill] sm:$0xff] }
 0x404   : > { %v2143_v4 = vrot.slane %v1870_v15, %v6570_v61  ;;  %v3342_v63 = vcombine.high %v7819_v44, %v7818_v12  ;;  %v3304_v0 = vcombine.high %v6662_v14, %v6641_v39 }
 0x405   : > { %v2358_v11 = vsel %vm2348_vm7, %v2139_v23, %v2357_v60  ;;  %3956 = vmin.xlane.f32.xlu0 %v3955_v10  ;;  %v6784_v60 = vrot.slane %v2798_v9, %v5374_v19  ;;  %v2814_v23 = vcombine.high %v7823_v25, %v7822_v53  ;;  %v7824_v10 = vld [vmem:[#allocation19_spill] sm:$0xff]  ;;  %v2896_v9 = vcombine.high %v6654_v59, %v6630_v41  ;;  %v7826_v59 = vld [vmem:[#allocation52_spill] sm:$0xff] }
 0x406   : > { %v2359_v48 = vsel %vm2350_vm8, %v2143_v4, %v2358_v11  ;;  %4028 = vmin.xlane.f32.xlu1 %v4027_v8  ;;  %v1873_v15 = vpop.xlane.xlu0 %1872  ;;  %v3222_v4 = vcombine.high %v7825_v58, %v7824_v10  ;;  %v3886_v8 = vsel %vm1825_vm2, %v3032_v24, inf  ;;  %v6810_v22 = vrot.slane %v3206_v29, %v5374_v19  ;;  %v7828_v24 = vld [vmem:[#allocation21_spill] sm:$0xff] }
 0x407   : > { %v2147_v57 = vrot.slane %v1873_v15, %v6570_v61  ;;  %v1876_v1 = vpop.xlane.xlu1 %1875  ;;  %v6813_v6 = vrot.slane %v3342_v63, %v5374_v19  ;;  %v6816_v41 = vrot.slane %v3478_v51, %v5374_v19  ;;  %v3086_v20 = vcombine.high %v7827_v38, %v7826_v59  ;;  %v7831_v10 = vld [vmem:[#allocation65_spill] sm:$0xff] }
 0x408   : > { %v6821_v44 = vrot.slane %v2814_v23, %v5374_v19  ;;  %v3494_v39 = vcombine.high %v7829_v45, %v7828_v24  ;;  %v2151_v14 = vrot.slane %v1876_v1, %v6570_v61  ;;  %v6828_v32 = vrot.slane %v3222_v4, %v5374_v19  ;;  %v7830_v1 = vld [vmem:[#allocation30_spill] sm:$0xff] }
 0x409   : > { %v6804_v11 = vsel %vm2352_vm9, %v2147_v57, %v2359_v48  ;;  %4004 = vmin.xlane.f32.xlu0 %v4003_v2  ;;  %v3862_v48 = vsel %vm1825_vm2, %v2896_v9, inf  ;;  %v3168_v15 = vcombine.high %v6691_v21, %v6670_v49  ;;  %v3013_v53 = vcombine.low %v6787_v27, %v6801_v56  ;;  %v7832_v2 = vld [vmem:[#allocation54_spill] sm:$0xff]  ;;  %v7833_v9 = vld [vmem:[#allocation16_spill] sm:$0xff] }
 0x40a   : > { %3887 = vmin.xlane.f32.xlu1 %v3886_v8  ;;  %v1879_v12 = vpop.xlane.xlu0 %1878  ;;  %v3934_v23 = vsel %vm1825_vm2, %v3304_v0, inf  ;;  %v3576_v57 = vcombine.high %v6698_v54, %v6679_v52  ;;  %v3614_v58 = vcombine.high %v7831_v10, %v7830_v1  ;;  %v6843_v4 = vrot.slane %v3086_v20, %v5374_v19  ;;  %v7834_v52 = vld [vmem:[#allocation23_spill] sm:$0xff]  ;;  %v7835_v54 = vld [vmem:[#allocation38_spill] sm:$0xff] }
 0x40b   : > { %v2155_v29 = vrot.slane %v1879_v12, %v6570_v61  ;;  %v1882_v63 = vpop.xlane.xlu1 %1881  ;;  %v3358_v49 = vcombine.high %v7833_v9, %v7832_v2  ;;  %v2877_v59 = vcombine.low %v6784_v60, %v6821_v44  ;;  %v6851_v0 = vrot.slane %v3494_v39, %v5374_v19 }
 0x40c   : > { %v2159_v51 = vrot.slane %v1882_v63, %v6570_v61  ;;  %v3766_v38 = vcombine.high %v7835_v54, %v7834_v52  ;;  %v3285_v24 = vcombine.low %v6810_v22, %v6828_v32  ;;  %v3982_v39 = vsel %vm1825_vm2, %v3576_v57, inf }
 0x40d   : > { %v2361_v25 = vsel %vm2340_vm3, %v2155_v29, %v2151_v14  ;;  %3863 = vmin.xlane.f32.xlu0 %v3862_v48  ;;  %v3910_v14 = vsel %vm1825_vm2, %v3168_v15, inf  ;;  %v3440_v29 = vcombine.high %v6720_v35, %v6705_v42  ;;  %v6867_v48 = vrot.slane %v3013_v53, %v5379_v31 }
 0x40e   : > { %v2362_v21 = vsel %vm2342_vm4, %v2159_v51, %v2361_v25  ;;  %3935 = vmin.xlane.f32.xlu1 %v3934_v23  ;;  %v1885_v8 = vpop.xlane.xlu0 %1884  ;;  %v3848_v51 = vcombine.high %v6728_v18, %v6712_v7  ;;  %v7836_v25 = vld [vmem:[#allocation17_spill] sm:$0xff]  ;;  %v7837_v23 = vld [vmem:[#allocation66_spill] sm:$0xff]  ;;  %v3149_v15 = vcombine.low %v6793_v28, %v6843_v4  ;;  %v6874_v10 = vrot.slane %v3358_v49, %v5374_v19  ;;  %v7838_v7 = vld [vmem:[#allocation24_spill] sm:$0xff] }
 0x40f   : > { %v2163_v12 = vrot.slane %v1885_v8, %v6570_v61  ;;  %v1888_v20 = vpop.xlane.xlu1 %1887  ;;  %v3750_v1 = vcombine.high %v7837_v23, %v7836_v25  ;;  %v3557_v57 = vcombine.low %v6816_v41, %v6851_v0  ;;  %v7839_v18 = vld [vmem:[#allocation42_spill] sm:$0xff]  ;;  %v6882_v2 = vrot.slane %v3766_v38, %v5374_v19 }
 0x410   : > { %v2167_v45 = vrot.slane %v1888_v20, %v6570_v61  ;;  %v3630_v53 = vcombine.high %v7839_v18, %v7838_v7  ;;  %v3958_v49 = vsel %vm1825_vm2, %v3440_v29, inf  ;;  %v3712_v52 = vcombine.high %v6751_v43, %v6735_v62  ;;  %v7840_v43 = vld [vmem:[#allocation32_spill] sm:$0xff] }
 0x411   : > { %v2363_v63 = vsel %vm2344_vm5, %v2163_v12, %v2362_v21  ;;  %3911 = vmin.xlane.f32.xlu0 %v3910_v14  ;;  %v6890_v54 = vrot.slane %v2877_v59, %v5379_v31  ;;  %v4030_v20 = vsel %vm1825_vm2, %v3848_v51, inf  ;;  %v3033_v38 = vcombine.low %v6762_v37, %v6867_v48  ;;  %v7841_v59 = vld [vmem:[#allocation55_spill] sm:$0xff] }
 0x412   : > { %v2364_v42 = vsel %vm2346_vm6, %v2167_v45, %v2363_v63  ;;  %3983 = vmin.xlane.f32.xlu1 %v3982_v39  ;;  %v1891_v35 = vpop.xlane.xlu0 %1890  ;;  %v6897_v45 = vrot.slane %v3285_v24, %v5379_v31  ;;  %v6900_v14 = vrot.slane %v3750_v1, %v5374_v19  ;;  %v7842_v63 = vcombine.low %v7840_v43, %v7841_v59 }
 0x413   : > { %v2171_v9 = vrot.slane %v1891_v35, %v6570_v61  ;;  %v1894_v21 = vpop.xlane.xlu1 %1893  ;;  %v6913_v51 = vrot.slane %v3253_v36, %v5379_v31  ;;  %v6916_v24 = vrot.slane %v3614_v58, %v5374_v19  ;;  %v3421_v25 = vcombine.low %v6813_v6, %v6874_v10 }
 0x414   : > { %v2175_v8 = vrot.slane %v1894_v21, %v6570_v61  ;;  %v6907_v39 = vrot.slane %v7842_v63, %v5379_v31  ;;  %v6921_v23 = vrot.slane %v3630_v53, %v5374_v19  ;;  %v3829_v35 = vcombine.low %v6900_v14, %v6882_v2 }
 0x415   : > { %v2365_v12 = vsel %vm2348_vm7, %v2171_v9, %v2364_v42  ;;  %3959 = vmin.xlane.f32.xlu0 %v3958_v49  ;;  %7843 = vst [vmem:[#allocation25_spill] sm:$0xff] %v6916_v24  ;;  %v4006_v7 = vsel %vm1825_vm2, %v3712_v52, inf  ;;  %v6930_v58 = vrot.slane %v3149_v15, %v5379_v31  ;;  %v3889_v53 = vsel %vm1825_vm2, %v3033_v38, inf  ;;  %v7847_v38 = vld [vmem:[#allocation43_spill] sm:$0xff] }
 0x416   : > { %v2366_v29 = vsel %vm2350_vm8, %v2175_v8, %v2365_v12  ;;  %4031 = vmin.xlane.f32.xlu1 %v4030_v20  ;;  %v1897_v62 = vpop.xlane.xlu0 %1896  ;;  %7844 = vst [vmem:[#allocation44_spill] sm:$0xff] %v6921_v23  ;;  %v2897_v36 = vcombine.low %v6907_v39, %v6890_v54  ;;  %v3305_v9 = vcombine.low %v6913_v51, %v6897_v45  ;;  %v7845_v8 = vld [vmem:[#allocation22_spill] sm:$0xff]  ;;  %v7846_v20 = vld [vmem:[#allocation37_spill] sm:$0xff] }
 0x417   : > { %v2179_v1 = vrot.slane %v1897_v62, %v6570_v61  ;;  %v1900_v42 = vpop.xlane.xlu1 %1899  ;;  %v6939_v21 = vrot.slane %v3557_v57, %v5379_v31  ;;  %v3797_v49 = vcombine.low %v7845_v8, %v6747_v30  ;;  %v3693_v57 = vcombine.low %v6916_v24, %v6921_v23 }
 0x418   : > { %v2183_v63 = vrot.slane %v1900_v42, %v6570_v61  ;;  %v3865_v15 = vsel %vm1825_vm2, %v2897_v36, inf  ;;  %v6968_v52 = vrot.slane %v3421_v25, %v5379_v31  ;;  %v7850_v25 = vcombine.low %v7802_v40, %v6617_v55 }
 0x419   : > { %v6933_v18 = vsel %vm2352_vm9, %v2179_v1, %v2366_v29  ;;  %4007 = vmin.xlane.f32.xlu0 %v4006_v7  ;;  %v7848_v29 = vcombine.low %v7846_v20, %v7847_v38 }
 0x41a   : > { %3890 = vmin.xlane.f32.xlu1 %v3889_v53  ;;  %v1903_v12 = vpop.xlane.xlu0 %1902  ;;  %v6961_v53 = vrot.slane %v3525_v16, %v5379_v31  ;;  %v6975_v16 = vrot.slane %v3829_v35, %v5379_v31 }
 0x41b   : > { %v6951_v62 = vrot.slane %v7848_v29, %v5379_v31  ;;  %v2187_v1 = vrot.slane %v1903_v12, %v6570_v61  ;;  %v1906_v7 = vpop.xlane.xlu1 %1905  ;;  %v3937_v12 = vsel %vm1825_vm2, %v3305_v9, inf }
 0x41c   : > { %v2191_v50 = vrot.slane %v1906_v7, %v6570_v61  ;;  %v3577_v13 = vcombine.low %v6961_v53, %v6939_v21  ;;  %v7849_v7 = vld [vmem:[#allocation53_spill] sm:$0xff] }
 0x41d   : > { %v3169_v29 = vcombine.low %v6951_v62, %v6930_v58  ;;  %v2368_v42 = vsel %vm2340_vm3, %v2187_v1, %v2183_v63  ;;  %3866 = vmin.xlane.f32.xlu0 %v3865_v15  ;;  %v3661_v36 = vcombine.low %v7849_v7, %v6744_v47  ;;  %v6984_v15 = vrot.slane %v7850_v25, %v5379_v31 }
 0x41e   : > { %v2369_v24 = vsel %vm2342_vm4, %v2191_v50, %v2368_v42  ;;  %3938 = vmin.xlane.f32.xlu1 %v3937_v12  ;;  %v1909_v23 = vpop.xlane.xlu0 %1908  ;;  %v6988_v1 = vrot.slane %v3797_v49, %v5379_v31  ;;  %v6995_v42 = vrot.slane %v3693_v57, %v5379_v31  ;;  %v3985_v25 = vsel %vm1825_vm2, %v3577_v13, inf }
 0x41f   : > { %v2195_v9 = vrot.slane %v1909_v23, %v6570_v61  ;;  %v1912_v63 = vpop.xlane.xlu1 %1911  ;;  %v3913_v7 = vsel %vm1825_vm2, %v3169_v29, inf  ;;  %v3441_v50 = vcombine.low %v6984_v15, %v6968_v52  ;;  %v7003_v29 = vrot.slane %v3661_v36, %v5379_v31 }
 0x420   : > { %v2199_v35 = vrot.slane %v1912_v63, %v6570_v61  ;;  %v3849_v23 = vcombine.low %v6988_v1, %v6975_v16 }
 0x421   : > { %v2370_v12 = vsel %vm2344_vm5, %v2195_v9, %v2369_v24  ;;  %3914 = vmin.xlane.f32.xlu0 %v3913_v7  ;;  %v3961_v24 = vsel %vm1825_vm2, %v3441_v50, inf  ;;  %v3713_v13 = vcombine.low %v7003_v29, %v6995_v42  ;;  %v2898_v50 = vcombine.high %v6907_v39, %v6890_v54 }
 0x422   : > { %v2371_v49 = vsel %vm2346_vm6, %v2199_v35, %v2370_v12  ;;  %3986 = vmin.xlane.f32.xlu1 %v3985_v25  ;;  %v1915_v63 = vpop.xlane.xlu0 %1914  ;;  %v4033_v9 = vsel %vm1825_vm2, %v3849_v23, inf  ;;  %v3034_v35 = vcombine.high %v6762_v37, %v6867_v48  ;;  %v3306_v37 = vcombine.high %v6913_v51, %v6897_v45 }
 0x423   : > { %v2203_v47 = vrot.slane %v1915_v63, %v6570_v61  ;;  %v1918_v8 = vpop.xlane.xlu1 %1917  ;;  %v4009_v63 = vsel %vm1825_vm2, %v3713_v13, inf  ;;  %v3868_v54 = vsel %vm1825_vm2, %v2898_v50, inf  ;;  %v3170_v39 = vcombine.high %v6951_v62, %v6930_v58 }
 0x424   : > { %v2207_v57 = vrot.slane %v1918_v8, %v6570_v61  ;;  %v3892_v23 = vsel %vm1825_vm2, %v3034_v35, inf  ;;  %v7851_v13 = vcombine.low %v6673_v5, %v6933_v18  ;;  %v3014_v58 = vcombine.high %v6787_v27, %v6801_v56 }
 0x425   : > { %v2372_v7 = vsel %vm2348_vm7, %v2203_v47, %v2371_v49  ;;  %3962 = vmin.xlane.f32.xlu0 %v3961_v24  ;;  %v3940_v62 = vsel %vm1825_vm2, %v3306_v37, inf  ;;  %v3578_v35 = vcombine.high %v6961_v53, %v6939_v21  ;;  %v2982_v56 = vcombine.high %v7809_v17, %v7810_v33 }
 0x426   : > { %v2373_v36 = vsel %vm2350_vm8, %v2207_v57, %v2372_v7  ;;  %4034 = vmin.xlane.f32.xlu1 %v4033_v9  ;;  %v1921_v12 = vpop.xlane.xlu0 %1920  ;;  %v7038_v7 = vrot.slane %v7851_v13, %v5374_v19  ;;  %v2878_v21 = vcombine.high %v6784_v60, %v6821_v44  ;;  %v3916_v53 = vsel %vm1825_vm2, %v3170_v39, inf  ;;  %v7853_v13 = vld [vmem:[#allocation22_spill] sm:$0xff] }
 0x427   : > { %v2211_v25 = vrot.slane %v1921_v12, %v6570_v61  ;;  %v7016_v8 = vpop.xlane.xlu1 %1923  ;;  %v3442_v50 = vcombine.high %v6984_v15, %v6968_v52  ;;  %v7082_v17 = vrot.slane %v3014_v58, %v5379_v31  ;;  %v2846_v33 = vcombine.high %v7840_v43, %v7841_v59 }
 0x428   : > { %v3254_v44 = vcombine.high %v7801_v26, %v6559_v3  ;;  %v3714_v15 = vcombine.high %v7003_v29, %v6995_v42  ;;  %v7101_v43 = vrot.slane %v2878_v21, %v5379_v31  ;;  %v3558_v59 = vcombine.high %v6816_v41, %v6851_v0 }
 0x429   : > { %v2374_v47 = vsel %vm2352_vm9, %v2211_v25, %v2373_v36  ;;  %4010 = vmin.xlane.f32.xlu0 %v4009_v63  ;;  %v3286_v63 = vcombine.high %v6810_v22, %v6828_v32  ;;  %v7093_v22 = vrot.slane %v2982_v56, %v5379_v31  ;;  %v3150_v32 = vcombine.high %v6793_v28, %v6843_v4 }
 0x42a   : > { %v2427_v48 = vcombine.low %v6804_v11, %v2374_v47  ;;  %v2428_v49 = vcombine.high %v6804_v11, %v2374_v47  ;;  %3893 = vmin.xlane.f32.xlu1 %v3892_v23  ;;  %v7027_v57 = vpop.xlane.xlu0 %1926  ;;  %v7852_v11 = vcombine.high %v6673_v5, %v6933_v18  ;;  %v3988_v47 = vsel %vm1825_vm2, %v3578_v35, inf }
 0x42b   : > { %v7029_v24 = vpop.xlane.xlu1 %1929  ;;  %v3850_v23 = vcombine.high %v6988_v1, %v6975_v16  ;;  %v3964_v16 = vsel %vm1825_vm2, %v3442_v50, inf  ;;  %v3035_v26 = vcombine.low %v7093_v22, %v7082_v17  ;;  %v7109_v1 = vrot.slane %v3286_v63, %v5379_v31  ;;  %v7856_v63 = vld [vmem:[#allocation26_spill] sm:$0xff] }
 0x42c   : > { %v7044_v45 = vrot.slane %v7852_v11, %v5374_v19  ;;  %v7047_v51 = vrot.slane %v2427_v48, %v5374_v19  ;;  %v7050_v9 = vrot.slane %v2428_v49, %v5374_v19  ;;  %v3118_v28 = vcombine.high %v7846_v20, %v7847_v38 }
 0x42d   : > { %3869 = vmin.xlane.f32.xlu0 %v3868_v54  ;;  %v4036_v3 = vsel %vm1825_vm2, %v3850_v23, inf  ;;  %v2860_v42 = vrot.slane %v2846_v33, %v5379_v31  ;;  %v3526_v41 = vcombine.high %v7803_v34, %v6647_v46  ;;  %v3268_v29 = vrot.slane %v3254_v44, %v5379_v31 }
 0x42e   : > { %v2475_v5 = vcombine.low %v7038_v7, %v7047_v51  ;;  %v2476_v18 = vcombine.high %v7038_v7, %v7047_v51  ;;  %v2491_v36 = vcombine.low %v7044_v45, %v7050_v9  ;;  %v2492_v12 = vcombine.high %v7044_v45, %v7050_v9  ;;  %3941 = vmin.xlane.f32.xlu1 %v3940_v62  ;;  %v7065_v27 = vpop.xlane.xlu0 %1932  ;;  %v7855_v62 = vld [vmem:[#allocation25_spill] sm:$0xff] }
 0x42f   : > { %v7069_v25 = vpop.xlane.xlu1 %1935  ;;  %v3422_v37 = vcombine.high %v6813_v6, %v6874_v10  ;;  %v4012_v48 = vsel %vm1825_vm2, %v3714_v15, inf  ;;  %v2899_v49 = vcombine.low %v2860_v42, %v7101_v43  ;;  %v3164_v20 = vrot.slane %v3150_v32, %v5379_v31 }
 0x430   : > { %v3830_v38 = vcombine.high %v6900_v14, %v6882_v2  ;;  %v3895_v54 = vsel %vm1825_vm2, %v3035_v26, inf  ;;  %v3307_v46 = vcombine.low %v3268_v29, %v7109_v1  ;;  %v3572_v34 = vrot.slane %v3558_v59, %v5379_v31  ;;  %v7854_v14 = vld [vmem:[#allocation44_spill] sm:$0xff] }
 0x431   : > { %3917 = vmin.xlane.f32.xlu0 %v3916_v53  ;;  %v3390_v39 = vcombine.high %v7802_v40, %v6617_v55  ;;  %v3132_v10 = vrot.slane %v3118_v28, %v5379_v31  ;;  %v3798_v11 = vcombine.high %v7853_v13, %v6747_v30  ;;  %v3540_v2 = vrot.slane %v3526_v41, %v5379_v31  ;;  %v7857_v30 = vld [vmem:[#allocation53_spill] sm:$0xff] }
 0x432   : > { %3989 = vmin.xlane.f32.xlu1 %v3988_v47  ;;  %v7086_v60 = vpop.xlane.xlu0 %1938  ;;  %v3694_v35 = vcombine.high %v7855_v62, %v7854_v14  ;;  %v3871_v56 = vsel %vm1825_vm2, %v2899_v49, inf  ;;  %v3436_v55 = vrot.slane %v3422_v37, %v5379_v31  ;;  %v3943_v40 = vsel %vm1825_vm2, %v3307_v46, inf }
 0x433   : > { %v7090_v52 = vpop.xlane.xlu1 %1941  ;;  %v3171_v21 = vcombine.low %v3132_v10, %v3164_v20  ;;  %v3579_v53 = vcombine.low %v3540_v2, %v3572_v34  ;;  %v3844_v50 = vrot.slane %v3830_v38, %v5379_v31  ;;  %v3662_v47 = vcombine.high %v7857_v30, %v7856_v63 }
 0x434   : > { %v3404_v33 = vrot.slane %v3390_v39, %v5379_v31  ;;  %v3812_v32 = vrot.slane %v3798_v11, %v5379_v31  ;;  %v3708_v59 = vrot.slane %v3694_v35, %v5379_v31  ;;  %v2900_v11 = vcombine.high %v2860_v42, %v7101_v43 }
 0x435   : > { %3965 = vmin.xlane.f32.xlu0 %v3964_v16  ;;  %v3919_v16 = vsel %vm1825_vm2, %v3171_v21, inf  ;;  %v3676_v41 = vrot.slane %v3662_v47, %v5379_v31  ;;  %v3308_v62 = vcombine.high %v3268_v29, %v7109_v1  ;;  %v2499_v51 = vrot.slane %v2491_v36, %v5379_v31 }
 0x436   : > { %4037 = vmin.xlane.f32.xlu1 %v4036_v3  ;;  %v7113_v4 = vpop.xlane.xlu0 %1944  ;;  %v3443_v15 = vcombine.low %v3404_v33, %v3436_v55  ;;  %v3991_v3 = vsel %vm1825_vm2, %v3579_v53, inf  ;;  %v3851_v26 = vcombine.low %v3812_v32, %v3844_v50  ;;  %v3874_v21 = vsel %vm1825_vm2, %v2900_v11, inf }
 0x437   : > { %v7118_v0 = vpop.xlane.xlu1 %1947  ;;  %v3715_v49 = vcombine.low %v3676_v41, %v3708_v59  ;;  %v3444_v42 = vcombine.high %v3404_v33, %v3436_v55  ;;  %v3852_v1 = vcombine.high %v3812_v32, %v3844_v50  ;;  %v2506_v36 = vrot.slane %v2492_v12, %v5379_v31 }
 0x438   : > { %v4039_v38 = vsel %vm1825_vm2, %v3851_v26, inf  ;;  %v2223_v26 = vrot.slane %v7029_v24, %v6570_v61 }
 0x439   : > { %4013 = vmin.xlane.f32.xlu0 %v4012_v48  ;;  %v3967_v48 = vsel %vm1825_vm2, %v3443_v15, inf  ;;  %v4015_v13 = vsel %vm1825_vm2, %v3715_v49, inf  ;;  %v2215_v15 = vrot.slane %v7016_v8, %v6570_v61  ;;  %v2227_v8 = vrot.slane %v7065_v27, %v6570_v61 }
 0x43a   : > { %3896 = vmin.xlane.f32.xlu1 %v3895_v54  ;;  %v7133_v6 = vpop.xlane.xlu0 %1950  ;;  %v3036_v54 = vcombine.high %v7093_v22, %v7082_v17  ;;  %v3946_v17 = vsel %vm1825_vm2, %v3308_v62, inf  ;;  %v3580_v22 = vcombine.high %v3540_v2, %v3572_v34  ;;  %v4042_v34 = vsel %vm1825_vm2, %v3852_v1, inf }
 0x43b   : > { %v7138_v58 = vpop.xlane.xlu1 %1953  ;;  %v2219_v2 = vrot.slane %v7027_v57, %v6570_v61  ;;  %v2251_v50 = vrot.slane %v7133_v6, %v6570_v61  ;;  %v2247_v57 = vrot.slane %v7118_v0, %v6570_v61 }
 0x43c   : > { %v3898_v14 = vsel %vm1825_vm2, %v3036_v54, inf  ;;  %v3994_v30 = vsel %vm1825_vm2, %v3580_v22, inf  ;;  %v2255_v49 = vrot.slane %v7138_v58, %v6570_v61  ;;  %v2235_v22 = vrot.slane %v7086_v60, %v6570_v61 }
 0x43d   : > { %3872 = vmin.xlane.f32.xlu0 %v3871_v56  ;;  %v2382_v54 = vsel %vm2340_vm3, %v2251_v50, %v2247_v57  ;;  %v2243_v50 = vrot.slane %v7113_v4, %v6570_v61 }
 0x43e   : > { %3944 = vmin.xlane.f32.xlu1 %v3943_v40  ;;  %v7149_v23 = vpop.xlane.xlu0 %1956  ;;  %v3172_v40 = vcombine.high %v3132_v10, %v3164_v20  ;;  %v3970_v20 = vsel %vm1825_vm2, %v3444_v42, inf  ;;  %v3716_v10 = vcombine.high %v3676_v41, %v3708_v59 }
 0x43f   : > { %v7152_v44 = vpop.xlane.xlu1 %1959  ;;  %v2259_v24 = vrot.slane %v7149_v23, %v6570_v61 }
 0x440   : > { %v3922_v43 = vsel %vm1825_vm2, %v3172_v40, inf  ;;  %v2383_v40 = vsel %vm2342_vm4, %v2255_v49, %v2382_v54 }
 0x441   : > { %3920 = vmin.xlane.f32.xlu0 %v3919_v16 }
 0x442   : > { %3992 = vmin.xlane.f32.xlu1 %v3991_v3  ;;  %v7158_v28 = vpop.xlane.xlu0 %1962  ;;  %v4018_v3 = vsel %vm1825_vm2, %v3716_v10, inf }
 0x443   : > { %v7161_v37 = vpop.xlane.xlu1 %1965  ;;  %v2267_v60 = vrot.slane %v7158_v28, %v6570_v61 }
 0x445   : > { %3968 = vmin.xlane.f32.xlu0 %v3967_v48  ;;  %v2375_v48 = vsel %vm2340_vm3, %v2219_v2, %v2215_v15 }
 0x446   : > { %4040 = vmin.xlane.f32.xlu1 %v4039_v38  ;;  %v7167_v46 = vpop.xlane.xlu0 %1968  ;;  %v2376_v62 = vsel %vm2342_vm4, %v2223_v26, %v2375_v48 }
 0x447   : > { %v1972_v39 = vpop.xlane.xlu1 %1971  ;;  %v2377_v23 = vsel %vm2344_vm5, %v2227_v8, %v2376_v62  ;;  %v2275_v4 = vrot.slane %v7167_v46, %v6570_v61 }
 0x448   : > { %v2279_v33 = vrot.slane %v1972_v39, %v6570_v61 }
 0x449   : > { %4016 = vmin.xlane.f32.xlu0 %v4015_v13 }
 0x44a   : > { %3899 = vmin.xlane.f32.xlu1 %v3898_v14  ;;  %v1975_v35 = vpop.xlane.xlu0 %1974 }
 0x44b   : > { %v1978_v56 = vpop.xlane.xlu1 %1977  ;;  %v2283_v16 = vrot.slane %v1975_v35, %v6570_v61 }
 0x44c   : > { %v2287_v59 = vrot.slane %v1978_v56, %v6570_v61 }
 0x44d   : > { %3875 = vmin.xlane.f32.xlu0 %v3874_v21  ;;  %v2389_v41 = vsel %vm2340_vm3, %v2283_v16, %v2279_v33  ;;  %v2231_v21 = vrot.slane %v7069_v25, %v6570_v61 }
 0x44e   : > { %3947 = vmin.xlane.f32.xlu1 %v3946_v17  ;;  %v1981_v53 = vpop.xlane.xlu0 %1980  ;;  %v2390_v11 = vsel %vm2342_vm4, %v2287_v59, %v2389_v41 }
 0x44f   : > { %v1984_v63 = vpop.xlane.xlu1 %1983  ;;  %v2291_v6 = vrot.slane %v1981_v53, %v6570_v61  ;;  %v2384_v53 = vsel %vm2344_vm5, %v2259_v24, %v2383_v40  ;;  %v2378_v16 = vsel %vm2346_vm6, %v2231_v21, %v2377_v23 }
 0x450   : > { %v2295_v14 = vrot.slane %v1984_v63, %v6570_v61  ;;  %v2263_v63 = vrot.slane %v7152_v44, %v6570_v61 }
 0x451   : > { %3923 = vmin.xlane.f32.xlu0 %v3922_v43  ;;  %v2391_v58 = vsel %vm2344_vm5, %v2291_v6, %v2390_v11 }
 0x452   : > { %3995 = vmin.xlane.f32.xlu1 %v3994_v30  ;;  %v1987_v29 = vpop.xlane.xlu0 %1986  ;;  %v2392_v30 = vsel %vm2346_vm6, %v2295_v14, %v2391_v58  ;;  %v2385_v33 = vsel %vm2346_vm6, %v2263_v63, %v2384_v53 }
 0x453   : > { %v7177_v47 = vpop.xlane.xlu1 %1989  ;;  %v2299_v35 = vrot.slane %v1987_v29, %v6570_v61  ;;  %v2386_v26 = vsel %vm2348_vm7, %v2267_v60, %v2385_v33  ;;  %v2490_v60 = vrot.slane %v2476_v18, %v5379_v31 }
 0x454   : > { %v2303_v1 = vrot.slane %v7177_v47, %v6570_v61  ;;  %v2379_v47 = vsel %vm2348_vm7, %v2235_v22, %v2378_v16 }
 0x455   : > { %3971 = vmin.xlane.f32.xlu0 %v3970_v20  ;;  %v2393_v20 = vsel %vm2348_vm7, %v2299_v35, %v2392_v30 }
 0x456   : > { %4043 = vmin.xlane.f32.xlu1 %v4042_v34  ;;  %v1993_v55 = vpop.xlane.xlu0 %1992  ;;  %v2239_v34 = vrot.slane %v7090_v52, %v6570_v61  ;;  %v2394_v15 = vsel %vm2350_vm8, %v2303_v1, %v2393_v20 }
 0x457   : > { %v1996_v32 = vpop.xlane.xlu1 %1995  ;;  %v2307_v10 = vrot.slane %v1993_v55, %v6570_v61  ;;  %v2271_v55 = vrot.slane %v7161_v37, %v6570_v61 }
 0x458   : > { %v2311_v0 = vrot.slane %v1996_v32, %v6570_v61  ;;  %v2380_v6 = vsel %vm2350_vm8, %v2239_v34, %v2379_v47 }
 0x459   : > { %4019 = vmin.xlane.f32.xlu0 %v4018_v3  ;;  %v4600_v3 = vld [vmem:[#allocation7] sm:$0xff]  ;;  %v2395_v57 = vsel %vm2352_vm9, %v2307_v10, %v2394_v15  ;;  %v2381_v37 = vsel %vm2352_vm9, %v2243_v50, %v2380_v6  ;;  %v7280_v10 = vrot.slane %v2475_v5, %v5379_v31 }
 0x45a   : > { %v1999_v38 = vpop.xlane.xlu0 %1998  ;;  %vm4602_vm10 = vcmp.ge.f32.partialorder %v4600_v3, 0.0  ;;  %v2443_v54 = vcombine.low %v2381_v37, %v2395_v57  ;;  %v2444_v24 = vcombine.high %v2381_v37, %v2395_v57 }
 0x45b   : > { %v2315_v39 = vrot.slane %v1999_v38, %v6570_v61  ;;  %v2002_v13 = vpop.xlane.xlu1 %2001  ;;  %v2387_v38 = vsel %vm2350_vm8, %v2271_v55, %v2386_v26 }
 0x45c   : > { %v2319_v27 = vrot.slane %v2002_v13, %v6570_v61  ;;  %v2451_v21 = vrot.slane %v2443_v54, %v5374_v19  ;;  %v2458_v40 = vrot.slane %v2444_v24, %v5374_v19 }
 0x45d   : > { %v2396_v56 = vsel %vm2340_vm3, %v2315_v39, %v2311_v0  ;;  %v4601_v0 = vld [vmem:[#allocation8] sm:$0xff]  ;;  %v2388_v39 = vsel %vm2352_vm9, %v2275_v4, %v2387_v38 }
 0x45e   : > { %v2005_v17 = vpop.xlane.xlu0 %2004  ;;  %v2397_v25 = vsel %vm2342_vm4, %v2319_v27, %v2396_v56  ;;  %v7858_v56 = vmov 0  }
 0x45f   : > { %v2323_v43 = vrot.slane %v2005_v17, %v6570_v61  ;;  %v2008_v42 = vpop.xlane.xlu1 %2007  ;;  %v4603_v23 = vsel %vm4602_vm10, 1, %v7858_v56 }
 0x460   : > { %v2327_v29 = vrot.slane %v2008_v42, %v6570_v61 }
 0x461   : > { %v2398_v44 = vsel %vm2344_vm5, %v2323_v43, %v2397_v25 }
 0x462   : > { %v2011_v2 = vpop.xlane.xlu0 %2010  ;;  %v2399_v59 = vsel %vm2346_vm6, %v2327_v29, %v2398_v44 }
 0x463   : > { %v2331_v28 = vrot.slane %v2011_v2, %v6570_v61  ;;  %v2014_v32 = vpop.xlane.xlu1 %2013 }
 0x464   : > { %v2335_v52 = vrot.slane %v2014_v32, %v6570_v61 }
 0x465   : > { %v2400_v41 = vsel %vm2348_vm7, %v2331_v28, %v2399_v59 }
 0x466   : > { %v2017_v48 = vpop.xlane.xlu0 %2016  ;;  %v2401_v46 = vsel %vm2350_vm8, %v2335_v52, %v2400_v41 }
 0x467   : > { %v2339_v8 = vrot.slane %v2017_v48, %v6570_v61  ;;  %v3855_v49 = vpop.xlane.xlu1 %3854  ;;  %4611 = vperm.xlu1 %4888, %v4600_v3  }
 0x468   : > { %v4112_v62 = vrot.slane %v3855_v49, %v6570_v61 }
 0x469   : > { %v2402_v13 = vsel %vm2352_vm9, %v2339_v8, %v2401_v46 }
 0x46a   : > { %v2459_v11 = vcombine.low %v2388_v39, %v2402_v13  ;;  %v2460_v14 = vcombine.high %v2388_v39, %v2402_v13  ;;  %v3858_v27 = vpop.xlane.xlu0 %3857 }
 0x46b   : > { %v4116_v58 = vrot.slane %v3858_v27, %v6570_v61  ;;  %v3882_v35 = vpop.xlane.xlu1 %3881  ;;  %4617 = vperm.xlu1 %4888, %v4601_v0  }
 0x46c   : > { %v2467_v17 = vrot.slane %v2459_v11, %v5374_v19  ;;  %v2474_v22 = vrot.slane %v2460_v14, %v5374_v19  ;;  %v4148_v1 = vrot.slane %v3882_v35, %v6570_v61 }
 0x46d   : > { %v7267_v53 = vsel %vm2340_vm3, %v4116_v58, %v4112_v62 }
 0x46e   : > { %v2507_v63 = vcombine.low %v2451_v21, %v2467_v17  ;;  %v2508_v43 = vcombine.high %v2451_v21, %v2467_v17  ;;  %v2523_v42 = vcombine.low %v2458_v40, %v2474_v22  ;;  %v3879_v30 = vpop.xlane.xlu0 %3878  ;;  %v2524_v34 = vcombine.high %v2458_v40, %v2474_v22 }
 0x46f   : > { %v4144_v25 = vrot.slane %v3879_v30, %v6570_v61  ;;  %v3906_v29 = vpop.xlane.xlu1 %3905  ;;  %4605 = vperm.xlu0 %4887, %v4603_v23  }
 0x470   : > { %v2522_v20 = vrot.slane %v2508_v43, %v5379_v31  ;;  %v7283_v44 = vrot.slane %v2507_v63, %v5379_v31  ;;  %v2531_v18 = vrot.slane %v2523_v42, %v5379_v31  ;;  %v4180_v33 = vrot.slane %v3906_v29, %v6570_v61 }
 0x471   : > { %v4372_v16 = vsel %vm2340_vm3, %v4148_v1, %v4144_v25  ;;  %v2538_v52 = vrot.slane %v2524_v34, %v5379_v31 }
 0x472   : > { %v3903_v2 = vpop.xlane.xlu0 %3902  ;;  %v2541_v47 = vcombine.low %v2490_v60, %v2522_v20  ;;  %v2540_v50 = vcombine.high %v7280_v10, %v7283_v44  ;;  %v2539_v5 = vcombine.low %v7280_v10, %v7283_v44  ;;  %v2544_v15 = vcombine.high %v2499_v51, %v2531_v18 }
 0x473   : > { %v4176_v28 = vrot.slane %v3903_v2, %v6570_v61  ;;  %v3930_v7 = vpop.xlane.xlu1 %3929  ;;  %v2542_v59 = vcombine.high %v2490_v60, %v2522_v20  ;;  %v2546_v6 = vcombine.high %v2506_v36, %v2538_v52  ;;  %v2543_v48 = vcombine.low %v2499_v51, %v2531_v18 }
 0x474   : > { %2552 = vrot.lane.b32.xlu0 %v2541_v47, %s5115_s14  ;;  %2548 = vrot.lane.b32.xlu1 %v2540_v50, %s5116_s8  ;;  %v4212_v3 = vrot.slane %v3930_v7, %v6570_v61  ;;  %v2545_v45 = vcombine.low %v2506_v36, %v2538_v52 }
 0x475   : > { %v4379_v32 = vsel %vm2340_vm3, %v4180_v33, %v4176_v28 }
 0x476   : > { %v3927_v55 = vpop.xlane.xlu0 %3926 }
 0x477   : > { %v4208_v26 = vrot.slane %v3927_v55, %v6570_v61  ;;  %v3954_v4 = vpop.xlane.xlu1 %3953 }
 0x478   : > { %2564 = vrot.lane.b32.xlu0 %v2544_v15, %s5117_s9  ;;  %2556 = vrot.lane.b32.xlu1 %v2542_v59, %s5118_s27  ;;  %v4244_v37 = vrot.slane %v3954_v4, %v6570_v61 }
 0x479   : > { %v4386_v57 = vsel %vm2340_vm3, %v4212_v3, %v4208_v26 }
 0x47a   : > { %v3951_v41 = vpop.xlane.xlu0 %3950 }
 0x47b   : > { %v4240_v8 = vrot.slane %v3951_v41, %v6570_v61  ;;  %v3978_v49 = vpop.xlane.xlu1 %3977 }
 0x47c   : > { %2572 = vrot.lane.b32.xlu0 %v2546_v6, %s5119_s23  ;;  %2560 = vrot.lane.b32.xlu1 %v2543_v48, %s5101_s25  ;;  %v4276_v9 = vrot.slane %v3978_v49, %v6570_v61 }
 0x47d   : > { %v4393_v38 = vsel %vm2340_vm3, %v4244_v37, %v4240_v8 }
 0x47e   : > { %v3975_v54 = vpop.xlane.xlu0 %3974 }
 0x47f   : > { %v4272_v12 = vrot.slane %v3975_v54, %v6570_v61  ;;  %v4002_v24 = vpop.xlane.xlu1 %4001 }
 0x480   : > { %2568 = vrot.lane.b32.xlu1 %v2545_v45, %s5120_s24  ;;  %v4308_v39 = vrot.slane %v4002_v24, %v6570_v61 }
 0x481   : > { %v4400_v46 = vsel %vm2340_vm3, %v4276_v9, %v4272_v12 }
 0x482   : > { %v3999_v0 = vpop.xlane.xlu0 %3998 }
 0x483   : > { %v4304_v13 = vrot.slane %v3999_v0, %v6570_v61  ;;  %v4026_v11 = vpop.xlane.xlu1 %4025 }
 0x484   : > { %v4340_v62 = vrot.slane %v4026_v11, %v6570_v61 }
 0x485   : > { %v4407_v14 = vsel %vm2340_vm3, %v4308_v39, %v4304_v13 }
 0x486   : > { %v4023_v27 = vpop.xlane.xlu0 %4022 }
 0x487   : > { %v4336_v58 = vrot.slane %v4023_v27, %v6570_v61  ;;  %v3885_v35 = vpop.xlane.xlu1 %3884 }
 0x488   : > { %v4152_v56 = vrot.slane %v3885_v35, %v6570_v61 }
 0x489   : > { %v4414_v23 = vsel %vm2340_vm3, %v4340_v62, %v4336_v58  ;;  %vm4621_vm3 = vcmask 523264  }
 0x48a   : > { %v4373_v21 = vsel %vm2342_vm4, %v4152_v56, %v4372_v16  ;;  %v3861_v40 = vpop.xlane.xlu0 %3860 }
 0x48b   : > { %v4120_v17 = vrot.slane %v3861_v40, %v6570_v61  ;;  %v3933_v22 = vpop.xlane.xlu1 %3932 }
 0x48c   : > { %v4216_v63 = vrot.slane %v3933_v22, %v6570_v61 }
 0x48d   : > { %v4366_v43 = vsel %vm2342_vm4, %v4120_v17, %v7267_v53 }
 0x48e   : > { %v4387_v42 = vsel %vm2342_vm4, %v4216_v63, %v4386_v57  ;;  %v3909_v30 = vpop.xlane.xlu0 %3908 }
 0x48f   : > { %v4184_v1 = vrot.slane %v3909_v30, %v6570_v61  ;;  %v3981_v25 = vpop.xlane.xlu1 %3980 }
 0x490   : > { %v4280_v29 = vrot.slane %v3981_v25, %v6570_v61 }
 0x491   : > { %v4380_v60 = vsel %vm2342_vm4, %v4184_v1, %v4379_v32 }
 0x492   : > { %v4401_v20 = vsel %vm2342_vm4, %v4280_v29, %v4400_v46  ;;  %v3957_v16 = vpop.xlane.xlu0 %3956 }
 0x493   : > { %v4248_v34 = vrot.slane %v3957_v16, %v6570_v61  ;;  %v4029_v2 = vpop.xlane.xlu1 %4028 }
 0x494   : > { %v4344_v47 = vrot.slane %v4029_v2, %v6570_v61 }
 0x495   : > { %v4394_v53 = vsel %vm2342_vm4, %v4248_v34, %v4393_v38 }
 0x496   : > { %v4415_v50 = vsel %vm2342_vm4, %v4344_v47, %v4414_v23  ;;  %v4005_v18 = vpop.xlane.xlu0 %4004 }
 0x497   : > { %v4312_v33 = vrot.slane %v4005_v18, %v6570_v61  ;;  %v3888_v28 = vpop.xlane.xlu1 %3887 }
 0x498   : > { %v4156_v7 = vrot.slane %v3888_v28, %v6570_v61 }
 0x499   : > { %v4408_v51 = vsel %vm2342_vm4, %v4312_v33, %v4407_v14 }
 0x49a   : > { %v4374_v32 = vsel %vm2344_vm5, %v4156_v7, %v4373_v21  ;;  %v3864_v55 = vpop.xlane.xlu0 %3863 }
 0x49b   : > { %v4124_v15 = vrot.slane %v3864_v55, %v6570_v61  ;;  %v3936_v59 = vpop.xlane.xlu1 %3935 }
 0x49c   : > { %v4220_v52 = vrot.slane %v3936_v59, %v6570_v61 }
 0x49d   : > { %v4367_v3 = vsel %vm2344_vm5, %v4124_v15, %v4366_v43 }
 0x49e   : > { %v4388_v26 = vsel %vm2344_vm5, %v4220_v52, %v4387_v42  ;;  %v3912_v4 = vpop.xlane.xlu0 %3911 }
 0x49f   : > { %v4188_v36 = vrot.slane %v3912_v4, %v6570_v61  ;;  %v3984_v57 = vpop.xlane.xlu1 %3983 }
 0x4a0   : > { %v4284_v41 = vrot.slane %v3984_v57, %v6570_v61 }
 0x4a1   : > { %v4381_v6 = vsel %vm2344_vm5, %v4188_v36, %v4380_v60 }
 0x4a2   : > { %v4402_v48 = vsel %vm2344_vm5, %v4284_v41, %v4401_v20  ;;  %v3960_v37 = vpop.xlane.xlu0 %3959 }
 0x4a3   : > { %v4252_v8 = vrot.slane %v3960_v37, %v6570_v61  ;;  %v4032_v49 = vpop.xlane.xlu1 %4031 }
 0x4a4   : > { %v4348_v42 = vrot.slane %v4032_v49, %v6570_v61 }
 0x4a5   : > { %v4395_v38 = vsel %vm2344_vm5, %v4252_v8, %v4394_v53 }
 0x4a6   : > { %v4008_v54 = vpop.xlane.xlu0 %4007  ;;  %v4416_v47 = vsel %vm2344_vm5, %v4348_v42, %v4415_v50 }
 0x4a7   : > { %v3891_v45 = vpop.xlane.xlu1 %3890  ;;  %v4316_v1 = vrot.slane %v4008_v54, %v6570_v61 }
 0x4a8   : > { %v4160_v25 = vrot.slane %v3891_v45, %v6570_v61 }
 0x4a9   : > { %v4409_v7 = vsel %vm2344_vm5, %v4316_v1, %v4408_v51 }
 0x4aa   : > { %v3867_v9 = vpop.xlane.xlu0 %3866  ;;  %v4375_v55 = vsel %vm2346_vm6, %v4160_v25, %v4374_v32 }
 0x4ab   : > { %v3939_v12 = vpop.xlane.xlu1 %3938  ;;  %v4128_v29 = vrot.slane %v3867_v9, %v6570_v61 }
 0x4ac   : > { %v4224_v60 = vrot.slane %v3939_v12, %v6570_v61 }
 0x4ad   : > { %v4368_v15 = vsel %vm2346_vm6, %v4128_v29, %v4367_v3 }
 0x4ae   : > { %v3915_v24 = vpop.xlane.xlu0 %3914  ;;  %v4389_v59 = vsel %vm2346_vm6, %v4224_v60, %v4388_v26 }
 0x4af   : > { %v3987_v46 = vpop.xlane.xlu1 %3986  ;;  %v4192_v20 = vrot.slane %v3915_v24, %v6570_v61 }
 0x4b0   : > { %v4288_v16 = vrot.slane %v3987_v46, %v6570_v61 }
 0x4b1   : > { %v4382_v52 = vsel %vm2346_vm6, %v4192_v20, %v4381_v6 }
 0x4b2   : > { %v3963_v0 = vpop.xlane.xlu0 %3962  ;;  %v4403_v57 = vsel %vm2346_vm6, %v4288_v16, %v4402_v48 }
 0x4b3   : > { %v4035_v39 = vpop.xlane.xlu1 %4034  ;;  %v4256_v34 = vrot.slane %v3963_v0, %v6570_v61 }
 0x4b4   : > { %v4352_v53 = vrot.slane %v4035_v39, %v6570_v61 }
 0x4b5   : > { %v4396_v41 = vsel %vm2346_vm6, %v4256_v34, %v4395_v38 }
 0x4b6   : > { %v4011_v13 = vpop.xlane.xlu0 %4010  ;;  %v4417_v3 = vsel %vm2346_vm6, %v4352_v53, %v4416_v47 }
 0x4b7   : > { %v3894_v11 = vpop.xlane.xlu1 %3893  ;;  %v4320_v4 = vrot.slane %v4011_v13, %v6570_v61 }
 0x4b8   : > { %v4164_v18 = vrot.slane %v3894_v11, %v6570_v61 }
 0x4b9   : > { %v4410_v9 = vsel %vm2346_vm6, %v4320_v4, %v4409_v7 }
 0x4ba   : > { %v3870_v14 = vpop.xlane.xlu0 %3869  ;;  %v4376_v26 = vsel %vm2348_vm7, %v4164_v18, %v4375_v55 }
 0x4bb   : > { %v3942_v27 = vpop.xlane.xlu1 %3941  ;;  %v4132_v51 = vrot.slane %v3870_v14, %v6570_v61 }
 0x4bc   : > { %v4228_v33 = vrot.slane %v3942_v27, %v6570_v61 }
 0x4bd   : > { %v4369_v0 = vsel %vm2348_vm7, %v4132_v51, %v4368_v15 }
 0x4be   : > { %v3918_v62 = vpop.xlane.xlu0 %3917  ;;  %v4390_v6 = vsel %vm2348_vm7, %v4228_v33, %v4389_v59 }
 0x4bf   : > { %v7354_v58 = vpop.xlane.xlu1 %3989  ;;  %v4196_v8 = vrot.slane %v3918_v62, %v6570_v61 }
 0x4c0   : > { %v4292_v54 = vrot.slane %v7354_v58, %v6570_v61 }
 0x4c1   : > { %v4383_v27 = vsel %vm2348_vm7, %v4196_v8, %v4382_v52 }
 0x4c2   : > { %v7356_v35 = vpop.xlane.xlu0 %3965 }
 0x4c3   : > { %v7358_v56 = vpop.xlane.xlu1 %4037 }
 0x4c4   : > { %v4356_v39 = vrot.slane %v7358_v56, %v6570_v61 }
 0x4c6   : > { %v7360_v23 = vpop.xlane.xlu0 %4013  ;;  %v4418_v20 = vsel %vm2348_vm7, %v4356_v39, %v4417_v3 }
 0x4c7   : > { %v3897_v21 = vpop.xlane.xlu1 %3896  ;;  %v4324_v16 = vrot.slane %v7360_v23, %v6570_v61 }
 0x4c8   : > { %v4168_v50 = vrot.slane %v3897_v21, %v6570_v61 }
 0x4c9   : > { %v4411_v51 = vsel %vm2348_vm7, %v4324_v16, %v4410_v9 }
 0x4ca   : > { %v3873_v40 = vpop.xlane.xlu0 %3872  ;;  %v4377_v12 = vsel %vm2350_vm8, %v4168_v50, %v4376_v26 }
 0x4cb   : > { %v3945_v17 = vpop.xlane.xlu1 %3944  ;;  %v4136_v48 = vrot.slane %v3873_v40, %v6570_v61 }
 0x4cc   : > { %v4232_v36 = vrot.slane %v3945_v17, %v6570_v61  ;;  %v4404_v17 = vsel %vm2348_vm7, %v4292_v54, %v4403_v57 }
 0x4cd   : > { %v4370_v42 = vsel %vm2350_vm8, %v4136_v48, %v4369_v0 }
 0x4ce   : > { %v3921_v22 = vpop.xlane.xlu0 %3920  ;;  %v4391_v24 = vsel %vm2350_vm8, %v4232_v36, %v4390_v6 }
 0x4cf   : > { %v7362_v63 = vpop.xlane.xlu1 %3992  ;;  %v4200_v38 = vrot.slane %v3921_v22, %v6570_v61  ;;  %v4260_v22 = vrot.slane %v7356_v35, %v6570_v61 }
 0x4d0   : > { %v4296_v1 = vrot.slane %v7362_v63, %v6570_v61 }
 0x4d1   : > { %v4384_v56 = vsel %vm2350_vm8, %v4200_v38, %v4383_v27  ;;  %v4397_v15 = vsel %vm2348_vm7, %v4260_v22, %v4396_v41 }
 0x4d2   : > { %v7364_v43 = vpop.xlane.xlu0 %3968 }
 0x4d3   : > { %v7367_v30 = vpop.xlane.xlu1 %4040  ;;  %v4264_v53 = vrot.slane %v7364_v43, %v6570_v61  ;;  %v4405_v43 = vsel %vm2350_vm8, %v4296_v1, %v4404_v17 }
 0x4d4   : > { %v4360_v25 = vrot.slane %v7367_v30, %v6570_v61 }
 0x4d5   : > { %v4398_v41 = vsel %vm2350_vm8, %v4264_v53, %v4397_v15 }
 0x4d6   : > { %v7376_v2 = vpop.xlane.xlu0 %4016  ;;  %v4419_v59 = vsel %vm2350_vm8, %v4360_v25, %v4418_v20 }
 0x4d7   : > { %v3900_v28 = vpop.xlane.xlu1 %3899  ;;  %v4328_v63 = vrot.slane %v7376_v2, %v6570_v61 }
 0x4d8   : > { %v4172_v32 = vrot.slane %v3900_v28, %v6570_v61 }
 0x4d9   : > { %v4412_v26 = vsel %vm2350_vm8, %v4328_v63, %v4411_v51 }
 0x4da   : > { %v3876_v37 = vpop.xlane.xlu0 %3875  ;;  %v4378_v13 = vsel %vm2352_vm9, %v4172_v32, %v4377_v12 }
 0x4db   : > { %v3948_v49 = vpop.xlane.xlu1 %3947  ;;  %v4140_v46 = vrot.slane %v3876_v37, %v6570_v61 }
 0x4dc   : > { %v4236_v45 = vrot.slane %v3948_v49, %v6570_v61 }
 0x4dd   : > { %v4371_v29 = vsel %vm2352_vm9, %v4140_v46, %v4370_v42 }
 0x4de   : > { %v4392_v11 = vsel %vm2352_vm9, %v4236_v45, %v4391_v24  ;;  %v3924_v14 = vpop.xlane.xlu0 %3923 }
 0x4df   : > { %v4445_v62 = vcombine.low %v4378_v13, %v4392_v11  ;;  %v4446_v58 = vcombine.high %v4378_v13, %v4392_v11  ;;  %v4204_v21 = vrot.slane %v3924_v14, %v6570_v61  ;;  %v3996_v40 = vpop.xlane.xlu1 %3995 }
 0x4e0   : > { %v4300_v18 = vrot.slane %v3996_v40, %v6570_v61 }
 0x4e1   : > { %v4385_v60 = vsel %vm2352_vm9, %v4204_v21, %v4384_v56  ;;  %v4453_v30 = vrot.slane %v4445_v62, %v5374_v19  ;;  %v4460_v28 = vrot.slane %v4446_v58, %v5374_v19 }
 0x4e2   : > { %v4429_v35 = vcombine.low %v4371_v29, %v4385_v60  ;;  %v4430_v34 = vcombine.high %v4371_v29, %v4385_v60  ;;  %v3972_v47 = vpop.xlane.xlu0 %3971  ;;  %v4406_v32 = vsel %vm2352_vm9, %v4300_v18, %v4405_v43 }
 0x4e3   : > { %v4044_v33 = vpop.xlane.xlu1 %4043  ;;  %v4268_v2 = vrot.slane %v3972_v47, %v6570_v61 }
 0x4e4   : > { %v4437_v7 = vrot.slane %v4429_v35, %v5374_v19  ;;  %v4444_v23 = vrot.slane %v4430_v34, %v5374_v19  ;;  %v4364_v55 = vrot.slane %v4044_v33, %v6570_v61 }
 0x4e5   : > { %v4399_v49 = vsel %vm2352_vm9, %v4268_v2, %v4398_v41 }
 0x4e6   : > { %v4493_v52 = vcombine.low %v4437_v7, %v4453_v30  ;;  %v4494_v4 = vcombine.high %v4437_v7, %v4453_v30  ;;  %v4509_v50 = vcombine.low %v4444_v23, %v4460_v28  ;;  %v4510_v36 = vcombine.high %v4444_v23, %v4460_v28  ;;  %v4020_v57 = vpop.xlane.xlu0 %4019 }
 0x4e7   : > { %v4420_v37 = vsel %vm2352_vm9, %v4364_v55, %v4419_v59  ;;  %v4332_v3 = vrot.slane %v4020_v57, %v6570_v61 }
 0x4e8   : > { %v4477_v6 = vcombine.low %v4406_v32, %v4420_v37  ;;  %v4478_v8 = vcombine.high %v4406_v32, %v4420_v37  ;;  %v4524_v13 = vrot.slane %v4510_v36, %v5379_v31  ;;  %v4501_v11 = vrot.slane %v4493_v52, %v5379_v31 }
 0x4e9   : > { %v4413_v54 = vsel %vm2352_vm9, %v4332_v3, %v4412_v26  ;;  %v4508_v62 = vrot.slane %v4494_v4, %v5379_v31  ;;  %v4517_v21 = vrot.slane %v4509_v50, %v5379_v31 }
 0x4ea   : > { %v4461_v48 = vcombine.low %v4399_v49, %v4413_v54  ;;  %v4462_v38 = vcombine.high %v4399_v49, %v4413_v54  ;;  %v4485_v45 = vrot.slane %v4477_v6, %v5374_v19  ;;  %v4492_v9 = vrot.slane %v4478_v8, %v5374_v19 }
 0x4ec   : > { %v4469_v12 = vrot.slane %v4461_v48, %v5374_v19  ;;  %v4476_v61 = vrot.slane %v4462_v38, %v5374_v19 }
 0x4ee   : > { %v4525_v24 = vcombine.low %v4469_v12, %v4485_v45  ;;  %v4526_v46 = vcombine.high %v4469_v12, %v4485_v45  ;;  %v4541_v0 = vcombine.low %v4476_v61, %v4492_v9  ;;  %v4542_v39 = vcombine.high %v4476_v61, %v4492_v9  ;;  %v4606_v47 = vpop.permute.xlu0 %4605 }
 0x4ef   : > { %vm4607_vm2 = vcmp.eq.s32.totalorder %v4606_v47, 1 }
 0x4f0   : > { %v4556_v14 = vrot.slane %v4542_v39, %v5379_v31  ;;  %v4533_v27 = vrot.slane %v4525_v24, %v5379_v31  ;;  %v4540_v58 = vrot.slane %v4526_v46, %v5379_v31  ;;  %v4549_v19 = vrot.slane %v4541_v0, %v5379_v31  ;;  %v4612_v31 = vpop.permute.xlu1 %4611 }
 0x4f2   : > { %v4564_v40 = vcombine.high %v4524_v13, %v4556_v14  ;;  %v4558_v17 = vcombine.high %v4501_v11, %v4533_v27  ;;  %v4559_v22 = vcombine.low %v4508_v62, %v4540_v58  ;;  %v4560_v42 = vcombine.high %v4508_v62, %v4540_v58  ;;  %v2553_v30 = vpop.permute.xlu0 %2552 }
 0x4f3   : > { %v4561_v56 = vcombine.low %v4517_v21, %v4549_v19  ;;  %v4562_v1 = vcombine.high %v4517_v21, %v4549_v19  ;;  %v4563_v25 = vcombine.low %v4524_v13, %v4556_v14  ;;  %v4557_v29 = vcombine.low %v4501_v11, %v4533_v27 }
 0x4f4   : > { %4590 = vrot.lane.b32.xlu0 %v4564_v40, %s5119_s23  ;;  %4566 = vrot.lane.b32.xlu1 %v4558_v17, %s5116_s8  ;;  %v4618_v60 = vpop.permute.xlu1 %4617 }
 0x4f6   : > { %v2565_v7 = vpop.permute.xlu0 %2564 }
 0x4f8   : > { %4570 = vrot.lane.b32.xlu1 %v4559_v22, %s5115_s14  ;;  %v2549_v20 = vpop.permute.xlu1 %2548 }
 0x4f9   : > { %v2576_v33 = vsel %vm2575_vm11, %v2539_v5, %v2549_v20 }
 0x4fa   : > { %v2578_v28 = vsel %vm2577_vm12, %v2576_v33, %v2553_v30  ;;  %v2573_v2 = vpop.permute.xlu0 %2572 }
 0x4fc   : > { %4574 = vrot.lane.b32.xlu1 %v4560_v42, %s5118_s27  ;;  %v2557_v16 = vpop.permute.xlu1 %2556 }
 0x4fd   : > { %v2580_v55 = vsel %vm2579_vm13, %v2578_v28, %v2557_v16 }
 0x500   : > { %4578 = vrot.lane.b32.xlu1 %v4561_v56, %s5101_s25  ;;  %v2561_v35 = vpop.permute.xlu1 %2560  ;;  %s4769_s25 = sshll.u32 %s5086_s18, 7  ;;  %s5121_s18 = smov [#allocation10]  }
 0x501   : > { %v2582_v15 = vsel %vm2581_vm14, %v2580_v55, %v2561_v35  ;;  %s7478_s30 = scalar_lea.hbm %s7531_s4, %s4769_s25  ;;  %s5008_s7 = sshll.u32 %s5121_s18, 4  ;;  %s5009_s7 = int_to_ptr.vmem [resolvable:$false] %s5008_s7 }
 0x502   : > { %v2584_v4 = vsel %vm2583_vm15, %v2582_v15, %v2565_v7  ;;  %s5010_s14 = scalar_lea.vmem %s5009_s7, 256  ;;  %p5011_p6 = scmp.lt.s32.totalorder %s7480_s5, %s5009_s7 }
 0x503   : > { %p5012_p8 = scmp.lt.s32.totalorder %s5010_s14, %s5004_s13 }
 0x504   : > { %4582 = vrot.lane.b32.xlu1 %v4562_v1, %s5117_s9  ;;  %v2569_v34 = vpop.permute.xlu1 %2568 }
 0x505   : > { %v2586_v10 = vsel %vm2585_vm0, %v2584_v4, %v2569_v34  ;;  %p5013_p0 = por %p5012_p8, %p5011_p6 }
 0x506   : > { %v2588_v32 = vsel %vm2587_vm1, %v2586_v10, %v2573_v2 }
 0x507   : > { %p5014_p5 = pnand %p5013_p0, %p5007_p4 }
 0x508   : > { %4586 = vrot.lane.b32.xlu1 %v4563_v25, %s5120_s24 }
 0x566   : > { %v4567_v53 = vpop.permute.xlu1 %4566  ;;  %v4591_v57 = vpop.permute.xlu0 %4590 }
 0x567   : > { %v4593_v43 = vsel %vm2575_vm11, %v4557_v29, %v4567_v53 }
 0x56a   : > { %v4571_v63 = vpop.permute.xlu1 %4570 }
 0x56b   : > { %v4594_v52 = vsel %vm2577_vm12, %v4593_v43, %v4571_v63 }
 0x56e   : > { %v4575_v18 = vpop.permute.xlu1 %4574 }
 0x56f   : > { %v4595_v50 = vsel %vm2579_vm13, %v4594_v52, %v4575_v18 }
 0x572   : > { %v4579_v23 = vpop.permute.xlu1 %4578 }
 0x573   : > { %v4596_v44 = vsel %vm2581_vm14, %v4595_v50, %v4579_v23 }
 0x576   : > { %v4583_v59 = vpop.permute.xlu1 %4582 }
 0x577   : > { %v4597_v5 = vsel %vm2583_vm15, %v4596_v44, %v4583_v59 }
 0x57a   : > { %v4587_v36 = vpop.permute.xlu1 %4586 }
 0x57b   : > { %v4598_v51 = vsel %vm2585_vm0, %v4597_v5, %v4587_v36 }
 0x57c   : > { %v4599_v37 = vsel %vm2587_vm1, %v4598_v51, %v4591_v57 }
 0x57d   : > { %v4608_v3 = vsel %vm4607_vm2, %v2588_v32, %v4599_v37 }
 0x57e   : > { %v4614_v41 = vmul.f32 %v4612_v31, %v4608_v3 }
 0x580   : > { %v4620_v26 = vadd.f32 %v4618_v60, %v4614_v41 }
 0x582   : > { %4622 = vst.msk [vmem:[%s269_s21] sm:$0xff] %vm4621_vm3, %v4620_v26 }
 0x583   : > { %5017 = shalt.err (!%p5014_p5)
}
 0x584   : > { %s5018_s29 = scalar_lea.hbm %s7478_s30, 128  ;;  %s5022_s27 = scalar_lea.hbm %s7531_s4, 256 }
 0x585   : > { %p5019_p10 = scmp.ne.s32.totalorder %s7478_s30, %s5018_s29  ;;  %p5023_p7 = scmp.lt.u32.totalorder %s7478_s30, %s7531_s4 }
 0x586   : > { %p5024_p3 = scmp.lt.u32.totalorder %s5022_s27, %s5018_s29  ;;  %p5026_p12 = scmp.lt.u32.totalorder %s5018_s29, %s7478_s30 }
 0x587   : > { %p5020_p13 = pnand %p5019_p10, %p5295_p2 }
 0x588   : > { %p5025_p11 = por %p5024_p3, %p5023_p7 }
 0x589   : > { %p5021_p9 = pneg %p5020_p13 }
 0x58a   : > { %p5027_p1 = por %p5026_p12, %p5025_p11 }
 0x58c   : > { %p5028_p4 = pnand %p5027_p1, %p5021_p9 }
 0x58e   : > { %5031 = shalt.err (!%p5028_p4)
}
 0x58f   : > { %4787 = dma.vmem_to_hbm [thread:$0]  (%p5295_p2), %s7480_s5, 128, %s7478_s30, %s4624_s12  }
 0x590 PF: > { %s4650_s25 = sand.u32 1, %s5074_s15   ;;  %p7859_p6 = scmp.ne.s32.totalorder %s7647_s26, 0 }
 0x591   : > { %p7860_p8 = scmp.ge.s32.totalorder %s5094_s20, 2  ;;  %s4651_s21 = scalar_lea.sflag [#allocation4], %s4650_s25 }
 0x593   : > { %p4804_p0 = pnand %p7860_p8, %p7859_p6 }
 0x595   : > { %5069 = dma.done.wait (!%p4804_p0), %s4651_s21, 128  }
 0x596   : > { %5071 = vsyncadd (!%p4804_p0), %s4651_s21, 4294967168  ;;  %s22_s20 = sadd.s32 1, %s5094_s20   ;;  %s7861_s15 = smov %s5078_s16 }
 0x597   : > { %p19_p5 = scmp.ge.s32.totalorder %s22_s20, 4   ;;  %s7862_s16 = smov %s5082_s17 }
 0x598   : > { %s7863_s17 = smov %s5307_s10  ;;  %s7864_s18 = smov %s5090_s19 }
 0x599   : > { %s7865_s19 = smov %s7867_s28  ;;  %21 = sbr.rel (!%p19_p5) target bundleno = 8 (0x8), region = 93 }
 0x5a0   :  { %4656 = vsyncpa [#allocation3], 1 }
 0x5a1   :  { %4658 = vsyncpa [#allocation3 + $0x1], 1 }
 0x5a2   :  { %4659 = vsyncpa [#allocation6], 1 }
 0x5a3   :  { %4660 = vsyncpa [#allocation9], 1 }
 0x5a4   :  { %4661 = vsyncpa [#allocation4], 1 }
 0x5a5   :  { %4663 = vsyncpa [#allocation4 + $0x1], 1 }

</bundles_post_ra>
